<compile_context>
chip_gen: v6e
topology: v6e:2x2x1
jax: 0.10.0
libtpu: 0.0.40
codegen_flags: <defaults>
</compile_context>

<pallas_src>
import functools

import jax
import jax.numpy as jnp
from jax.experimental import pallas as pl
from jax.experimental.pallas import tpu as pltpu

N_NODES = 16          # N
N_EDGES = 32          # E
EMB = 64              # embedding_dim (real feature width)
D_PAD = 128           # lane-padded feature width
HEADS = 4
HEAD_DIM = EMB // HEADS
NUM_LAYERS = 4
NEG_SLOPE = 0.2
LN_EPS = 1e-5


def gat_fused_kernel(x_ref, e_ref, S_ref, T_ref, Tt_ref,
                     Wx_ref, WAs_ref, WAd_ref, WeA_ref, R_ref,
                     bias_ref, gamma_ref, beta_ref,
                     W1_ref, b1_ref, W2_ref, b2_ref,
                     xout_ref, eout_ref):
    f32 = jnp.float32
    x = x_ref[...]            # (N, D_PAD), lanes >= EMB are zero
    e = e_ref[...]            # (E, D_PAD)
    S = S_ref[...]            # (E, N) one-hot source selector
    T = T_ref[...]            # (E, N) one-hot destination selector
    Tt = Tt_ref[...]          # (N, E) = T^T (precomputed -> no in-kernel transpose)

    lane = jax.lax.broadcasted_iota(jnp.int32, (1, D_PAD), 1)
    feat_mask = (lane < EMB).astype(f32)          # LayerNorm over real EMB lanes only
    inv_d = 1.0 / EMB

    for l in range(NUM_LAYERS):                   # static unroll: one launch, 4 layers
        # ---- GATConv projections (attention vectors pre-folded into weights) ----
        xp = jnp.dot(x, Wx_ref[l], preferred_element_type=f32)         # (N, D_PAD)
        a_src = jnp.dot(x, WAs_ref[l], preferred_element_type=f32)     # (N, H)
        a_dst = jnp.dot(x, WAd_ref[l], preferred_element_type=f32)     # (N, H)
        a_edge = jnp.dot(e, WeA_ref[l], preferred_element_type=f32)    # (E, H)

        alpha = (jnp.dot(S, a_src, preferred_element_type=f32)
                 + jnp.dot(T, a_dst, preferred_element_type=f32)
                 + a_edge)                                             # (E, H)
        alpha = jnp.where(alpha > 0.0, alpha, NEG_SLOPE * alpha)       # LeakyReLU

        # ---- per-destination softmax, vectorized across heads ----
        # global per-head max: exactly equivalent to per-group max by shift-invariance
        m = jnp.max(alpha, axis=0, keepdims=True)                      # (1, H)
        ex = jnp.exp(alpha - m)                                        # (E, H)
        den_node = jnp.dot(Tt, ex, preferred_element_type=f32)         # (N, H)
        den_edge = jnp.dot(T, den_node, preferred_element_type=f32)    # (E, H)
        coef = ex / (den_edge + 1e-16)                                 # (E, H)
        alpha_full = jnp.dot(coef, R_ref[l], preferred_element_type=f32)  # (E, D_PAD)

        # ---- message passing + aggregation ----
        xp_src = jnp.dot(S, xp, preferred_element_type=f32)            # (E, D_PAD)
        msg = alpha_full * xp_src
        agg = jnp.dot(Tt, msg, preferred_element_type=f32) + bias_ref[l]   # (N, D_PAD)

        # ---- LayerNorm over the real feature dim (padded lanes of agg are zero) ----
        mu = jnp.sum(agg, axis=-1, keepdims=True) * inv_d
        diff = (agg - mu) * feat_mask
        var = jnp.sum(diff * diff, axis=-1, keepdims=True) * inv_d
        ln = diff * jax.lax.rsqrt(var + LN_EPS) * gamma_ref[l] + beta_ref[l]

        # dropout is identity in eval mode
        x = jnp.maximum(ln, 0.0) + x                                   # ReLU + residual

        # ---- SparseEdgeUpdateLayer: MLP(cat(n_src, n_dst, e)) + residual, outer ReLU ----
        ni = jnp.dot(S, x, preferred_element_type=f32)                 # (E, D_PAD)
        nj = jnp.dot(T, x, preferred_element_type=f32)                 # (E, D_PAD)
        h_in = jnp.concatenate([ni, nj, e], axis=-1)                   # (E, 3*D_PAD)
        h1 = jnp.maximum(
            jnp.dot(h_in, W1_ref[l], preferred_element_type=f32) + b1_ref[l], 0.0)
        e = jnp.maximum(
            jnp.dot(h1, W2_ref[l], preferred_element_type=f32) + b2_ref[l] + e, 0.0)

    xout_ref[...] = x
    eout_ref[...] = e


def gat_base_fused(x_pad, e_pad, S, T, Tt, fp):
    """All NUM_LAYERS layers in a single pallas_call."""
    vmem = pl.BlockSpec(memory_space=pltpu.MemorySpace.VMEM)
    args = (x_pad, e_pad, S, T, Tt,
            fp["Wx"], fp["WAs"], fp["WAd"], fp["WeA"], fp["R"],
            fp["bias"], fp["gamma"], fp["beta"],
            fp["W1"], fp["b1"], fp["W2"], fp["b2"])
    return pl.pallas_call(
        gat_fused_kernel,
        out_shape=(jax.ShapeDtypeStruct(x_pad.shape, jnp.float32),
                   jax.ShapeDtypeStruct(e_pad.shape, jnp.float32)),
        in_specs=[vmem] * len(args),
        out_specs=(vmem, vmem),
        compiler_params=pltpu.CompilerParams(vmem_limit_bytes=32 * 1024 * 1024),
    )(*args)


# ----------------------------- parameter preparation -----------------------------

def _att_to_blockdiag(att):
    """(H, C) attention vector -> block-structured (EMB, H) so xp @ M = per-head dots."""
    M = jnp.zeros((EMB, HEADS), jnp.float32)
    for h in range(HEADS):
        M = M.at[h * HEAD_DIM:(h + 1) * HEAD_DIM, h].set(att[h])
    return M


def _pad2(m, rows, cols):
    return jnp.pad(m, ((0, rows - m.shape[0]), (0, cols - m.shape[1])))


def make_layer_params(key):
    ks = jax.random.split(key, 9)
    s = 0.1
    nrm = lambda k, shp: s * jax.random.normal(k, shp, jnp.float32)
    return dict(
        W=nrm(ks[0], (EMB, EMB)),
        We=nrm(ks[1], (EMB, EMB)),
        att_src=nrm(ks[2], (HEADS, HEAD_DIM)),
        att_dst=nrm(ks[3], (HEADS, HEAD_DIM)),
        att_edge=nrm(ks[4], (HEADS, HEAD_DIM)),
        bias=jnp.zeros((EMB,), jnp.float32),
        gamma=jnp.ones((EMB,), jnp.float32),
        beta=jnp.zeros((EMB,), jnp.float32),
        W1a=nrm(ks[5], (EMB, EMB)),
        W1b=nrm(ks[6], (EMB, EMB)),
        W1c=nrm(ks[7], (EMB, EMB)),
        b1=jnp.zeros((EMB,), jnp.float32),
        W2=nrm(ks[8], (EMB, EMB)),
        b2=jnp.zeros((EMB,), jnp.float32),
    )


def prepare_fused_params(layers):
    """Fold attention vectors into projections, fuse the edge-MLP first layer,
    lane-pad EMB -> D_PAD (zeros), and stack all layers on a leading axis."""
    # head-repeat matrix R: (H, EMB), R[h, h*C + c] = 1
    R = jnp.zeros((HEADS, EMB), jnp.float32)
    for h in range(HEADS):
        R = R.at[h, h * HEAD_DIM:(h + 1) * HEAD_DIM].set(1.0)
    R_pad = jnp.pad(R, ((0, 0), (0, D_PAD - EMB)))

    def one(p):
        WAs = p["W"] @ _att_to_blockdiag(p["att_src"])     # (EMB, H)
        WAd = p["W"] @ _att_to_blockdiag(p["att_dst"])
        WeA = p["We"] @ _att_to_blockdiag(p["att_edge"])
        W1 = jnp.concatenate([_pad2(p["W1a"], D_PAD, D_PAD),
                              _pad2(p["W1b"], D_PAD, D_PAD),
                              _pad2(p["W1c"], D_PAD, D_PAD)], axis=0)  # (3*D_PAD, D_PAD)
        row = lambda v: _pad2(v[None, :], 1, D_PAD)        # (1, D_PAD), zero-padded
        return dict(
            Wx=_pad2(p["W"], D_PAD, D_PAD),
            WAs=jnp.pad(WAs, ((0, D_PAD - EMB), (0, 0))),
            WAd=jnp.pad(WAd, ((0, D_PAD - EMB), (0, 0))),
            WeA=jnp.pad(WeA, ((0, D_PAD - EMB), (0, 0))),
            R=R_pad,
            bias=row(p["bias"]), gamma=row(p["gamma"]), beta=row(p["beta"]),
            W1=W1, b1=row(p["b1"]),
            W2=_pad2(p["W2"], D_PAD, D_PAD), b2=row(p["b2"]),
        )

    per = [one(p) for p in layers]
    return {k: jnp.stack([p[k] for p in per], axis=0) for k in per[0]}


# --------------------------------- full forward ---------------------------------

def gat_base_forward(x_int, edge_attr_int, edge_index, params):
    """GATBase forward. x_int: (N, n_atom_feat) int32, edge_attr_int: (E, n_bond_feat)
    int32, edge_index: (2, E) int32."""
    # Atom/Bond encoders: sum of per-feature embedding lookups (plain-JAX glue;
    # data-dependent gather, not the hot path).
    node_feats = jnp.zeros((x_int.shape[0], EMB), jnp.float32)
    for f, tbl in enumerate(params["atom_emb"]):
        node_feats = node_feats + jnp.take(tbl, x_int[:, f], axis=0)
    edge_feats = jnp.zeros((edge_attr_int.shape[0], EMB), jnp.float32)
    for f, tbl in enumerate(params["bond_emb"]):
        edge_feats = edge_feats + jnp.take(tbl, edge_attr_int[:, f], axis=0)

    # lane-pad feature dim to 128 (padded lanes zero; kept zero inside the kernel)
    x_pad = jnp.pad(node_feats, ((0, 0), (0, D_PAD - EMB)))
    e_pad = jnp.pad(edge_feats, ((0, 0), (0, D_PAD - EMB)))

    # one-hot src/dst selectors (E, N): turn gather/scatter into matmuls
    src, dst = edge_index[0], edge_index[1]
    S = jax.nn.one_hot(src, N_NODES, dtype=jnp.float32)
    T = jax.nn.one_hot(dst, N_NODES, dtype=jnp.float32)
    Tt = T.T

    x_out, e_out = gat_base_fused(x_pad, e_pad, S, T, Tt, params["fused"])
    return x_out[:, :EMB], e_out[:, :EMB]


if __name__ == "__main__":
    key = jax.random.PRNGKey(0)
    k_graph, k_param = jax.random.split(key)

    # deterministic synthetic molecular-style graph: ring with both directions
    src = jnp.concatenate([jnp.arange(N_NODES), (jnp.arange(N_NODES) + 1) % N_NODES])
    dst = jnp.concatenate([(jnp.arange(N_NODES) + 1) % N_NODES, jnp.arange(N_NODES)])
    edge_index = jnp.stack([src, dst]).astype(jnp.int32)          # (2, E)

    kx, ke = jax.random.split(k_graph)
    x_int = jax.random.randint(kx, (N_NODES, 3), 0, 16, jnp.int32)         # atom features
    edge_attr_int = jax.random.randint(ke, (N_EDGES, 2), 0, 8, jnp.int32)  # bond features

    # parameters
    k_atom, k_bond, k_layers = jax.random.split(k_param, 3)
    atom_emb = [0.1 * jax.random.normal(k, (16, EMB), jnp.float32)
                for k in jax.random.split(k_atom, 3)]
    bond_emb = [0.1 * jax.random.normal(k, (8, EMB), jnp.float32)
                for k in jax.random.split(k_bond, 2)]
    layer_params = [make_layer_params(k) for k in jax.random.split(k_layers, NUM_LAYERS)]
    params = dict(atom_emb=atom_emb, bond_emb=bond_emb,
                  fused=prepare_fused_params(layer_params))

    fwd = jax.jit(functools.partial(gat_base_forward, params=params))
    node_out, edge_out = fwd(x_int, edge_attr_int, edge_index)
    jax.block_until_ready((node_out, edge_out))

    assert node_out.shape == (N_NODES, EMB) and edge_out.shape == (N_EDGES, EMB)
    assert bool(jnp.all(jnp.isfinite(node_out))) and bool(jnp.all(jnp.isfinite(edge_out)))
    print("KERNEL_OK")
</pallas_src>

<mosaic_0001>
module attributes {stable_mosaic.version = 11 : i64} {
  func.func @gat_fused_kernel(%arg0: memref<16x128xf32, #tpu.memory_space<vmem>>, %arg1: memref<32x128xf32, #tpu.memory_space<vmem>>, %arg2: memref<32x16xf32, #tpu.memory_space<vmem>>, %arg3: memref<32x16xf32, #tpu.memory_space<vmem>>, %arg4: memref<16x32xf32, #tpu.memory_space<vmem>>, %arg5: memref<4x128x128xf32, #tpu.memory_space<vmem>>, %arg6: memref<4x128x4xf32, #tpu.memory_space<vmem>>, %arg7: memref<4x128x4xf32, #tpu.memory_space<vmem>>, %arg8: memref<4x128x4xf32, #tpu.memory_space<vmem>>, %arg9: memref<4x4x128xf32, #tpu.memory_space<vmem>>, %arg10: memref<4x1x128xf32, #tpu.memory_space<vmem>>, %arg11: memref<4x1x128xf32, #tpu.memory_space<vmem>>, %arg12: memref<4x1x128xf32, #tpu.memory_space<vmem>>, %arg13: memref<4x384x128xf32, #tpu.memory_space<vmem>>, %arg14: memref<4x1x128xf32, #tpu.memory_space<vmem>>, %arg15: memref<4x128x128xf32, #tpu.memory_space<vmem>>, %arg16: memref<4x1x128xf32, #tpu.memory_space<vmem>>, %arg17: memref<16x128xf32, #tpu.memory_space<vmem>>, %arg18: memref<32x128xf32, #tpu.memory_space<vmem>>) attributes {dimension_semantics = [], scalar_prefetch = 0 : i64, scratch_operands = 0 : i64, tpu.core_type = #tpu.core_type<tc>} {
    %c0 = arith.constant 0 : index
    %c0_0 = arith.constant 0 : index
    %0 = vector.load %arg0[%c0, %c0_0] : memref<16x128xf32, #tpu.memory_space<vmem>>, vector<16x128xf32>
    %c0_1 = arith.constant 0 : index
    %c0_2 = arith.constant 0 : index
    %1 = vector.load %arg1[%c0_1, %c0_2] : memref<32x128xf32, #tpu.memory_space<vmem>>, vector<32x128xf32>
    %c0_3 = arith.constant 0 : index
    %c0_4 = arith.constant 0 : index
    %2 = vector.load %arg2[%c0_3, %c0_4] : memref<32x16xf32, #tpu.memory_space<vmem>>, vector<32x16xf32>
    %c0_5 = arith.constant 0 : index
    %c0_6 = arith.constant 0 : index
    %3 = vector.load %arg3[%c0_5, %c0_6] : memref<32x16xf32, #tpu.memory_space<vmem>>, vector<32x16xf32>
    %c0_7 = arith.constant 0 : index
    %c0_8 = arith.constant 0 : index
    %4 = vector.load %arg4[%c0_7, %c0_8] : memref<16x32xf32, #tpu.memory_space<vmem>>, vector<16x32xf32>
    %5 = tpu.iota {dimensions = array<i32: 1>} : vector<1x128xi32>
    %c64_i32 = arith.constant 64 : i32
    %6 = vector.broadcast %c64_i32 : i32 to vector<1x128xi32>
    %7 = arith.cmpi slt, %5, %6 : vector<1x128xi32>
    %8 = arith.extui %7 : vector<1x128xi1> to vector<1x128xi32>
    %9 = arith.sitofp %8 : vector<1x128xi32> to vector<1x128xf32>
    %c0_9 = arith.constant 0 : index
    %c0_10 = arith.constant 0 : index
    %c0_11 = arith.constant 0 : index
    %10 = vector.load %arg5[%c0_9, %c0_10, %c0_11] : memref<4x128x128xf32, #tpu.memory_space<vmem>>, vector<1x128x128xf32>
    %11 = vector.shape_cast %10 : vector<1x128x128xf32> to vector<128x128xf32>
    %cst = arith.constant dense<0.000000e+00> : vector<16x128xf32>
    %12 = tpu.matmul %0, %11, %cst {dimension_numbers = #tpu.dot_dimension_numbers<[1], [0], [0], [1], [0, 0, 1, 1], [], []>} : vector<16x128xf32>, vector<128x128xf32>, vector<16x128xf32> -> vector<16x128xf32>
    %c0_12 = arith.constant 0 : index
    %c0_13 = arith.constant 0 : index
    %c0_14 = arith.constant 0 : index
    %13 = vector.load %arg6[%c0_12, %c0_13, %c0_14] : memref<4x128x4xf32, #tpu.memory_space<vmem>>, vector<1x128x4xf32>
    %14 = vector.shape_cast %13 : vector<1x128x4xf32> to vector<128x4xf32>
    %cst_15 = arith.constant dense<0.000000e+00> : vector<16x4xf32>
    %15 = tpu.matmul %0, %14, %cst_15 {dimension_numbers = #tpu.dot_dimension_numbers<[1], [0], [0], [1], [0, 0, 1, 1], [], []>} : vector<16x128xf32>, vector<128x4xf32>, vector<16x4xf32> -> vector<16x4xf32>
    %c0_16 = arith.constant 0 : index
    %c0_17 = arith.constant 0 : index
    %c0_18 = arith.constant 0 : index
    %16 = vector.load %arg7[%c0_16, %c0_17, %c0_18] : memref<4x128x4xf32, #tpu.memory_space<vmem>>, vector<1x128x4xf32>
    %17 = vector.shape_cast %16 : vector<1x128x4xf32> to vector<128x4xf32>
    %cst_19 = arith.constant dense<0.000000e+00> : vector<16x4xf32>
    %18 = tpu.matmul %0, %17, %cst_19 {dimension_numbers = #tpu.dot_dimension_numbers<[1], [0], [0], [1], [0, 0, 1, 1], [], []>} : vector<16x128xf32>, vector<128x4xf32>, vector<16x4xf32> -> vector<16x4xf32>
    %c0_20 = arith.constant 0 : index
    %c0_21 = arith.constant 0 : index
    %c0_22 = arith.constant 0 : index
    %19 = vector.load %arg8[%c0_20, %c0_21, %c0_22] : memref<4x128x4xf32, #tpu.memory_space<vmem>>, vector<1x128x4xf32>
    %20 = vector.shape_cast %19 : vector<1x128x4xf32> to vector<128x4xf32>
    %cst_23 = arith.constant dense<0.000000e+00> : vector<32x4xf32>
    %21 = tpu.matmul %1, %20, %cst_23 {dimension_numbers = #tpu.dot_dimension_numbers<[1], [0], [0], [1], [0, 0, 1, 1], [], []>} : vector<32x128xf32>, vector<128x4xf32>, vector<32x4xf32> -> vector<32x4xf32>
    %cst_24 = arith.constant dense<0.000000e+00> : vector<32x4xf32>
    %22 = tpu.matmul %2, %15, %cst_24 {dimension_numbers = #tpu.dot_dimension_numbers<[1], [0], [0], [1], [0, 0, 1, 1], [], []>} : vector<32x16xf32>, vector<16x4xf32>, vector<32x4xf32> -> vector<32x4xf32>
    %cst_25 = arith.constant dense<0.000000e+00> : vector<32x4xf32>
    %23 = tpu.matmul %3, %18, %cst_25 {dimension_numbers = #tpu.dot_dimension_numbers<[1], [0], [0], [1], [0, 0, 1, 1], [], []>} : vector<32x16xf32>, vector<16x4xf32>, vector<32x4xf32> -> vector<32x4xf32>
    %24 = arith.addf %22, %23 : vector<32x4xf32>
    %25 = arith.addf %24, %21 : vector<32x4xf32>
    %cst_26 = arith.constant 0.000000e+00 : f32
    %26 = vector.broadcast %cst_26 : f32 to vector<32x4xf32>
    %27 = arith.cmpf ogt, %25, %26 : vector<32x4xf32>
    %cst_27 = arith.constant 2.000000e-01 : f32
    %28 = vector.broadcast %cst_27 : f32 to vector<32x4xf32>
    %29 = arith.mulf %28, %25 : vector<32x4xf32>
    %30 = arith.select %27, %25, %29 : vector<32x4xi1>, vector<32x4xf32>
    %cst_28 = arith.constant dense<0xFF800000> : vector<4xf32>
    %31 = vector.multi_reduction <maximumf>, %30, %cst_28 [0] : vector<32x4xf32> to vector<4xf32>
    %32 = vector.shape_cast %31 : vector<4xf32> to vector<1x4xf32>
    %33 = vector.broadcast %32 : vector<1x4xf32> to vector<32x4xf32>
    %34 = arith.subf %30, %33 : vector<32x4xf32>
    %35 = math.exp %34 : vector<32x4xf32>
    %cst_29 = arith.constant dense<0.000000e+00> : vector<16x4xf32>
    %36 = tpu.matmul %4, %35, %cst_29 {dimension_numbers = #tpu.dot_dimension_numbers<[1], [0], [0], [1], [0, 0, 1, 1], [], []>} : vector<16x32xf32>, vector<32x4xf32>, vector<16x4xf32> -> vector<16x4xf32>
    %cst_30 = arith.constant dense<0.000000e+00> : vector<32x4xf32>
    %37 = tpu.matmul %3, %36, %cst_30 {dimension_numbers = #tpu.dot_dimension_numbers<[1], [0], [0], [1], [0, 0, 1, 1], [], []>} : vector<32x16xf32>, vector<16x4xf32>, vector<32x4xf32> -> vector<32x4xf32>
    %cst_31 = arith.constant 1.000000e-16 : f32
    %38 = vector.broadcast %cst_31 : f32 to vector<32x4xf32>
    %39 = arith.addf %37, %38 : vector<32x4xf32>
    %40 = arith.divf %35, %39 : vector<32x4xf32>
    %c0_32 = arith.constant 0 : index
    %c0_33 = arith.constant 0 : index
    %c0_34 = arith.constant 0 : index
    %41 = vector.load %arg9[%c0_32, %c0_33, %c0_34] : memref<4x4x128xf32, #tpu.memory_space<vmem>>, vector<1x4x128xf32>
    %42 = vector.shape_cast %41 : vector<1x4x128xf32> to vector<4x128xf32>
    %cst_35 = arith.constant dense<0.000000e+00> : vector<32x128xf32>
    %43 = tpu.matmul %40, %42, %cst_35 {dimension_numbers = #tpu.dot_dimension_numbers<[1], [0], [0], [1], [0, 0, 1, 1], [], []>} : vector<32x4xf32>, vector<4x128xf32>, vector<32x128xf32> -> vector<32x128xf32>
    %cst_36 = arith.constant dense<0.000000e+00> : vector<32x128xf32>
    %44 = tpu.matmul %2, %12, %cst_36 {dimension_numbers = #tpu.dot_dimension_numbers<[1], [0], [0], [1], [0, 0, 1, 1], [], []>} : vector<32x16xf32>, vector<16x128xf32>, vector<32x128xf32> -> vector<32x128xf32>
    %45 = arith.mulf %43, %44 : vector<32x128xf32>
    %cst_37 = arith.constant dense<0.000000e+00> : vector<16x128xf32>
    %46 = tpu.matmul %4, %45, %cst_37 {dimension_numbers = #tpu.dot_dimension_numbers<[1], [0], [0], [1], [0, 0, 1, 1], [], []>} : vector<16x32xf32>, vector<32x128xf32>, vector<16x128xf32> -> vector<16x128xf32>
    %c0_38 = arith.constant 0 : index
    %c0_39 = arith.constant 0 : index
    %c0_40 = arith.constant 0 : index
    %47 = vector.load %arg10[%c0_38, %c0_39, %c0_40] : memref<4x1x128xf32, #tpu.memory_space<vmem>>, vector<1x1x128xf32>
    %48 = vector.shape_cast %47 : vector<1x1x128xf32> to vector<1x128xf32>
    %49 = vector.broadcast %48 : vector<1x128xf32> to vector<16x128xf32>
    %50 = arith.addf %46, %49 : vector<16x128xf32>
    %cst_41 = arith.constant dense<0.000000e+00> : vector<16xf32>
    %51 = vector.multi_reduction <add>, %50, %cst_41 [1] : vector<16x128xf32> to vector<16xf32>
    %52 = vector.shape_cast %51 : vector<16xf32> to vector<16x1xf32>
    %cst_42 = arith.constant 1.562500e-02 : f32
    %53 = vector.broadcast %cst_42 : f32 to vector<16x1xf32>
    %54 = arith.mulf %52, %53 : vector<16x1xf32>
    %55 = vector.broadcast %54 : vector<16x1xf32> to vector<16x128xf32>
    %56 = arith.subf %50, %55 : vector<16x128xf32>
    %57 = vector.broadcast %9 : vector<1x128xf32> to vector<16x128xf32>
    %58 = arith.mulf %56, %57 : vector<16x128xf32>
    %59 = arith.mulf %58, %58 : vector<16x128xf32>
    %cst_43 = arith.constant dense<0.000000e+00> : vector<16xf32>
    %60 = vector.multi_reduction <add>, %59, %cst_43 [1] : vector<16x128xf32> to vector<16xf32>
    %61 = vector.shape_cast %60 : vector<16xf32> to vector<16x1xf32>
    %cst_44 = arith.constant 1.562500e-02 : f32
    %62 = vector.broadcast %cst_44 : f32 to vector<16x1xf32>
    %63 = arith.mulf %61, %62 : vector<16x1xf32>
    %cst_45 = arith.constant 9.99999974E-6 : f32
    %64 = vector.broadcast %cst_45 : f32 to vector<16x1xf32>
    %65 = arith.addf %63, %64 : vector<16x1xf32>
    %66 = math.rsqrt %65 : vector<16x1xf32>
    %67 = vector.broadcast %66 : vector<16x1xf32> to vector<16x128xf32>
    %68 = arith.mulf %58, %67 : vector<16x128xf32>
    %c0_46 = arith.constant 0 : index
    %c0_47 = arith.constant 0 : index
    %c0_48 = arith.constant 0 : index
    %69 = vector.load %arg11[%c0_46, %c0_47, %c0_48] : memref<4x1x128xf32, #tpu.memory_space<vmem>>, vector<1x1x128xf32>
    %70 = vector.shape_cast %69 : vector<1x1x128xf32> to vector<1x128xf32>
    %71 = vector.broadcast %70 : vector<1x128xf32> to vector<16x128xf32>
    %72 = arith.mulf %68, %71 : vector<16x128xf32>
    %c0_49 = arith.constant 0 : index
    %c0_50 = arith.constant 0 : index
    %c0_51 = arith.constant 0 : index
    %73 = vector.load %arg12[%c0_49, %c0_50, %c0_51] : memref<4x1x128xf32, #tpu.memory_space<vmem>>, vector<1x1x128xf32>
    %74 = vector.shape_cast %73 : vector<1x1x128xf32> to vector<1x128xf32>
    %75 = vector.broadcast %74 : vector<1x128xf32> to vector<16x128xf32>
    %76 = arith.addf %72, %75 : vector<16x128xf32>
    %cst_52 = arith.constant 0.000000e+00 : f32
    %77 = vector.broadcast %cst_52 : f32 to vector<16x128xf32>
    %78 = arith.maximumf %76, %77 : vector<16x128xf32>
    %79 = arith.addf %78, %0 : vector<16x128xf32>
    %cst_53 = arith.constant dense<0.000000e+00> : vector<32x128xf32>
    %80 = tpu.matmul %2, %79, %cst_53 {dimension_numbers = #tpu.dot_dimension_numbers<[1], [0], [0], [1], [0, 0, 1, 1], [], []>} : vector<32x16xf32>, vector<16x128xf32>, vector<32x128xf32> -> vector<32x128xf32>
    %cst_54 = arith.constant dense<0.000000e+00> : vector<32x128xf32>
    %81 = tpu.matmul %3, %79, %cst_54 {dimension_numbers = #tpu.dot_dimension_numbers<[1], [0], [0], [1], [0, 0, 1, 1], [], []>} : vector<32x16xf32>, vector<16x128xf32>, vector<32x128xf32> -> vector<32x128xf32>
    %82 = tpu.concatenate %80, %81, %1 in 1 : vector<32x128xf32>, vector<32x128xf32>, vector<32x128xf32> -> vector<32x384xf32>
    %c0_55 = arith.constant 0 : index
    %c0_56 = arith.constant 0 : index
    %c0_57 = arith.constant 0 : index
    %83 = vector.load %arg13[%c0_55, %c0_56, %c0_57] : memref<4x384x128xf32, #tpu.memory_space<vmem>>, vector<1x384x128xf32>
    %84 = vector.shape_cast %83 : vector<1x384x128xf32> to vector<384x128xf32>
    %cst_58 = arith.constant dense<0.000000e+00> : vector<32x128xf32>
    %85 = tpu.matmul %82, %84, %cst_58 {dimension_numbers = #tpu.dot_dimension_numbers<[1], [0], [0], [1], [0, 0, 1, 1], [], []>} : vector<32x384xf32>, vector<384x128xf32>, vector<32x128xf32> -> vector<32x128xf32>
    %c0_59 = arith.constant 0 : index
    %c0_60 = arith.constant 0 : index
    %c0_61 = arith.constant 0 : index
    %86 = vector.load %arg14[%c0_59, %c0_60, %c0_61] : memref<4x1x128xf32, #tpu.memory_space<vmem>>, vector<1x1x128xf32>
    %87 = vector.shape_cast %86 : vector<1x1x128xf32> to vector<1x128xf32>
    %88 = vector.broadcast %87 : vector<1x128xf32> to vector<32x128xf32>
    %89 = arith.addf %85, %88 : vector<32x128xf32>
    %cst_62 = arith.constant 0.000000e+00 : f32
    %90 = vector.broadcast %cst_62 : f32 to vector<32x128xf32>
    %91 = arith.maximumf %89, %90 : vector<32x128xf32>
    %c0_63 = arith.constant 0 : index
    %c0_64 = arith.constant 0 : index
    %c0_65 = arith.constant 0 : index
    %92 = vector.load %arg15[%c0_63, %c0_64, %c0_65] : memref<4x128x128xf32, #tpu.memory_space<vmem>>, vector<1x128x128xf32>
    %93 = vector.shape_cast %92 : vector<1x128x128xf32> to vector<128x128xf32>
    %cst_66 = arith.constant dense<0.000000e+00> : vector<32x128xf32>
    %94 = tpu.matmul %91, %93, %cst_66 {dimension_numbers = #tpu.dot_dimension_numbers<[1], [0], [0], [1], [0, 0, 1, 1], [], []>} : vector<32x128xf32>, vector<128x128xf32>, vector<32x128xf32> -> vector<32x128xf32>
    %c0_67 = arith.constant 0 : index
    %c0_68 = arith.constant 0 : index
    %c0_69 = arith.constant 0 : index
    %95 = vector.load %arg16[%c0_67, %c0_68, %c0_69] : memref<4x1x128xf32, #tpu.memory_space<vmem>>, vector<1x1x128xf32>
    %96 = vector.shape_cast %95 : vector<1x1x128xf32> to vector<1x128xf32>
    %97 = vector.broadcast %96 : vector<1x128xf32> to vector<32x128xf32>
    %98 = arith.addf %94, %97 : vector<32x128xf32>
    %99 = arith.addf %98, %1 : vector<32x128xf32>
    %cst_70 = arith.constant 0.000000e+00 : f32
    %100 = vector.broadcast %cst_70 : f32 to vector<32x128xf32>
    %101 = arith.maximumf %99, %100 : vector<32x128xf32>
    %c1 = arith.constant 1 : index
    %c0_71 = arith.constant 0 : index
    %c0_72 = arith.constant 0 : index
    %102 = vector.load %arg5[%c1, %c0_71, %c0_72] : memref<4x128x128xf32, #tpu.memory_space<vmem>>, vector<1x128x128xf32>
    %103 = vector.shape_cast %102 : vector<1x128x128xf32> to vector<128x128xf32>
    %cst_73 = arith.constant dense<0.000000e+00> : vector<16x128xf32>
    %104 = tpu.matmul %79, %103, %cst_73 {dimension_numbers = #tpu.dot_dimension_numbers<[1], [0], [0], [1], [0, 0, 1, 1], [], []>} : vector<16x128xf32>, vector<128x128xf32>, vector<16x128xf32> -> vector<16x128xf32>
    %c1_74 = arith.constant 1 : index
    %c0_75 = arith.constant 0 : index
    %c0_76 = arith.constant 0 : index
    %105 = vector.load %arg6[%c1_74, %c0_75, %c0_76] : memref<4x128x4xf32, #tpu.memory_space<vmem>>, vector<1x128x4xf32>
    %106 = vector.shape_cast %105 : vector<1x128x4xf32> to vector<128x4xf32>
    %cst_77 = arith.constant dense<0.000000e+00> : vector<16x4xf32>
    %107 = tpu.matmul %79, %106, %cst_77 {dimension_numbers = #tpu.dot_dimension_numbers<[1], [0], [0], [1], [0, 0, 1, 1], [], []>} : vector<16x128xf32>, vector<128x4xf32>, vector<16x4xf32> -> vector<16x4xf32>
    %c1_78 = arith.constant 1 : index
    %c0_79 = arith.constant 0 : index
    %c0_80 = arith.constant 0 : index
    %108 = vector.load %arg7[%c1_78, %c0_79, %c0_80] : memref<4x128x4xf32, #tpu.memory_space<vmem>>, vector<1x128x4xf32>
    %109 = vector.shape_cast %108 : vector<1x128x4xf32> to vector<128x4xf32>
    %cst_81 = arith.constant dense<0.000000e+00> : vector<16x4xf32>
    %110 = tpu.matmul %79, %109, %cst_81 {dimension_numbers = #tpu.dot_dimension_numbers<[1], [0], [0], [1], [0, 0, 1, 1], [], []>} : vector<16x128xf32>, vector<128x4xf32>, vector<16x4xf32> -> vector<16x4xf32>
    %c1_82 = arith.constant 1 : index
    %c0_83 = arith.constant 0 : index
    %c0_84 = arith.constant 0 : index
    %111 = vector.load %arg8[%c1_82, %c0_83, %c0_84] : memref<4x128x4xf32, #tpu.memory_space<vmem>>, vector<1x128x4xf32>
    %112 = vector.shape_cast %111 : vector<1x128x4xf32> to vector<128x4xf32>
    %cst_85 = arith.constant dense<0.000000e+00> : vector<32x4xf32>
    %113 = tpu.matmul %101, %112, %cst_85 {dimension_numbers = #tpu.dot_dimension_numbers<[1], [0], [0], [1], [0, 0, 1, 1], [], []>} : vector<32x128xf32>, vector<128x4xf32>, vector<32x4xf32> -> vector<32x4xf32>
    %cst_86 = arith.constant dense<0.000000e+00> : vector<32x4xf32>
    %114 = tpu.matmul %2, %107, %cst_86 {dimension_numbers = #tpu.dot_dimension_numbers<[1], [0], [0], [1], [0, 0, 1, 1], [], []>} : vector<32x16xf32>, vector<16x4xf32>, vector<32x4xf32> -> vector<32x4xf32>
    %cst_87 = arith.constant dense<0.000000e+00> : vector<32x4xf32>
    %115 = tpu.matmul %3, %110, %cst_87 {dimension_numbers = #tpu.dot_dimension_numbers<[1], [0], [0], [1], [0, 0, 1, 1], [], []>} : vector<32x16xf32>, vector<16x4xf32>, vector<32x4xf32> -> vector<32x4xf32>
    %116 = arith.addf %114, %115 : vector<32x4xf32>
    %117 = arith.addf %116, %113 : vector<32x4xf32>
    %cst_88 = arith.constant 0.000000e+00 : f32
    %118 = vector.broadcast %cst_88 : f32 to vector<32x4xf32>
    %119 = arith.cmpf ogt, %117, %118 : vector<32x4xf32>
    %cst_89 = arith.constant 2.000000e-01 : f32
    %120 = vector.broadcast %cst_89 : f32 to vector<32x4xf32>
    %121 = arith.mulf %120, %117 : vector<32x4xf32>
    %122 = arith.select %119, %117, %121 : vector<32x4xi1>, vector<32x4xf32>
    %cst_90 = arith.constant dense<0xFF800000> : vector<4xf32>
    %123 = vector.multi_reduction <maximumf>, %122, %cst_90 [0] : vector<32x4xf32> to vector<4xf32>
    %124 = vector.shape_cast %123 : vector<4xf32> to vector<1x4xf32>
    %125 = vector.broadcast %124 : vector<1x4xf32> to vector<32x4xf32>
    %126 = arith.subf %122, %125 : vector<32x4xf32>
    %127 = math.exp %126 : vector<32x4xf32>
    %cst_91 = arith.constant dense<0.000000e+00> : vector<16x4xf32>
    %128 = tpu.matmul %4, %127, %cst_91 {dimension_numbers = #tpu.dot_dimension_numbers<[1], [0], [0], [1], [0, 0, 1, 1], [], []>} : vector<16x32xf32>, vector<32x4xf32>, vector<16x4xf32> -> vector<16x4xf32>
    %cst_92 = arith.constant dense<0.000000e+00> : vector<32x4xf32>
    %129 = tpu.matmul %3, %128, %cst_92 {dimension_numbers = #tpu.dot_dimension_numbers<[1], [0], [0], [1], [0, 0, 1, 1], [], []>} : vector<32x16xf32>, vector<16x4xf32>, vector<32x4xf32> -> vector<32x4xf32>
    %cst_93 = arith.constant 1.000000e-16 : f32
    %130 = vector.broadcast %cst_93 : f32 to vector<32x4xf32>
    %131 = arith.addf %129, %130 : vector<32x4xf32>
    %132 = arith.divf %127, %131 : vector<32x4xf32>
    %c1_94 = arith.constant 1 : index
    %c0_95 = arith.constant 0 : index
    %c0_96 = arith.constant 0 : index
    %133 = vector.load %arg9[%c1_94, %c0_95, %c0_96] : memref<4x4x128xf32, #tpu.memory_space<vmem>>, vector<1x4x128xf32>
    %134 = vector.shape_cast %133 : vector<1x4x128xf32> to vector<4x128xf32>
    %cst_97 = arith.constant dense<0.000000e+00> : vector<32x128xf32>
    %135 = tpu.matmul %132, %134, %cst_97 {dimension_numbers = #tpu.dot_dimension_numbers<[1], [0], [0], [1], [0, 0, 1, 1], [], []>} : vector<32x4xf32>, vector<4x128xf32>, vector<32x128xf32> -> vector<32x128xf32>
    %cst_98 = arith.constant dense<0.000000e+00> : vector<32x128xf32>
    %136 = tpu.matmul %2, %104, %cst_98 {dimension_numbers = #tpu.dot_dimension_numbers<[1], [0], [0], [1], [0, 0, 1, 1], [], []>} : vector<32x16xf32>, vector<16x128xf32>, vector<32x128xf32> -> vector<32x128xf32>
    %137 = arith.mulf %135, %136 : vector<32x128xf32>
    %cst_99 = arith.constant dense<0.000000e+00> : vector<16x128xf32>
    %138 = tpu.matmul %4, %137, %cst_99 {dimension_numbers = #tpu.dot_dimension_numbers<[1], [0], [0], [1], [0, 0, 1, 1], [], []>} : vector<16x32xf32>, vector<32x128xf32>, vector<16x128xf32> -> vector<16x128xf32>
    %c1_100 = arith.constant 1 : index
    %c0_101 = arith.constant 0 : index
    %c0_102 = arith.constant 0 : index
    %139 = vector.load %arg10[%c1_100, %c0_101, %c0_102] : memref<4x1x128xf32, #tpu.memory_space<vmem>>, vector<1x1x128xf32>
    %140 = vector.shape_cast %139 : vector<1x1x128xf32> to vector<1x128xf32>
    %141 = vector.broadcast %140 : vector<1x128xf32> to vector<16x128xf32>
    %142 = arith.addf %138, %141 : vector<16x128xf32>
    %cst_103 = arith.constant dense<0.000000e+00> : vector<16xf32>
    %143 = vector.multi_reduction <add>, %142, %cst_103 [1] : vector<16x128xf32> to vector<16xf32>
    %144 = vector.shape_cast %143 : vector<16xf32> to vector<16x1xf32>
    %cst_104 = arith.constant 1.562500e-02 : f32
    %145 = vector.broadcast %cst_104 : f32 to vector<16x1xf32>
    %146 = arith.mulf %144, %145 : vector<16x1xf32>
    %147 = vector.broadcast %146 : vector<16x1xf32> to vector<16x128xf32>
    %148 = arith.subf %142, %147 : vector<16x128xf32>
    %149 = vector.broadcast %9 : vector<1x128xf32> to vector<16x128xf32>
    %150 = arith.mulf %148, %149 : vector<16x128xf32>
    %151 = arith.mulf %150, %150 : vector<16x128xf32>
    %cst_105 = arith.constant dense<0.000000e+00> : vector<16xf32>
    %152 = vector.multi_reduction <add>, %151, %cst_105 [1] : vector<16x128xf32> to vector<16xf32>
    %153 = vector.shape_cast %152 : vector<16xf32> to vector<16x1xf32>
    %cst_106 = arith.constant 1.562500e-02 : f32
    %154 = vector.broadcast %cst_106 : f32 to vector<16x1xf32>
    %155 = arith.mulf %153, %154 : vector<16x1xf32>
    %cst_107 = arith.constant 9.99999974E-6 : f32
    %156 = vector.broadcast %cst_107 : f32 to vector<16x1xf32>
    %157 = arith.addf %155, %156 : vector<16x1xf32>
    %158 = math.rsqrt %157 : vector<16x1xf32>
    %159 = vector.broadcast %158 : vector<16x1xf32> to vector<16x128xf32>
    %160 = arith.mulf %150, %159 : vector<16x128xf32>
    %c1_108 = arith.constant 1 : index
    %c0_109 = arith.constant 0 : index
    %c0_110 = arith.constant 0 : index
    %161 = vector.load %arg11[%c1_108, %c0_109, %c0_110] : memref<4x1x128xf32, #tpu.memory_space<vmem>>, vector<1x1x128xf32>
    %162 = vector.shape_cast %161 : vector<1x1x128xf32> to vector<1x128xf32>
    %163 = vector.broadcast %162 : vector<1x128xf32> to vector<16x128xf32>
    %164 = arith.mulf %160, %163 : vector<16x128xf32>
    %c1_111 = arith.constant 1 : index
    %c0_112 = arith.constant 0 : index
    %c0_113 = arith.constant 0 : index
    %165 = vector.load %arg12[%c1_111, %c0_112, %c0_113] : memref<4x1x128xf32, #tpu.memory_space<vmem>>, vector<1x1x128xf32>
    %166 = vector.shape_cast %165 : vector<1x1x128xf32> to vector<1x128xf32>
    %167 = vector.broadcast %166 : vector<1x128xf32> to vector<16x128xf32>
    %168 = arith.addf %164, %167 : vector<16x128xf32>
    %cst_114 = arith.constant 0.000000e+00 : f32
    %169 = vector.broadcast %cst_114 : f32 to vector<16x128xf32>
    %170 = arith.maximumf %168, %169 : vector<16x128xf32>
    %171 = arith.addf %170, %79 : vector<16x128xf32>
    %cst_115 = arith.constant dense<0.000000e+00> : vector<32x128xf32>
    %172 = tpu.matmul %2, %171, %cst_115 {dimension_numbers = #tpu.dot_dimension_numbers<[1], [0], [0], [1], [0, 0, 1, 1], [], []>} : vector<32x16xf32>, vector<16x128xf32>, vector<32x128xf32> -> vector<32x128xf32>
    %cst_116 = arith.constant dense<0.000000e+00> : vector<32x128xf32>
    %173 = tpu.matmul %3, %171, %cst_116 {dimension_numbers = #tpu.dot_dimension_numbers<[1], [0], [0], [1], [0, 0, 1, 1], [], []>} : vector<32x16xf32>, vector<16x128xf32>, vector<32x128xf32> -> vector<32x128xf32>
    %174 = tpu.concatenate %172, %173, %101 in 1 : vector<32x128xf32>, vector<32x128xf32>, vector<32x128xf32> -> vector<32x384xf32>
    %c1_117 = arith.constant 1 : index
    %c0_118 = arith.constant 0 : index
    %c0_119 = arith.constant 0 : index
    %175 = vector.load %arg13[%c1_117, %c0_118, %c0_119] : memref<4x384x128xf32, #tpu.memory_space<vmem>>, vector<1x384x128xf32>
    %176 = vector.shape_cast %175 : vector<1x384x128xf32> to vector<384x128xf32>
    %cst_120 = arith.constant dense<0.000000e+00> : vector<32x128xf32>
    %177 = tpu.matmul %174, %176, %cst_120 {dimension_numbers = #tpu.dot_dimension_numbers<[1], [0], [0], [1], [0, 0, 1, 1], [], []>} : vector<32x384xf32>, vector<384x128xf32>, vector<32x128xf32> -> vector<32x128xf32>
    %c1_121 = arith.constant 1 : index
    %c0_122 = arith.constant 0 : index
    %c0_123 = arith.constant 0 : index
    %178 = vector.load %arg14[%c1_121, %c0_122, %c0_123] : memref<4x1x128xf32, #tpu.memory_space<vmem>>, vector<1x1x128xf32>
    %179 = vector.shape_cast %178 : vector<1x1x128xf32> to vector<1x128xf32>
    %180 = vector.broadcast %179 : vector<1x128xf32> to vector<32x128xf32>
    %181 = arith.addf %177, %180 : vector<32x128xf32>
    %cst_124 = arith.constant 0.000000e+00 : f32
    %182 = vector.broadcast %cst_124 : f32 to vector<32x128xf32>
    %183 = arith.maximumf %181, %182 : vector<32x128xf32>
    %c1_125 = arith.constant 1 : index
    %c0_126 = arith.constant 0 : index
    %c0_127 = arith.constant 0 : index
    %184 = vector.load %arg15[%c1_125, %c0_126, %c0_127] : memref<4x128x128xf32, #tpu.memory_space<vmem>>, vector<1x128x128xf32>
    %185 = vector.shape_cast %184 : vector<1x128x128xf32> to vector<128x128xf32>
    %cst_128 = arith.constant dense<0.000000e+00> : vector<32x128xf32>
    %186 = tpu.matmul %183, %185, %cst_128 {dimension_numbers = #tpu.dot_dimension_numbers<[1], [0], [0], [1], [0, 0, 1, 1], [], []>} : vector<32x128xf32>, vector<128x128xf32>, vector<32x128xf32> -> vector<32x128xf32>
    %c1_129 = arith.constant 1 : index
    %c0_130 = arith.constant 0 : index
    %c0_131 = arith.constant 0 : index
    %187 = vector.load %arg16[%c1_129, %c0_130, %c0_131] : memref<4x1x128xf32, #tpu.memory_space<vmem>>, vector<1x1x128xf32>
    %188 = vector.shape_cast %187 : vector<1x1x128xf32> to vector<1x128xf32>
    %189 = vector.broadcast %188 : vector<1x128xf32> to vector<32x128xf32>
    %190 = arith.addf %186, %189 : vector<32x128xf32>
    %191 = arith.addf %190, %101 : vector<32x128xf32>
    %cst_132 = arith.constant 0.000000e+00 : f32
    %192 = vector.broadcast %cst_132 : f32 to vector<32x128xf32>
    %193 = arith.maximumf %191, %192 : vector<32x128xf32>
    %c2 = arith.constant 2 : index
    %c0_133 = arith.constant 0 : index
    %c0_134 = arith.constant 0 : index
    %194 = vector.load %arg5[%c2, %c0_133, %c0_134] : memref<4x128x128xf32, #tpu.memory_space<vmem>>, vector<1x128x128xf32>
    %195 = vector.shape_cast %194 : vector<1x128x128xf32> to vector<128x128xf32>
    %cst_135 = arith.constant dense<0.000000e+00> : vector<16x128xf32>
    %196 = tpu.matmul %171, %195, %cst_135 {dimension_numbers = #tpu.dot_dimension_numbers<[1], [0], [0], [1], [0, 0, 1, 1], [], []>} : vector<16x128xf32>, vector<128x128xf32>, vector<16x128xf32> -> vector<16x128xf32>
    %c2_136 = arith.constant 2 : index
    %c0_137 = arith.constant 0 : index
    %c0_138 = arith.constant 0 : index
    %197 = vector.load %arg6[%c2_136, %c0_137, %c0_138] : memref<4x128x4xf32, #tpu.memory_space<vmem>>, vector<1x128x4xf32>
    %198 = vector.shape_cast %197 : vector<1x128x4xf32> to vector<128x4xf32>
    %cst_139 = arith.constant dense<0.000000e+00> : vector<16x4xf32>
    %199 = tpu.matmul %171, %198, %cst_139 {dimension_numbers = #tpu.dot_dimension_numbers<[1], [0], [0], [1], [0, 0, 1, 1], [], []>} : vector<16x128xf32>, vector<128x4xf32>, vector<16x4xf32> -> vector<16x4xf32>
    %c2_140 = arith.constant 2 : index
    %c0_141 = arith.constant 0 : index
    %c0_142 = arith.constant 0 : index
    %200 = vector.load %arg7[%c2_140, %c0_141, %c0_142] : memref<4x128x4xf32, #tpu.memory_space<vmem>>, vector<1x128x4xf32>
    %201 = vector.shape_cast %200 : vector<1x128x4xf32> to vector<128x4xf32>
    %cst_143 = arith.constant dense<0.000000e+00> : vector<16x4xf32>
    %202 = tpu.matmul %171, %201, %cst_143 {dimension_numbers = #tpu.dot_dimension_numbers<[1], [0], [0], [1], [0, 0, 1, 1], [], []>} : vector<16x128xf32>, vector<128x4xf32>, vector<16x4xf32> -> vector<16x4xf32>
    %c2_144 = arith.constant 2 : index
    %c0_145 = arith.constant 0 : index
    %c0_146 = arith.constant 0 : index
    %203 = vector.load %arg8[%c2_144, %c0_145, %c0_146] : memref<4x128x4xf32, #tpu.memory_space<vmem>>, vector<1x128x4xf32>
    %204 = vector.shape_cast %203 : vector<1x128x4xf32> to vector<128x4xf32>
    %cst_147 = arith.constant dense<0.000000e+00> : vector<32x4xf32>
    %205 = tpu.matmul %193, %204, %cst_147 {dimension_numbers = #tpu.dot_dimension_numbers<[1], [0], [0], [1], [0, 0, 1, 1], [], []>} : vector<32x128xf32>, vector<128x4xf32>, vector<32x4xf32> -> vector<32x4xf32>
    %cst_148 = arith.constant dense<0.000000e+00> : vector<32x4xf32>
    %206 = tpu.matmul %2, %199, %cst_148 {dimension_numbers = #tpu.dot_dimension_numbers<[1], [0], [0], [1], [0, 0, 1, 1], [], []>} : vector<32x16xf32>, vector<16x4xf32>, vector<32x4xf32> -> vector<32x4xf32>
    %cst_149 = arith.constant dense<0.000000e+00> : vector<32x4xf32>
    %207 = tpu.matmul %3, %202, %cst_149 {dimension_numbers = #tpu.dot_dimension_numbers<[1], [0], [0], [1], [0, 0, 1, 1], [], []>} : vector<32x16xf32>, vector<16x4xf32>, vector<32x4xf32> -> vector<32x4xf32>
    %208 = arith.addf %206, %207 : vector<32x4xf32>
    %209 = arith.addf %208, %205 : vector<32x4xf32>
    %cst_150 = arith.constant 0.000000e+00 : f32
    %210 = vector.broadcast %cst_150 : f32 to vector<32x4xf32>
    %211 = arith.cmpf ogt, %209, %210 : vector<32x4xf32>
    %cst_151 = arith.constant 2.000000e-01 : f32
    %212 = vector.broadcast %cst_151 : f32 to vector<32x4xf32>
    %213 = arith.mulf %212, %209 : vector<32x4xf32>
    %214 = arith.select %211, %209, %213 : vector<32x4xi1>, vector<32x4xf32>
    %cst_152 = arith.constant dense<0xFF800000> : vector<4xf32>
    %215 = vector.multi_reduction <maximumf>, %214, %cst_152 [0] : vector<32x4xf32> to vector<4xf32>
    %216 = vector.shape_cast %215 : vector<4xf32> to vector<1x4xf32>
    %217 = vector.broadcast %216 : vector<1x4xf32> to vector<32x4xf32>
    %218 = arith.subf %214, %217 : vector<32x4xf32>
    %219 = math.exp %218 : vector<32x4xf32>
    %cst_153 = arith.constant dense<0.000000e+00> : vector<16x4xf32>
    %220 = tpu.matmul %4, %219, %cst_153 {dimension_numbers = #tpu.dot_dimension_numbers<[1], [0], [0], [1], [0, 0, 1, 1], [], []>} : vector<16x32xf32>, vector<32x4xf32>, vector<16x4xf32> -> vector<16x4xf32>
    %cst_154 = arith.constant dense<0.000000e+00> : vector<32x4xf32>
    %221 = tpu.matmul %3, %220, %cst_154 {dimension_numbers = #tpu.dot_dimension_numbers<[1], [0], [0], [1], [0, 0, 1, 1], [], []>} : vector<32x16xf32>, vector<16x4xf32>, vector<32x4xf32> -> vector<32x4xf32>
    %cst_155 = arith.constant 1.000000e-16 : f32
    %222 = vector.broadcast %cst_155 : f32 to vector<32x4xf32>
    %223 = arith.addf %221, %222 : vector<32x4xf32>
    %224 = arith.divf %219, %223 : vector<32x4xf32>
    %c2_156 = arith.constant 2 : index
    %c0_157 = arith.constant 0 : index
    %c0_158 = arith.constant 0 : index
    %225 = vector.load %arg9[%c2_156, %c0_157, %c0_158] : memref<4x4x128xf32, #tpu.memory_space<vmem>>, vector<1x4x128xf32>
    %226 = vector.shape_cast %225 : vector<1x4x128xf32> to vector<4x128xf32>
    %cst_159 = arith.constant dense<0.000000e+00> : vector<32x128xf32>
    %227 = tpu.matmul %224, %226, %cst_159 {dimension_numbers = #tpu.dot_dimension_numbers<[1], [0], [0], [1], [0, 0, 1, 1], [], []>} : vector<32x4xf32>, vector<4x128xf32>, vector<32x128xf32> -> vector<32x128xf32>
    %cst_160 = arith.constant dense<0.000000e+00> : vector<32x128xf32>
    %228 = tpu.matmul %2, %196, %cst_160 {dimension_numbers = #tpu.dot_dimension_numbers<[1], [0], [0], [1], [0, 0, 1, 1], [], []>} : vector<32x16xf32>, vector<16x128xf32>, vector<32x128xf32> -> vector<32x128xf32>
    %229 = arith.mulf %227, %228 : vector<32x128xf32>
    %cst_161 = arith.constant dense<0.000000e+00> : vector<16x128xf32>
    %230 = tpu.matmul %4, %229, %cst_161 {dimension_numbers = #tpu.dot_dimension_numbers<[1], [0], [0], [1], [0, 0, 1, 1], [], []>} : vector<16x32xf32>, vector<32x128xf32>, vector<16x128xf32> -> vector<16x128xf32>
    %c2_162 = arith.constant 2 : index
    %c0_163 = arith.constant 0 : index
    %c0_164 = arith.constant 0 : index
    %231 = vector.load %arg10[%c2_162, %c0_163, %c0_164] : memref<4x1x128xf32, #tpu.memory_space<vmem>>, vector<1x1x128xf32>
    %232 = vector.shape_cast %231 : vector<1x1x128xf32> to vector<1x128xf32>
    %233 = vector.broadcast %232 : vector<1x128xf32> to vector<16x128xf32>
    %234 = arith.addf %230, %233 : vector<16x128xf32>
    %cst_165 = arith.constant dense<0.000000e+00> : vector<16xf32>
    %235 = vector.multi_reduction <add>, %234, %cst_165 [1] : vector<16x128xf32> to vector<16xf32>
    %236 = vector.shape_cast %235 : vector<16xf32> to vector<16x1xf32>
    %cst_166 = arith.constant 1.562500e-02 : f32
    %237 = vector.broadcast %cst_166 : f32 to vector<16x1xf32>
    %238 = arith.mulf %236, %237 : vector<16x1xf32>
    %239 = vector.broadcast %238 : vector<16x1xf32> to vector<16x128xf32>
    %240 = arith.subf %234, %239 : vector<16x128xf32>
    %241 = vector.broadcast %9 : vector<1x128xf32> to vector<16x128xf32>
    %242 = arith.mulf %240, %241 : vector<16x128xf32>
    %243 = arith.mulf %242, %242 : vector<16x128xf32>
    %cst_167 = arith.constant dense<0.000000e+00> : vector<16xf32>
    %244 = vector.multi_reduction <add>, %243, %cst_167 [1] : vector<16x128xf32> to vector<16xf32>
    %245 = vector.shape_cast %244 : vector<16xf32> to vector<16x1xf32>
    %cst_168 = arith.constant 1.562500e-02 : f32
    %246 = vector.broadcast %cst_168 : f32 to vector<16x1xf32>
    %247 = arith.mulf %245, %246 : vector<16x1xf32>
    %cst_169 = arith.constant 9.99999974E-6 : f32
    %248 = vector.broadcast %cst_169 : f32 to vector<16x1xf32>
    %249 = arith.addf %247, %248 : vector<16x1xf32>
    %250 = math.rsqrt %249 : vector<16x1xf32>
    %251 = vector.broadcast %250 : vector<16x1xf32> to vector<16x128xf32>
    %252 = arith.mulf %242, %251 : vector<16x128xf32>
    %c2_170 = arith.constant 2 : index
    %c0_171 = arith.constant 0 : index
    %c0_172 = arith.constant 0 : index
    %253 = vector.load %arg11[%c2_170, %c0_171, %c0_172] : memref<4x1x128xf32, #tpu.memory_space<vmem>>, vector<1x1x128xf32>
    %254 = vector.shape_cast %253 : vector<1x1x128xf32> to vector<1x128xf32>
    %255 = vector.broadcast %254 : vector<1x128xf32> to vector<16x128xf32>
    %256 = arith.mulf %252, %255 : vector<16x128xf32>
    %c2_173 = arith.constant 2 : index
    %c0_174 = arith.constant 0 : index
    %c0_175 = arith.constant 0 : index
    %257 = vector.load %arg12[%c2_173, %c0_174, %c0_175] : memref<4x1x128xf32, #tpu.memory_space<vmem>>, vector<1x1x128xf32>
    %258 = vector.shape_cast %257 : vector<1x1x128xf32> to vector<1x128xf32>
    %259 = vector.broadcast %258 : vector<1x128xf32> to vector<16x128xf32>
    %260 = arith.addf %256, %259 : vector<16x128xf32>
    %cst_176 = arith.constant 0.000000e+00 : f32
    %261 = vector.broadcast %cst_176 : f32 to vector<16x128xf32>
    %262 = arith.maximumf %260, %261 : vector<16x128xf32>
    %263 = arith.addf %262, %171 : vector<16x128xf32>
    %cst_177 = arith.constant dense<0.000000e+00> : vector<32x128xf32>
    %264 = tpu.matmul %2, %263, %cst_177 {dimension_numbers = #tpu.dot_dimension_numbers<[1], [0], [0], [1], [0, 0, 1, 1], [], []>} : vector<32x16xf32>, vector<16x128xf32>, vector<32x128xf32> -> vector<32x128xf32>
    %cst_178 = arith.constant dense<0.000000e+00> : vector<32x128xf32>
    %265 = tpu.matmul %3, %263, %cst_178 {dimension_numbers = #tpu.dot_dimension_numbers<[1], [0], [0], [1], [0, 0, 1, 1], [], []>} : vector<32x16xf32>, vector<16x128xf32>, vector<32x128xf32> -> vector<32x128xf32>
    %266 = tpu.concatenate %264, %265, %193 in 1 : vector<32x128xf32>, vector<32x128xf32>, vector<32x128xf32> -> vector<32x384xf32>
    %c2_179 = arith.constant 2 : index
    %c0_180 = arith.constant 0 : index
    %c0_181 = arith.constant 0 : index
    %267 = vector.load %arg13[%c2_179, %c0_180, %c0_181] : memref<4x384x128xf32, #tpu.memory_space<vmem>>, vector<1x384x128xf32>
    %268 = vector.shape_cast %267 : vector<1x384x128xf32> to vector<384x128xf32>
    %cst_182 = arith.constant dense<0.000000e+00> : vector<32x128xf32>
    %269 = tpu.matmul %266, %268, %cst_182 {dimension_numbers = #tpu.dot_dimension_numbers<[1], [0], [0], [1], [0, 0, 1, 1], [], []>} : vector<32x384xf32>, vector<384x128xf32>, vector<32x128xf32> -> vector<32x128xf32>
    %c2_183 = arith.constant 2 : index
    %c0_184 = arith.constant 0 : index
    %c0_185 = arith.constant 0 : index
    %270 = vector.load %arg14[%c2_183, %c0_184, %c0_185] : memref<4x1x128xf32, #tpu.memory_space<vmem>>, vector<1x1x128xf32>
    %271 = vector.shape_cast %270 : vector<1x1x128xf32> to vector<1x128xf32>
    %272 = vector.broadcast %271 : vector<1x128xf32> to vector<32x128xf32>
    %273 = arith.addf %269, %272 : vector<32x128xf32>
    %cst_186 = arith.constant 0.000000e+00 : f32
    %274 = vector.broadcast %cst_186 : f32 to vector<32x128xf32>
    %275 = arith.maximumf %273, %274 : vector<32x128xf32>
    %c2_187 = arith.constant 2 : index
    %c0_188 = arith.constant 0 : index
    %c0_189 = arith.constant 0 : index
    %276 = vector.load %arg15[%c2_187, %c0_188, %c0_189] : memref<4x128x128xf32, #tpu.memory_space<vmem>>, vector<1x128x128xf32>
    %277 = vector.shape_cast %276 : vector<1x128x128xf32> to vector<128x128xf32>
    %cst_190 = arith.constant dense<0.000000e+00> : vector<32x128xf32>
    %278 = tpu.matmul %275, %277, %cst_190 {dimension_numbers = #tpu.dot_dimension_numbers<[1], [0], [0], [1], [0, 0, 1, 1], [], []>} : vector<32x128xf32>, vector<128x128xf32>, vector<32x128xf32> -> vector<32x128xf32>
    %c2_191 = arith.constant 2 : index
    %c0_192 = arith.constant 0 : index
    %c0_193 = arith.constant 0 : index
    %279 = vector.load %arg16[%c2_191, %c0_192, %c0_193] : memref<4x1x128xf32, #tpu.memory_space<vmem>>, vector<1x1x128xf32>
    %280 = vector.shape_cast %279 : vector<1x1x128xf32> to vector<1x128xf32>
    %281 = vector.broadcast %280 : vector<1x128xf32> to vector<32x128xf32>
    %282 = arith.addf %278, %281 : vector<32x128xf32>
    %283 = arith.addf %282, %193 : vector<32x128xf32>
    %cst_194 = arith.constant 0.000000e+00 : f32
    %284 = vector.broadcast %cst_194 : f32 to vector<32x128xf32>
    %285 = arith.maximumf %283, %284 : vector<32x128xf32>
    %c3 = arith.constant 3 : index
    %c0_195 = arith.constant 0 : index
    %c0_196 = arith.constant 0 : index
    %286 = vector.load %arg5[%c3, %c0_195, %c0_196] : memref<4x128x128xf32, #tpu.memory_space<vmem>>, vector<1x128x128xf32>
    %287 = vector.shape_cast %286 : vector<1x128x128xf32> to vector<128x128xf32>
    %cst_197 = arith.constant dense<0.000000e+00> : vector<16x128xf32>
    %288 = tpu.matmul %263, %287, %cst_197 {dimension_numbers = #tpu.dot_dimension_numbers<[1], [0], [0], [1], [0, 0, 1, 1], [], []>} : vector<16x128xf32>, vector<128x128xf32>, vector<16x128xf32> -> vector<16x128xf32>
    %c3_198 = arith.constant 3 : index
    %c0_199 = arith.constant 0 : index
    %c0_200 = arith.constant 0 : index
    %289 = vector.load %arg6[%c3_198, %c0_199, %c0_200] : memref<4x128x4xf32, #tpu.memory_space<vmem>>, vector<1x128x4xf32>
    %290 = vector.shape_cast %289 : vector<1x128x4xf32> to vector<128x4xf32>
    %cst_201 = arith.constant dense<0.000000e+00> : vector<16x4xf32>
    %291 = tpu.matmul %263, %290, %cst_201 {dimension_numbers = #tpu.dot_dimension_numbers<[1], [0], [0], [1], [0, 0, 1, 1], [], []>} : vector<16x128xf32>, vector<128x4xf32>, vector<16x4xf32> -> vector<16x4xf32>
    %c3_202 = arith.constant 3 : index
    %c0_203 = arith.constant 0 : index
    %c0_204 = arith.constant 0 : index
    %292 = vector.load %arg7[%c3_202, %c0_203, %c0_204] : memref<4x128x4xf32, #tpu.memory_space<vmem>>, vector<1x128x4xf32>
    %293 = vector.shape_cast %292 : vector<1x128x4xf32> to vector<128x4xf32>
    %cst_205 = arith.constant dense<0.000000e+00> : vector<16x4xf32>
    %294 = tpu.matmul %263, %293, %cst_205 {dimension_numbers = #tpu.dot_dimension_numbers<[1], [0], [0], [1], [0, 0, 1, 1], [], []>} : vector<16x128xf32>, vector<128x4xf32>, vector<16x4xf32> -> vector<16x4xf32>
    %c3_206 = arith.constant 3 : index
    %c0_207 = arith.constant 0 : index
    %c0_208 = arith.constant 0 : index
    %295 = vector.load %arg8[%c3_206, %c0_207, %c0_208] : memref<4x128x4xf32, #tpu.memory_space<vmem>>, vector<1x128x4xf32>
    %296 = vector.shape_cast %295 : vector<1x128x4xf32> to vector<128x4xf32>
    %cst_209 = arith.constant dense<0.000000e+00> : vector<32x4xf32>
    %297 = tpu.matmul %285, %296, %cst_209 {dimension_numbers = #tpu.dot_dimension_numbers<[1], [0], [0], [1], [0, 0, 1, 1], [], []>} : vector<32x128xf32>, vector<128x4xf32>, vector<32x4xf32> -> vector<32x4xf32>
    %cst_210 = arith.constant dense<0.000000e+00> : vector<32x4xf32>
    %298 = tpu.matmul %2, %291, %cst_210 {dimension_numbers = #tpu.dot_dimension_numbers<[1], [0], [0], [1], [0, 0, 1, 1], [], []>} : vector<32x16xf32>, vector<16x4xf32>, vector<32x4xf32> -> vector<32x4xf32>
    %cst_211 = arith.constant dense<0.000000e+00> : vector<32x4xf32>
    %299 = tpu.matmul %3, %294, %cst_211 {dimension_numbers = #tpu.dot_dimension_numbers<[1], [0], [0], [1], [0, 0, 1, 1], [], []>} : vector<32x16xf32>, vector<16x4xf32>, vector<32x4xf32> -> vector<32x4xf32>
    %300 = arith.addf %298, %299 : vector<32x4xf32>
    %301 = arith.addf %300, %297 : vector<32x4xf32>
    %cst_212 = arith.constant 0.000000e+00 : f32
    %302 = vector.broadcast %cst_212 : f32 to vector<32x4xf32>
    %303 = arith.cmpf ogt, %301, %302 : vector<32x4xf32>
    %cst_213 = arith.constant 2.000000e-01 : f32
    %304 = vector.broadcast %cst_213 : f32 to vector<32x4xf32>
    %305 = arith.mulf %304, %301 : vector<32x4xf32>
    %306 = arith.select %303, %301, %305 : vector<32x4xi1>, vector<32x4xf32>
    %cst_214 = arith.constant dense<0xFF800000> : vector<4xf32>
    %307 = vector.multi_reduction <maximumf>, %306, %cst_214 [0] : vector<32x4xf32> to vector<4xf32>
    %308 = vector.shape_cast %307 : vector<4xf32> to vector<1x4xf32>
    %309 = vector.broadcast %308 : vector<1x4xf32> to vector<32x4xf32>
    %310 = arith.subf %306, %309 : vector<32x4xf32>
    %311 = math.exp %310 : vector<32x4xf32>
    %cst_215 = arith.constant dense<0.000000e+00> : vector<16x4xf32>
    %312 = tpu.matmul %4, %311, %cst_215 {dimension_numbers = #tpu.dot_dimension_numbers<[1], [0], [0], [1], [0, 0, 1, 1], [], []>} : vector<16x32xf32>, vector<32x4xf32>, vector<16x4xf32> -> vector<16x4xf32>
    %cst_216 = arith.constant dense<0.000000e+00> : vector<32x4xf32>
    %313 = tpu.matmul %3, %312, %cst_216 {dimension_numbers = #tpu.dot_dimension_numbers<[1], [0], [0], [1], [0, 0, 1, 1], [], []>} : vector<32x16xf32>, vector<16x4xf32>, vector<32x4xf32> -> vector<32x4xf32>
    %cst_217 = arith.constant 1.000000e-16 : f32
    %314 = vector.broadcast %cst_217 : f32 to vector<32x4xf32>
    %315 = arith.addf %313, %314 : vector<32x4xf32>
    %316 = arith.divf %311, %315 : vector<32x4xf32>
    %c3_218 = arith.constant 3 : index
    %c0_219 = arith.constant 0 : index
    %c0_220 = arith.constant 0 : index
    %317 = vector.load %arg9[%c3_218, %c0_219, %c0_220] : memref<4x4x128xf32, #tpu.memory_space<vmem>>, vector<1x4x128xf32>
    %318 = vector.shape_cast %317 : vector<1x4x128xf32> to vector<4x128xf32>
    %cst_221 = arith.constant dense<0.000000e+00> : vector<32x128xf32>
    %319 = tpu.matmul %316, %318, %cst_221 {dimension_numbers = #tpu.dot_dimension_numbers<[1], [0], [0], [1], [0, 0, 1, 1], [], []>} : vector<32x4xf32>, vector<4x128xf32>, vector<32x128xf32> -> vector<32x128xf32>
    %cst_222 = arith.constant dense<0.000000e+00> : vector<32x128xf32>
    %320 = tpu.matmul %2, %288, %cst_222 {dimension_numbers = #tpu.dot_dimension_numbers<[1], [0], [0], [1], [0, 0, 1, 1], [], []>} : vector<32x16xf32>, vector<16x128xf32>, vector<32x128xf32> -> vector<32x128xf32>
    %321 = arith.mulf %319, %320 : vector<32x128xf32>
    %cst_223 = arith.constant dense<0.000000e+00> : vector<16x128xf32>
    %322 = tpu.matmul %4, %321, %cst_223 {dimension_numbers = #tpu.dot_dimension_numbers<[1], [0], [0], [1], [0, 0, 1, 1], [], []>} : vector<16x32xf32>, vector<32x128xf32>, vector<16x128xf32> -> vector<16x128xf32>
    %c3_224 = arith.constant 3 : index
    %c0_225 = arith.constant 0 : index
    %c0_226 = arith.constant 0 : index
    %323 = vector.load %arg10[%c3_224, %c0_225, %c0_226] : memref<4x1x128xf32, #tpu.memory_space<vmem>>, vector<1x1x128xf32>
    %324 = vector.shape_cast %323 : vector<1x1x128xf32> to vector<1x128xf32>
    %325 = vector.broadcast %324 : vector<1x128xf32> to vector<16x128xf32>
    %326 = arith.addf %322, %325 : vector<16x128xf32>
    %cst_227 = arith.constant dense<0.000000e+00> : vector<16xf32>
    %327 = vector.multi_reduction <add>, %326, %cst_227 [1] : vector<16x128xf32> to vector<16xf32>
    %328 = vector.shape_cast %327 : vector<16xf32> to vector<16x1xf32>
    %cst_228 = arith.constant 1.562500e-02 : f32
    %329 = vector.broadcast %cst_228 : f32 to vector<16x1xf32>
    %330 = arith.mulf %328, %329 : vector<16x1xf32>
    %331 = vector.broadcast %330 : vector<16x1xf32> to vector<16x128xf32>
    %332 = arith.subf %326, %331 : vector<16x128xf32>
    %333 = vector.broadcast %9 : vector<1x128xf32> to vector<16x128xf32>
    %334 = arith.mulf %332, %333 : vector<16x128xf32>
    %335 = arith.mulf %334, %334 : vector<16x128xf32>
    %cst_229 = arith.constant dense<0.000000e+00> : vector<16xf32>
    %336 = vector.multi_reduction <add>, %335, %cst_229 [1] : vector<16x128xf32> to vector<16xf32>
    %337 = vector.shape_cast %336 : vector<16xf32> to vector<16x1xf32>
    %cst_230 = arith.constant 1.562500e-02 : f32
    %338 = vector.broadcast %cst_230 : f32 to vector<16x1xf32>
    %339 = arith.mulf %337, %338 : vector<16x1xf32>
    %cst_231 = arith.constant 9.99999974E-6 : f32
    %340 = vector.broadcast %cst_231 : f32 to vector<16x1xf32>
    %341 = arith.addf %339, %340 : vector<16x1xf32>
    %342 = math.rsqrt %341 : vector<16x1xf32>
    %343 = vector.broadcast %342 : vector<16x1xf32> to vector<16x128xf32>
    %344 = arith.mulf %334, %343 : vector<16x128xf32>
    %c3_232 = arith.constant 3 : index
    %c0_233 = arith.constant 0 : index
    %c0_234 = arith.constant 0 : index
    %345 = vector.load %arg11[%c3_232, %c0_233, %c0_234] : memref<4x1x128xf32, #tpu.memory_space<vmem>>, vector<1x1x128xf32>
    %346 = vector.shape_cast %345 : vector<1x1x128xf32> to vector<1x128xf32>
    %347 = vector.broadcast %346 : vector<1x128xf32> to vector<16x128xf32>
    %348 = arith.mulf %344, %347 : vector<16x128xf32>
    %c3_235 = arith.constant 3 : index
    %c0_236 = arith.constant 0 : index
    %c0_237 = arith.constant 0 : index
    %349 = vector.load %arg12[%c3_235, %c0_236, %c0_237] : memref<4x1x128xf32, #tpu.memory_space<vmem>>, vector<1x1x128xf32>
    %350 = vector.shape_cast %349 : vector<1x1x128xf32> to vector<1x128xf32>
    %351 = vector.broadcast %350 : vector<1x128xf32> to vector<16x128xf32>
    %352 = arith.addf %348, %351 : vector<16x128xf32>
    %cst_238 = arith.constant 0.000000e+00 : f32
    %353 = vector.broadcast %cst_238 : f32 to vector<16x128xf32>
    %354 = arith.maximumf %352, %353 : vector<16x128xf32>
    %355 = arith.addf %354, %263 : vector<16x128xf32>
    %cst_239 = arith.constant dense<0.000000e+00> : vector<32x128xf32>
    %356 = tpu.matmul %2, %355, %cst_239 {dimension_numbers = #tpu.dot_dimension_numbers<[1], [0], [0], [1], [0, 0, 1, 1], [], []>} : vector<32x16xf32>, vector<16x128xf32>, vector<32x128xf32> -> vector<32x128xf32>
    %cst_240 = arith.constant dense<0.000000e+00> : vector<32x128xf32>
    %357 = tpu.matmul %3, %355, %cst_240 {dimension_numbers = #tpu.dot_dimension_numbers<[1], [0], [0], [1], [0, 0, 1, 1], [], []>} : vector<32x16xf32>, vector<16x128xf32>, vector<32x128xf32> -> vector<32x128xf32>
    %358 = tpu.concatenate %356, %357, %285 in 1 : vector<32x128xf32>, vector<32x128xf32>, vector<32x128xf32> -> vector<32x384xf32>
    %c3_241 = arith.constant 3 : index
    %c0_242 = arith.constant 0 : index
    %c0_243 = arith.constant 0 : index
    %359 = vector.load %arg13[%c3_241, %c0_242, %c0_243] : memref<4x384x128xf32, #tpu.memory_space<vmem>>, vector<1x384x128xf32>
    %360 = vector.shape_cast %359 : vector<1x384x128xf32> to vector<384x128xf32>
    %cst_244 = arith.constant dense<0.000000e+00> : vector<32x128xf32>
    %361 = tpu.matmul %358, %360, %cst_244 {dimension_numbers = #tpu.dot_dimension_numbers<[1], [0], [0], [1], [0, 0, 1, 1], [], []>} : vector<32x384xf32>, vector<384x128xf32>, vector<32x128xf32> -> vector<32x128xf32>
    %c3_245 = arith.constant 3 : index
    %c0_246 = arith.constant 0 : index
    %c0_247 = arith.constant 0 : index
    %362 = vector.load %arg14[%c3_245, %c0_246, %c0_247] : memref<4x1x128xf32, #tpu.memory_space<vmem>>, vector<1x1x128xf32>
    %363 = vector.shape_cast %362 : vector<1x1x128xf32> to vector<1x128xf32>
    %364 = vector.broadcast %363 : vector<1x128xf32> to vector<32x128xf32>
    %365 = arith.addf %361, %364 : vector<32x128xf32>
    %cst_248 = arith.constant 0.000000e+00 : f32
    %366 = vector.broadcast %cst_248 : f32 to vector<32x128xf32>
    %367 = arith.maximumf %365, %366 : vector<32x128xf32>
    %c3_249 = arith.constant 3 : index
    %c0_250 = arith.constant 0 : index
    %c0_251 = arith.constant 0 : index
    %368 = vector.load %arg15[%c3_249, %c0_250, %c0_251] : memref<4x128x128xf32, #tpu.memory_space<vmem>>, vector<1x128x128xf32>
    %369 = vector.shape_cast %368 : vector<1x128x128xf32> to vector<128x128xf32>
    %cst_252 = arith.constant dense<0.000000e+00> : vector<32x128xf32>
    %370 = tpu.matmul %367, %369, %cst_252 {dimension_numbers = #tpu.dot_dimension_numbers<[1], [0], [0], [1], [0, 0, 1, 1], [], []>} : vector<32x128xf32>, vector<128x128xf32>, vector<32x128xf32> -> vector<32x128xf32>
    %c3_253 = arith.constant 3 : index
    %c0_254 = arith.constant 0 : index
    %c0_255 = arith.constant 0 : index
    %371 = vector.load %arg16[%c3_253, %c0_254, %c0_255] : memref<4x1x128xf32, #tpu.memory_space<vmem>>, vector<1x1x128xf32>
    %372 = vector.shape_cast %371 : vector<1x1x128xf32> to vector<1x128xf32>
    %373 = vector.broadcast %372 : vector<1x128xf32> to vector<32x128xf32>
    %374 = arith.addf %370, %373 : vector<32x128xf32>
    %375 = arith.addf %374, %285 : vector<32x128xf32>
    %cst_256 = arith.constant 0.000000e+00 : f32
    %376 = vector.broadcast %cst_256 : f32 to vector<32x128xf32>
    %377 = arith.maximumf %375, %376 : vector<32x128xf32>
    %c0_257 = arith.constant 0 : index
    %c0_258 = arith.constant 0 : index
    %378 = vector.load %arg17[%c0_257, %c0_258] : memref<16x128xf32, #tpu.memory_space<vmem>>, vector<16x128xf32>
    tpu.vector_store %arg17[%c0_257, %c0_258], %355 {strides = array<i32>} : memref<16x128xf32, #tpu.memory_space<vmem>>, vector<16x128xf32>,
    %c0_259 = arith.constant 0 : index
    %c0_260 = arith.constant 0 : index
    %379 = vector.load %arg18[%c0_259, %c0_260] : memref<32x128xf32, #tpu.memory_space<vmem>>, vector<32x128xf32>
    tpu.vector_store %arg18[%c0_259, %c0_260], %377 {strides = array<i32>} : memref<32x128xf32, #tpu.memory_space<vmem>>, vector<32x128xf32>,
    return
  }
}

</mosaic_0001>

<bundles_post_ra>
// kernel: gat_base_forward.1
= control target key start
LH: loop header
LB: loop body
LE: loop exit
PB: predicated region body
PF: predicated region fallthrough
CT: control target
= control target key end

     0   :  { %s10272_s0 = inlined_call_operand.vmem [shape: f32[16,128], index: 0, kind: input, shape index: {}]   ;;  %s10273_s1 = inlined_call_operand.vmem [shape: f32[32,128], index: 1, kind: input, shape index: {}]   ;;  %s10274_s2 = inlined_call_operand.vmem [shape: f32[32,16], index: 2, kind: input, shape index: {}]   ;;  %s10275_s3 = inlined_call_operand.vmem [shape: f32[32,16], index: 3, kind: input, shape index: {}]   ;;  %s10276_s4 = inlined_call_operand.vmem [shape: f32[16,32], index: 4, kind: input, shape index: {}]   ;;  %s10277_s5 = inlined_call_operand.hbm [shape: f32[4,128,128], index: 5, kind: input, shape index: {}]   ;;  %s10278_s6 = inlined_call_operand.hbm [shape: f32[4,128,4], index: 6, kind: input, shape index: {}]   ;;  %s10279_s7 = inlined_call_operand.hbm [shape: f32[4,128,4], index: 7, kind: input, shape index: {}]   ;;  %s10280_s8 = inlined_call_operand.hbm [shape: f32[4,128,4], index: 8, kind: input, shape index: {}]   ;;  %s10281_s9 = inlined_call_operand.vmem [shape: f32[4,4,128], index: 9, kind: input, shape index: {}]   ;;  %s10282_s10 = inlined_call_operand.vmem [shape: f32[4,1,128], index: 10, kind: input, shape index: {}, may-alias: {10,12,14,16}]   ;;  %s10283_s11 = inlined_call_operand.vmem [shape: f32[4,1,128], index: 11, kind: input, shape index: {}]   ;;  %s10284_s12 = inlined_call_operand.vmem [shape: f32[4,1,128], index: 12, kind: input, shape index: {}, may-alias: {10,12,14,16}]   ;;  %s10285_s13 = inlined_call_operand.hbm [shape: f32[4,384,128], index: 13, kind: input, shape index: {}]   ;;  %s10286_s14 = inlined_call_operand.vmem [shape: f32[4,1,128], index: 14, kind: input, shape index: {}, may-alias: {10,12,14,16}]   ;;  %s10287_s15 = inlined_call_operand.vmem [shape: f32[4,128,128], index: 15, kind: input, shape index: {}]   ;;  %s10288_s16 = inlined_call_operand.vmem [shape: f32[4,1,128], index: 16, kind: input, shape index: {}, may-alias: {10,12,14,16}]   ;;  %s10289_s17 = inlined_call_operand.hbm [shape: f32[16,128], index: 17, kind: output, shape index: {0}]   ;;  %s10290_s18 = inlined_call_operand.hbm [shape: f32[32,128], index: 18, kind: output, shape index: {1}]  }
   0x1   :  { %10294 = sst [smem:[#allocation19_spill]] %s10272_s0 }
   0x2   :  { %10295 = sst [smem:[#allocation20_spill]] %s10273_s1 }
   0x3   :  { %10296 = sst [smem:[#allocation21_spill]] %s10274_s2 }
   0x4   :  { %24 = vsyncpa [#allocation3], 0 }
   0x5   :  { %25 = vsyncpa [#allocation6], 0 }
   0x6   :  { %26 = vsyncpa [#allocation9], 0 }
   0x7   :  { %27 = vsyncpa [#allocation4], 0 }
   0x8   :  { %28 = vsyncpa [#allocation13], 0  ;;  %s9177_s27 = smov [#allocation5]   ;;  %s9178_s29 = smov [#allocation8]  }
   0x9   :  { %s56_s28 = sshll.u32 %s9177_s27, 4  ;;  %s80_s30 = sshll.u32 %s9178_s29, 4  ;;  %s57_s28 = int_to_ptr.vmem [resolvable:$true] %s56_s28  ;;  %s81_s30 = int_to_ptr.vmem [resolvable:$true] %s80_s30 }
   0xa   :  { %s9035_s0 = scalar_lea.vmem %s57_s28, 8192  ;;  %p9040_p1 = scmp.lt.s32.totalorder %s57_s28, %s57_s28 }
   0xb   :  { %p9036_p0 = scmp.ne.s32.totalorder %s57_s28, %s9035_s0  ;;  %p9041_p2 = scmp.lt.s32.totalorder %s9035_s0, %s9035_s0 }
   0xd   :  { %p9042_p3 = por %p9041_p2, %p9040_p1 }
   0xf   :  { %p9043_p4 = pnand %p9042_p3, %p9036_p0 }
  0x11   :  { %9046 = shalt.err (!%p9043_p4)
}
  0x12   :  { %s9179_s19 = smov 128   ;;  %s9180_s1 = smov 8  }
  0x13   :  { %62 = dma.hbm_to_vmem [thread:$0]  %s10278_s6, 8192, %s57_s28, [#allocation6], %s9179_s19, %s9179_s19, %s9180_s1  }
  0x14   :  { %s9055_s22 = scalar_lea.vmem %s81_s30, 8192  ;;  %p9060_p6 = scmp.lt.s32.totalorder %s81_s30, %s81_s30 }
  0x15   :  { %p9056_p5 = scmp.ne.s32.totalorder %s81_s30, %s9055_s22  ;;  %p9061_p7 = scmp.lt.s32.totalorder %s9055_s22, %s9055_s22 }
  0x17   :  { %p9062_p8 = por %p9061_p7, %p9060_p6 }
  0x19   :  { %p9063_p9 = pnand %p9062_p8, %p9056_p5 }
  0x1b   :  { %9066 = shalt.err (!%p9063_p9)
}
  0x1c   :  { %86 = dma.hbm_to_vmem [thread:$0]  %s10280_s8, 8192, %s81_s30, [#allocation9], %s9179_s19, %s9179_s19, %s9180_s1  }
  0x1d   :  { %s9181_s24 = smov [#allocation2]   ;;  %s9182_s26 = smov [#allocation7]  }
  0x1e   :  { %s44_s25 = sshll.u32 %s9181_s24, 4  ;;  %s68_s27 = sshll.u32 %s9182_s26, 4  ;;  %s45_s25 = int_to_ptr.vmem [resolvable:$true] %s44_s25  ;;  %s69_s27 = int_to_ptr.vmem [resolvable:$true] %s68_s27 }
  0x1f   :  { %s9075_s6 = scalar_lea.vmem %s45_s25, 8192  ;;  %p9080_p11 = scmp.lt.s32.totalorder %s45_s25, %s45_s25 }
  0x20   :  { %p9076_p10 = scmp.ne.s32.totalorder %s45_s25, %s9075_s6  ;;  %p9081_p12 = scmp.lt.s32.totalorder %s9075_s6, %s9075_s6 }
  0x22   :  { %p9082_p13 = por %p9081_p12, %p9080_p11 }
  0x24   :  { %p9083_p0 = pnand %p9082_p13, %p9076_p10 }
  0x26   :  { %9086 = shalt.err (!%p9083_p0)
}
  0x27   :  { %50 = dma.hbm_to_vmem [thread:$0]  %s10277_s5, 8192, %s45_s25, [#allocation3], %s9179_s19, %s9179_s19, %s9180_s1  }
  0x28   :  { %s9095_s8 = scalar_lea.vmem %s69_s27, 8192  ;;  %p9100_p2 = scmp.lt.s32.totalorder %s69_s27, %s69_s27 }
  0x29   :  { %p9096_p1 = scmp.ne.s32.totalorder %s69_s27, %s9095_s8  ;;  %p9101_p3 = scmp.lt.s32.totalorder %s9095_s8, %s9095_s8 }
  0x2b   :  { %p9102_p4 = por %p9101_p3, %p9100_p2 }
  0x2d   :  { %p9103_p5 = pnand %p9102_p4, %p9096_p1 }
  0x2f   :  { %9106 = shalt.err (!%p9103_p5)
}
  0x30   :  { %74 = dma.hbm_to_vmem [thread:$0]  %s10279_s7, 8192, %s69_s27, [#allocation6], %s9179_s19, %s9179_s19, %s9180_s1  }
  0x31   :  { %s9183_s20 = smov [#allocation10]  }
  0x32   :  { %s100_s21 = sshll.u32 %s9183_s20, 4  ;;  %s101_s21 = int_to_ptr.vmem [resolvable:$true] %s100_s21 }
  0x33   :  { %s9115_s22 = scalar_lea.vmem %s101_s21, 24576  ;;  %p9120_p7 = scmp.lt.s32.totalorder %s101_s21, %s101_s21 }
  0x34   :  { %p9116_p6 = scmp.ne.s32.totalorder %s101_s21, %s9115_s22  ;;  %p9121_p8 = scmp.lt.s32.totalorder %s9115_s22, %s9115_s22 }
  0x36   :  { %p9122_p9 = por %p9121_p8, %p9120_p7 }
  0x38   :  { %p9123_p10 = pnand %p9122_p9, %p9116_p6 }
  0x3a   :  { %9126 = shalt.err (!%p9123_p10)
}
  0x3b   :  { %106 = dma.hbm_to_vmem [thread:$0]  %s10285_s13, 24576, %s101_s21, [#allocation9], %s9179_s19, %s9179_s19, %s9180_s1  }
  0x3c   :  { %9167 = dma.done.wait [#allocation3], 8192  }
  0x3d   :  { %9168 = vsyncadd [#allocation3], 4294959104 }
  0x3e   :  { %9169 = dma.done.wait [#allocation6], 16384  }
  0x3f   :  { %9170 = vsyncadd [#allocation6], 4294950912 }
  0x40   :  { %9171 = dma.done.wait [#allocation9], 32768  }
  0x41   :  { %9172 = vsyncadd [#allocation9], 4294934528  ;;  %v164_v0 = vld [vmem:[#allocation2 + $0x78] sm:$0xff]  ;;  %v163_v1 = vld [vmem:[#allocation2 + $0x70] sm:$0xff]  ;;  %s10297_s24 = sld [smem:[#allocation19_spill]]  ;;  %vm523_vm0 = vcmask 130048  }
  0x42   :  { %7667 = vmatprep.subr.mxu0 %v164_v0  ;;  %v162_v2 = vld [vmem:[#allocation2 + $0x68] sm:$0xff]  ;;  %v161_v3 = vld [vmem:[#allocation2 + $0x60] sm:$0xff]  ;;  %v255_v4 = vld [vmem:[#allocation5 + $0x78] sm:$0xff]  ;;  %s10298_s6 = sld [smem:[#allocation20_spill]]  ;;  %vm760_vm1 = vcmask 261120   ;;  %vm734_vm5 = vcmask 31744  }
  0x43   :  { %7668 = vmatpush3.msra.mxu0 %v164_v0  ;;  %v160_v6 = vld [vmem:[#allocation2 + $0x58] sm:$0xff]  ;;  %7702 = vmatprep.subr.mxu1 %v255_v4  ;;  %v254_v7 = vld [vmem:[#allocation5 + $0x70] sm:$0xff]  ;;  %v253_v9 = vld [vmem:[#allocation5 + $0x68] sm:$0xff]  ;;  %s10299_s5 = sld [smem:[#allocation21_spill]]  ;;  %vm948_vm7 = vcmask 1043456  }
  0x44   :  { %7669 = vmatprep.subr.mxu0 %v163_v1  ;;  %7703 = vmatpush3.msra.mxu1 %v255_v4  ;;  %v159_v8 = vld [vmem:[#allocation2 + $0x50] sm:$0xff]  ;;  %v158_v10 = vld [vmem:[#allocation2 + $0x48] sm:$0xff]  ;;  %v252_v11 = vld [vmem:[#allocation5 + $0x60] sm:$0xff] }
  0x45   :  { %7670 = vmatpush3.msra.mxu0 %v163_v1  ;;  %7704 = vmatprep.subr.mxu1 %v254_v7  ;;  %v157_v12 = vld [vmem:[#allocation2 + $0x40] sm:$0xff]  ;;  %v251_v13 = vld [vmem:[#allocation5 + $0x58] sm:$0xff]  ;;  %v250_v15 = vld [vmem:[#allocation5 + $0x50] sm:$0xff] }
  0x46   :  { %7671 = vmatprep.subr.mxu0 %v162_v2  ;;  %7705 = vmatpush3.msra.mxu1 %v254_v7  ;;  %v156_v14 = vld [vmem:[#allocation2 + $0x38] sm:$0xff]  ;;  %v155_v16 = vld [vmem:[#allocation2 + $0x30] sm:$0xff]  ;;  %v249_v17 = vld [vmem:[#allocation5 + $0x48] sm:$0xff] }
  0x47   :  { %v9315_v5 = vld [vmem:[%s10297_s24] sm:$0xff]  ;;  %7672 = vmatpush3.msra.mxu0 %v162_v2  ;;  %7706 = vmatprep.subr.mxu1 %v253_v9  ;;  %v154_v18 = vld [vmem:[#allocation2 + $0x28] sm:$0xff]  ;;  %v248_v19 = vld [vmem:[#allocation5 + $0x40] sm:$0xff] }
  0x48   :  { %7673 = vmatprep.subr.mxu0 %v161_v3  ;;  %7699 = vmatprep.mubr.f32.mxu0 %v9315_v5  ;;  %v153_v20 = vld [vmem:[#allocation2 + $0x20] sm:$0xff]  ;;  %v247_v21 = vld [vmem:[#allocation5 + $0x38] sm:$0xff]  ;;  %v246_v23 = vld [vmem:[#allocation5 + $0x30] sm:$0xff] }
  0x49   :  { %7674 = vmatpush3.msra.mxu0 %v161_v3  ;;  %7707 = vmatpush3.msra.mxu1 %v253_v9  ;;  %v152_v22 = vld [vmem:[#allocation2 + $0x18] sm:$0xff]  ;;  %v151_v24 = vld [vmem:[#allocation2 + $0x10] sm:$0xff]  ;;  %v245_v25 = vld [vmem:[#allocation5 + $0x28] sm:$0xff] }
  0x4a   :  { %7675 = vmatprep.subr.mxu0 %v160_v6  ;;  %7708 = vmatprep.subr.mxu1 %v252_v11  ;;  %v150_v26 = vld [vmem:[#allocation2 + $0x8] sm:$0xff]  ;;  %v244_v27 = vld [vmem:[#allocation5 + $0x20] sm:$0xff]  ;;  %v243_v29 = vld [vmem:[#allocation5 + $0x18] sm:$0xff] }
  0x4b   :  { %7676 = vmatpush3.msra.mxu0 %v160_v6  ;;  %7709 = vmatpush3.msra.mxu1 %v252_v11  ;;  %v149_v28 = vld [vmem:[#allocation2] sm:$0xff]  ;;  %v9321_v30 = vld [vmem:[%s10297_s24 + $0x8] sm:$0xff]  ;;  %v242_v32 = vld [vmem:[#allocation5 + $0x10] sm:$0xff] }
  0x4c   :  { %7677 = vmatprep.subr.mxu0 %v159_v8  ;;  %7710 = vmatprep.subr.mxu1 %v251_v13  ;;  %v346_v31 = vld [vmem:[#allocation7 + $0x78] sm:$0xff]  ;;  %v345_v33 = vld [vmem:[#allocation7 + $0x70] sm:$0xff]  ;;  %v241_v34 = vld [vmem:[#allocation5 + $0x8] sm:$0xff] }
  0x4d   :  { %7678 = vmatpush3.msra.mxu0 %v159_v8  ;;  %7711 = vmatpush3.msra.mxu1 %v251_v13  ;;  %v344_v35 = vld [vmem:[#allocation7 + $0x68] sm:$0xff]  ;;  %v240_v36 = vld [vmem:[#allocation5] sm:$0xff]  ;;  %v342_v38 = vld [vmem:[#allocation7 + $0x58] sm:$0xff] }
  0x4e   :  { %7679 = vmatprep.subr.mxu0 %v158_v10  ;;  %7712 = vmatprep.subr.mxu1 %v250_v15  ;;  %v343_v37 = vld [vmem:[#allocation7 + $0x60] sm:$0xff]  ;;  %v341_v39 = vld [vmem:[#allocation7 + $0x50] sm:$0xff]  ;;  %v437_v40 = vld [vmem:[#allocation8 + $0x78] sm:$0xff] }
  0x4f   :  { %7680 = vmatpush3.msra.mxu0 %v158_v10  ;;  %7713 = vmatpush3.msra.mxu1 %v250_v15  ;;  %v340_v41 = vld [vmem:[#allocation7 + $0x48] sm:$0xff]  ;;  %v436_v42 = vld [vmem:[#allocation8 + $0x70] sm:$0xff]  ;;  %v339_v43 = vld [vmem:[#allocation7 + $0x40] sm:$0xff] }
  0x50   :  { %7681 = vmatprep.subr.mxu0 %v157_v12  ;;  %7714 = vmatprep.subr.mxu1 %v249_v17  ;;  %v435_v44 = vld [vmem:[#allocation8 + $0x68] sm:$0xff]  ;;  %v338_v45 = vld [vmem:[#allocation7 + $0x38] sm:$0xff]  ;;  %v337_v46 = vld [vmem:[#allocation7 + $0x30] sm:$0xff] }
  0x51   :  { %7682 = vmatpush3.msra.mxu0 %v157_v12  ;;  %7715 = vmatpush3.msra.mxu1 %v249_v17  ;;  %v336_v47 = vld [vmem:[#allocation7 + $0x28] sm:$0xff]  ;;  %v335_v48 = vld [vmem:[#allocation7 + $0x20] sm:$0xff]  ;;  %v334_v49 = vld [vmem:[#allocation7 + $0x18] sm:$0xff] }
  0x52   :  { %7683 = vmatprep.subr.mxu0 %v156_v14  ;;  %7716 = vmatprep.subr.mxu1 %v248_v19  ;;  %v333_v50 = vld [vmem:[#allocation7 + $0x10] sm:$0xff]  ;;  %v332_v51 = vld [vmem:[#allocation7 + $0x8] sm:$0xff]  ;;  %v331_v52 = vld [vmem:[#allocation7] sm:$0xff] }
  0x53   :  { %7684 = vmatpush3.msra.mxu0 %v156_v14  ;;  %7717 = vmatpush3.msra.mxu1 %v248_v19  ;;  %v434_v53 = vld [vmem:[#allocation8 + $0x60] sm:$0xff]  ;;  %v433_v54 = vld [vmem:[#allocation8 + $0x58] sm:$0xff]  ;;  %v432_v55 = vld [vmem:[#allocation8 + $0x50] sm:$0xff] }
  0x54   :  { %7685 = vmatprep.subr.mxu0 %v155_v16  ;;  %7718 = vmatprep.subr.mxu1 %v247_v21  ;;  %v431_v56 = vld [vmem:[#allocation8 + $0x48] sm:$0xff]  ;;  %v430_v57 = vld [vmem:[#allocation8 + $0x40] sm:$0xff]  ;;  %v9331_v58 = vld [vmem:[%s10298_s6] sm:$0xff] }
  0x55   :  { %7686 = vmatpush3.msra.mxu0 %v155_v16  ;;  %7719 = vmatpush3.msra.mxu1 %v247_v21  ;;  %v429_v59 = vld [vmem:[#allocation8 + $0x38] sm:$0xff]  ;;  %v428_v60 = vld [vmem:[#allocation8 + $0x30] sm:$0xff]  ;;  %v427_v61 = vld [vmem:[#allocation8 + $0x28] sm:$0xff] }
  0x56   :  { %7687 = vmatprep.subr.mxu0 %v154_v18  ;;  %7720 = vmatprep.subr.mxu1 %v246_v23  ;;  %v426_v62 = vld [vmem:[#allocation8 + $0x20] sm:$0xff]  ;;  %v425_v63 = vld [vmem:[#allocation8 + $0x18] sm:$0xff]  ;;  %v424_v0 = vld [vmem:[#allocation8 + $0x10] sm:$0xff] }
  0x57   :  { %7688 = vmatpush3.msra.mxu0 %v154_v18  ;;  %7721 = vmatpush3.msra.mxu1 %v246_v23  ;;  %v423_v1 = vld [vmem:[#allocation8 + $0x8] sm:$0xff]  ;;  %v422_v2 = vld [vmem:[#allocation8] sm:$0xff]  ;;  %v9337_v3 = vld [vmem:[%s10298_s6 + $0x8] sm:$0xff] }
  0x58   :  { %7689 = vmatprep.subr.mxu0 %v153_v20  ;;  %7722 = vmatprep.subr.mxu1 %v245_v25  ;;  %v9342_v4 = vld [vmem:[%s10298_s6 + $0x10] sm:$0xff]  ;;  %v9349_v6 = vld [vmem:[%s10298_s6 + $0x18] sm:$0xff]  ;;  %v9355_v7 = vld [vmem:[%s10299_s5] sm:$0xff] }
  0x59   :  { %7690 = vmatpush3.msra.mxu0 %v153_v20  ;;  %7723 = vmatpush3.msra.mxu1 %v245_v25  ;;  %v9362_v8 = vld [vmem:[%s10275_s3] sm:$0xff]  ;;  %v9369_v11 = vld [vmem:[%s10299_s5 + $0x8] sm:$0xff]  ;;  %v9374_v12 = vld [vmem:[%s10299_s5 + $0x10] sm:$0xff] }
  0x5a   :  { %7691 = vmatprep.subr.mxu0 %v152_v22  ;;  %7724 = vmatprep.subr.mxu1 %v244_v27  ;;  %v9383_v13 = vld [vmem:[%s10299_s5 + $0x18] sm:$0xff]  ;;  %v9396_v18 = vld [vmem:[%s10275_s3 + $0x8] sm:$0xff]  ;;  %v9401_v19 = vld [vmem:[%s10275_s3 + $0x10] sm:$0xff] }
  0x5b   :  { %7692 = vmatpush3.msra.mxu0 %v152_v22  ;;  %7725 = vmatpush3.msra.mxu1 %v244_v27  ;;  %v9410_v20 = vld [vmem:[%s10275_s3 + $0x18] sm:$0xff]  ;;  %v9417_v21 = vld [vmem:[%s10276_s4] sm:$0xff] }
  0x5c   :  { %7693 = vmatprep.subr.mxu0 %v151_v24  ;;  %7726 = vmatprep.subr.mxu1 %v243_v29 }
  0x5d   :  { %7694 = vmatpush3.msra.mxu0 %v151_v24  ;;  %7727 = vmatpush3.msra.mxu1 %v243_v29 }
  0x5e   :  { %7695 = vmatprep.subr.mxu0 %v150_v26  ;;  %7728 = vmatprep.subr.mxu1 %v242_v32 }
  0x5f   :  { %7696 = vmatpush3.msra.mxu0 %v150_v26  ;;  %7729 = vmatpush3.msra.mxu1 %v242_v32 }
  0x60   :  { %7697 = vmatprep.subr.mxu0 %v149_v28  ;;  %7730 = vmatprep.subr.mxu1 %v241_v34 }
  0x61   :  { %7698 = vmatpush3.msra.mxu0 %v149_v28  ;;  %7731 = vmatpush3.msra.mxu1 %v241_v34 }
  0x62   :  { %7700 = vmatmul.mubr.f32.vlgmr.msra.gmra.mxu0 %v9321_v30  ;;  %7737 = vmatprep.subr.mxu0 %v346_v31 }
  0x63   :  { %7738 = vmatpush3.msra.mxu0 %v346_v31  ;;  %7732 = vmatprep.subr.mxu1 %v240_v36 }
  0x64   :  { %7739 = vmatprep.subr.mxu0 %v345_v33  ;;  %7733 = vmatpush3.msra.mxu1 %v240_v36 }
  0x65   :  { %7740 = vmatpush3.msra.mxu0 %v345_v33  ;;  %7734 = vmatprep.mubr.f32.mxu1 %v9315_v5 }
  0x66   :  { %7741 = vmatprep.subr.mxu0 %v344_v35  ;;  %7735 = vmatmul.mubr.f32.vlgmr.msra.gmra.mxu1 %v9321_v30 }
  0x67   :  { %7742 = vmatpush3.msra.mxu0 %v344_v35  ;;  %7769 = vmatprep.mubr.f32.mxu0 %v9315_v5 }
  0x68   :  { %7743 = vmatprep.subr.mxu0 %v343_v37  ;;  %7772 = vmatprep.subr.mxu1 %v437_v40 }
  0x69   :  { %7744 = vmatpush3.msra.mxu0 %v343_v37  ;;  %7773 = vmatpush3.msra.mxu1 %v437_v40 }
  0x6a   :  { %7745 = vmatprep.subr.mxu0 %v342_v38  ;;  %7774 = vmatprep.subr.mxu1 %v436_v42 }
  0x6b   :  { %7746 = vmatpush3.msra.mxu0 %v342_v38  ;;  %7775 = vmatpush3.msra.mxu1 %v436_v42 }
  0x6c   :  { %7747 = vmatprep.subr.mxu0 %v341_v39  ;;  %7776 = vmatprep.subr.mxu1 %v435_v44 }
  0x6d   :  { %7748 = vmatpush3.msra.mxu0 %v341_v39  ;;  %7777 = vmatpush3.msra.mxu1 %v435_v44 }
  0x6e   :  { %7749 = vmatprep.subr.mxu0 %v340_v41  ;;  %7778 = vmatprep.subr.mxu1 %v434_v53 }
  0x6f   :  { %7750 = vmatpush3.msra.mxu0 %v340_v41  ;;  %7779 = vmatpush3.msra.mxu1 %v434_v53 }
  0x70   :  { %7751 = vmatprep.subr.mxu0 %v339_v43  ;;  %7780 = vmatprep.subr.mxu1 %v433_v54 }
  0x71   :  { %7752 = vmatpush3.msra.mxu0 %v339_v43  ;;  %7781 = vmatpush3.msra.mxu1 %v433_v54 }
  0x72   :  { %7753 = vmatprep.subr.mxu0 %v338_v45  ;;  %7782 = vmatprep.subr.mxu1 %v432_v55 }
  0x73   :  { %7754 = vmatpush3.msra.mxu0 %v338_v45  ;;  %7783 = vmatpush3.msra.mxu1 %v432_v55 }
  0x74   :  { %7755 = vmatprep.subr.mxu0 %v337_v46  ;;  %7784 = vmatprep.subr.mxu1 %v431_v56 }
  0x75   :  { %7756 = vmatpush3.msra.mxu0 %v337_v46  ;;  %7804 = vmatprep.mubr.f32.mxu1 %v9331_v58 }
  0x76   :  { %7757 = vmatprep.subr.mxu0 %v336_v47  ;;  %7785 = vmatpush3.msra.mxu1 %v431_v56 }
  0x77   :  { %7758 = vmatpush3.msra.mxu0 %v336_v47  ;;  %7786 = vmatprep.subr.mxu1 %v430_v57 }
  0x78   :  { %7759 = vmatprep.subr.mxu0 %v335_v48  ;;  %7787 = vmatpush3.msra.mxu1 %v430_v57 }
  0x79   :  { %7760 = vmatpush3.msra.mxu0 %v335_v48  ;;  %7788 = vmatprep.subr.mxu1 %v429_v59 }
  0x7a   :  { %7761 = vmatprep.subr.mxu0 %v334_v49  ;;  %7789 = vmatpush3.msra.mxu1 %v429_v59 }
  0x7b   :  { %7762 = vmatpush3.msra.mxu0 %v334_v49  ;;  %7790 = vmatprep.subr.mxu1 %v428_v60 }
  0x7c   :  { %7763 = vmatprep.subr.mxu0 %v333_v50  ;;  %7791 = vmatpush3.msra.mxu1 %v428_v60 }
  0x7d   :  { %7764 = vmatpush3.msra.mxu0 %v333_v50  ;;  %7792 = vmatprep.subr.mxu1 %v427_v61 }
  0x7e   :  { %7765 = vmatprep.subr.mxu0 %v332_v51  ;;  %7793 = vmatpush3.msra.mxu1 %v427_v61 }
  0x7f   :  { %7766 = vmatpush3.msra.mxu0 %v332_v51  ;;  %7794 = vmatprep.subr.mxu1 %v426_v62 }
  0x80   :  { %7767 = vmatprep.subr.mxu0 %v331_v52  ;;  %7795 = vmatpush3.msra.mxu1 %v426_v62 }
  0x81   :  { %7768 = vmatpush3.msra.mxu0 %v331_v52  ;;  %7796 = vmatprep.subr.mxu1 %v425_v63 }
  0x82   :  { %7770 = vmatmul.mubr.f32.vlgmr.msra.gmra.mxu0 %v9321_v30  ;;  %7797 = vmatpush3.msra.mxu1 %v425_v63 }
  0x83   :  { %7798 = vmatprep.subr.mxu1 %v424_v0  ;;  %7814 = vmatprep.mubr.msk.f32.mxu0 %vm523_vm0, %v9362_v8 }
  0x84   :  { %7799 = vmatpush3.msra.mxu1 %v424_v0 }
  0x85   :  { %7800 = vmatprep.subr.mxu1 %v423_v1 }
  0x86   :  { %7801 = vmatpush3.msra.mxu1 %v423_v1 }
  0x87   :  { %7802 = vmatprep.subr.mxu1 %v422_v2 }
  0x88   :  { %7803 = vmatpush3.msra.mxu1 %v422_v2 }
  0x89   :  { %7805 = vmatmul.mubr.f32.vlgmr.msra.gmra.mxu1 %v9337_v3 }
  0x8a   :  { %7807 = vmatprep.mubr.f32.mxu1 %v9342_v4 }
  0x8d   :  { %7808 = vmatmul.mubr.f32.gmra.mxu1 %v9349_v6 }
  0x8e   :  { %7824 = vmatprep.mubr.msk.f32.mxu1 %vm523_vm0, %v9355_v7 }
 0x122   :  { %v9389_v14 = vpop.f32.mrf.mxu0 }
 0x124   :  { %v9391_v15 = vpop.f32.mrf.mxu0 }
 0x126   :  { %v7736_v9 = vpop.f32.mrf.mxu1 }
 0x127   :  { %7820 = vmatprep.subr.mxu1 %v7736_v9 }
 0x128   :  { %v322_v10 = vpop.f32.mrf.mxu1  ;;  %7821 = vmatpush3.msra.mxu1 %v7736_v9 }
 0x129   :  { %7822 = vmatprep.subr.mxu1 %v322_v10 }
 0x12a   :  { %7823 = vmatpush3.msra.mxu1 %v322_v10 }
 0x12b   :  { %7825 = vmatmul.mubr.msk.f32.vlgmr.msra.gmra.mxu1 %vm523_vm0, %v9369_v11 }
 0x12c   :  { %7827 = vmatprep.mubr.msk.f32.mxu1 %vm523_vm0, %v9374_v12 }
 0x12f   :  { %7828 = vmatmul.mubr.msk.f32.gmra.mxu1 %vm523_vm0, %v9383_v13 }
 0x130   :  { %7845 = vmatprep.mubr.msk.f32.mxu1 %vm523_vm0, %v9362_v8 }
 0x142   :  { %v7771_v16 = vpop.f32.mrf.mxu0 }
 0x143   :  { %7810 = vmatprep.subr.mxu0 %v7771_v16 }
 0x144   :  { %v413_v17 = vpop.f32.mrf.mxu0  ;;  %7811 = vmatpush3.msra.mxu0 %v7771_v16 }
 0x145   :  { %7812 = vmatprep.subr.mxu0 %v413_v17 }
 0x146   :  { %7813 = vmatpush3.msra.mxu0 %v413_v17 }
 0x147   :  { %7815 = vmatmul.mubr.msk.f32.vlgmr.msra.gmra.mxu0 %vm523_vm0, %v9396_v18 }
 0x148   :  { %7817 = vmatprep.mubr.msk.f32.mxu0 %vm523_vm0, %v9401_v19 }
 0x149   :  { %v7806_v22 = vpop.f32.mrf.mxu1 }
 0x14b   :  { %7818 = vmatmul.mubr.msk.f32.gmra.mxu0 %vm523_vm0, %v9410_v20  ;;  %v504_v23 = vpop.f32.mrf.mxu1 }
 0x14c   :  { %7838 = vmatprep.mubr.msk.f32.mxu0 %vm760_vm1, %v9417_v21 }
 0x14d   :  { %v7809_v24 = vpop.f32.mrf.mxu1 }
 0x14f   :  { %v514_v25 = vpop.f32.mrf.mxu1 }
 0x1eb   :  { %v7826_v26 = vpop.f32.mrf.mxu1 }
 0x1ed   :  { %v699_v27 = vpop.f32.mrf.mxu1 }
 0x1ef   :  { %v7829_v33 = vpop.f32.mrf.mxu1 }
 0x1f1   :  { %v709_v41 = vpop.f32.mrf.mxu1 }
 0x207   :  { %v7816_v28 = vpop.f32.mrf.mxu0 }
 0x208   :  { %v705_v29 = vadd.f32 %v7826_v26, %v7816_v28  ;;  %v9428_v28 = vld [vmem:[%s10276_s4 + $0x8] sm:$0xff] }
 0x209   :  { %v602_v31 = vpop.f32.mrf.mxu0 }
 0x20a   :  { %v700_v32 = vadd.f32 %v699_v27, %v602_v31  ;;  %v719_v34 = vadd.f32 %v7806_v22, %v705_v29 }
 0x20b   :  { %v7819_v35 = vpop.f32.mrf.mxu0 }
 0x20c   :  { %v718_v36 = vadd.f32 %v700_v32, %v504_v23  ;;  %v715_v37 = vadd.f32 %v7829_v33, %v7819_v35  ;;  %v727_v42 = vmul.f32 0.2, %v719_v34  ;;  %vm723_vm3 = vcmp.gt.f32.partialorder %v719_v34, 0.0  ;;  %v935_v32 = vld [vmem:[%s10281_s9] sm:$0xf] }
 0x20d   :  { %v612_v38 = vpop.f32.mrf.mxu0 }
 0x20e   :  { %vm722_vm2 = vcmp.gt.f32.partialorder %v718_v36, 0.0  ;;  %v726_v39 = vmul.f32 0.2, %v718_v36  ;;  %v721_v40 = vadd.f32 %v7809_v24, %v715_v37  ;;  %v710_v43 = vadd.f32 %v709_v41, %v612_v38 }
 0x20f   :  { %v731_v47 = vsel %vm723_vm3, %v719_v34, %v727_v42 }
 0x210   :  { %vm725_vm4 = vcmp.gt.f32.partialorder %v721_v40, 0.0  ;;  %v729_v44 = vmul.f32 0.2, %v721_v40  ;;  %v730_v45 = vsel %vm722_vm2, %v718_v36, %v726_v39  ;;  %v720_v46 = vadd.f32 %v710_v43, %v514_v25 }
 0x211   :  { %v735_v50 = vsel %vm734_vm5, %v730_v45, -inf  ;;  %v736_v52 = vsel %vm734_vm5, %v731_v47, -inf }
 0x212   :  { %v733_v48 = vsel %vm725_vm4, %v721_v40, %v729_v44  ;;  %vm724_vm6 = vcmp.gt.f32.partialorder %v720_v46, 0.0  ;;  %v728_v49 = vmul.f32 0.2, %v720_v46  ;;  %v739_v55 = vmax.f32 %v735_v50, %v736_v52 }
 0x213   :  { %v738_v53 = vsel %vm734_vm5, %v733_v48, -inf }
 0x214   :  { %v732_v51 = vsel %vm724_vm6, %v720_v46, %v728_v49 }
 0x215   :  { %v737_v54 = vsel %vm734_vm5, %v732_v51, -inf }
 0x216   :  { %v740_v56 = vmax.f32 %v737_v54, %v738_v53 }
 0x218   :  { %v741_v57 = vmax.f32 %v739_v55, %v740_v56 }
 0x21a   :  { %v742_v59 = vrot.slane %v741_v57, 4 }
 0x21c   :  { %v743_v60 = vmax.f32 %v741_v57, %v742_v59 }
 0x21e   :  { %v744_v61 = vrot.slane %v743_v60, 2 }
 0x220   :  { %v745_v62 = vmax.f32 %v743_v60, %v744_v61 }
 0x222   :  { %v746_v63 = vrot.slane %v745_v62, 1 }
 0x224   :  { %v747_v0 = vmax.f32 %v745_v62, %v746_v63 }
 0x226   :  { %v751_v1 = vsub.f32 %v733_v48, %v747_v0  ;;  %v750_v2 = vsub.f32 %v732_v51, %v747_v0  ;;  %v749_v9 = vsub.f32 %v731_v47, %v747_v0  ;;  %v748_v16 = vsub.f32 %v730_v45, %v747_v0 }
 0x227   :  { %v144_v0 = vlaneseq }
 0x228   :  { %v758_v10 = vmul.f32 1.442695, %v751_v1  ;;  %v756_v17 = vmul.f32 1.442695, %v750_v2  ;;  %v754_v22 = vmul.f32 1.442695, %v749_v9 }
 0x229   :  { %v752_v23 = vmul.f32 1.442695, %v748_v16  ;;  %v145_v1 = vand.u32 127, %v144_v0  ;;  %v1433_v0 = vld [vmem:[#allocation10 + $0x48] sm:$0xff] }
 0x22a   :  { %8913 = vpow2.f32 %v758_v10  ;;  %v9184_v10 = vmov 0.0  }
 0x22b   :  { %8915 = vpow2.f32 %v756_v17  ;;  %vm146_vm8 = vcmp.lt.s32.totalorder %v145_v1, 64  ;;  %v1448_v1 = vld [vmem:[#allocation10 + $0xc0] sm:$0xff] }
 0x22c   :  { %8917 = vpow2.f32 %v754_v22  ;;  %v9470_v16 = vsel %vm146_vm8, 1.0, %v9184_v10  ;;  %v1447_v10 = vld [vmem:[#allocation10 + $0xb8] sm:$0xff] }
 0x22d   :  { %8919 = vpow2.f32 %v752_v23 }
 0x237   :  { %v8914_v24 = vpop.eup %8913 }
 0x238   :  { %7830 = vmatprep.subr.mxu0 %v8914_v24  ;;  %v8916_v25 = vpop.eup %8915 }
 0x239   :  { %7831 = vmatpush3.msra.mxu0 %v8914_v24  ;;  %v8918_v26 = vpop.eup %8917 }
 0x23a   :  { %7832 = vmatprep.subr.mxu0 %v8916_v25  ;;  %v8920_v27 = vpop.eup %8919 }
 0x23b   :  { %7833 = vmatpush3.msra.mxu0 %v8916_v25 }
 0x23c   :  { %7834 = vmatprep.subr.mxu0 %v8918_v26 }
 0x23d   :  { %7835 = vmatpush3.msra.mxu0 %v8918_v26 }
 0x23e   :  { %7836 = vmatprep.subr.mxu0 %v8920_v27 }
 0x23f   :  { %7837 = vmatpush3.msra.mxu0 %v8920_v27 }
 0x240   :  { %7839 = vmatmul.mubr.msk.f32.vlgmr.msra.gmra.mxu0 %vm760_vm1, %v9428_v28 }
 0x241   :  { %7894 = vmatprep.mubr.msk.f32.mxu0 %vm523_vm0, %v9362_v8 }
 0x300   :  { %v7840_v29 = vpop.f32.mrf.mxu0 }
 0x301   :  { %7841 = vmatprep.subr.mxu1 %v7840_v29 }
 0x302   :  { %v833_v31 = vpop.f32.mrf.mxu0  ;;  %7842 = vmatpush3.msra.mxu1 %v7840_v29 }
 0x303   :  { %7843 = vmatprep.subr.mxu1 %v833_v31 }
 0x304   :  { %7844 = vmatpush3.msra.mxu1 %v833_v31 }
 0x305   :  { %7846 = vmatmul.mubr.msk.f32.vlgmr.msra.gmra.mxu1 %vm523_vm0, %v9396_v18  ;;  %7851 = vmatprep.subr.msk.mxu1 %vm948_vm7, %v935_v32 }
 0x306   :  { %7852 = vmatpush3.msk.msra.mxu1 %vm948_vm7, %v935_v32  ;;  %7848 = vmatprep.mubr.msk.f32.mxu1 %vm523_vm0, %v9401_v19 }
 0x307   :  { %7859 = vmatprep.subr.mxu1 %v9389_v14 }
 0x309   :  { %7849 = vmatmul.mubr.msk.f32.gmra.mxu1 %vm523_vm0, %v9410_v20 }
 0x3c5   :  { %v7847_v33 = vpop.f32.mrf.mxu1 }
 0x3c6   :  { %v914_v34 = vadd.f32 1e-16, %v7847_v33 }
 0x3c7   :  { %v908_v35 = vpop.f32.mrf.mxu1 }
 0x3c8   :  { %v909_v36 = vadd.f32 1e-16, %v908_v35  ;;  %8921 = vrcp.f32 %v914_v34 }
 0x3c9   :  { %v7850_v37 = vpop.f32.mrf.mxu1 }
 0x3ca   :  { %8923 = vrcp.f32 %v909_v36  ;;  %v924_v38 = vadd.f32 1e-16, %v7850_v37  ;;  %v6631_v36 = vld [vmem:[%s10283_s11] ss:$0 sm:$0xff] }
 0x3cb   :  { %v918_v39 = vpop.f32.mrf.mxu1 }
 0x3cc   :  { %v919_v40 = vadd.f32 1e-16, %v918_v39  ;;  %8925 = vrcp.f32 %v924_v38  ;;  %v6632_v38 = vld [vmem:[%s10284_s12] ss:$0 sm:$0xff] }
 0x3ce   :  { %8927 = vrcp.f32 %v919_v40 }
 0x3d5   :  { %v8922_v41 = vpop.eup %8921 }
 0x3d6   :  { %v930_v44 = vmul.f32 %v8922_v41, %v8918_v26 }
 0x3d7   :  { %v8924_v42 = vpop.eup %8923 }
 0x3d8   :  { %v928_v43 = vmul.f32 %v8924_v42, %v8920_v27 }
 0x3d9   :  { %v8926_v45 = vpop.eup %8925 }
 0x3da   :  { %7853 = vmatprep.mubr.msk.f32.mxu1 %vm734_vm5, %v928_v43  ;;  %v934_v48 = vmul.f32 %v8926_v45, %v8914_v24 }
 0x3db   :  { %v8928_v46 = vpop.eup %8927  ;;  %7854 = vmatmul.mubr.msk.f32.vlgmr.msra.gmra.mxu1 %vm734_vm5, %v930_v44 }
 0x3dc   :  { %7860 = vmatpush3.msra.mxu1 %v9389_v14  ;;  %v932_v47 = vmul.f32 %v8928_v46, %v8916_v25 }
 0x3dd   :  { %7861 = vmatprep.subr.mxu1 %v9391_v15 }
 0x3de   :  { %7862 = vmatpush3.msra.mxu1 %v9391_v15  ;;  %7856 = vmatprep.mubr.msk.f32.mxu1 %vm734_vm5, %v932_v47 }
 0x3df   :  { %7857 = vmatmul.mubr.msk.f32.gmra.mxu1 %vm734_vm5, %v934_v48 }
 0x3e0   :  { %7863 = vmatprep.mubr.msk.f32.mxu1 %vm523_vm0, %v9355_v7 }
 0x3e3   :  { %7864 = vmatmul.mubr.msk.f32.vlgmr.msra.gmra.mxu1 %vm523_vm0, %v9369_v11 }
 0x3e4   :  { %7866 = vmatprep.mubr.msk.f32.mxu1 %vm523_vm0, %v9374_v12 }
 0x3e7   :  { %7867 = vmatmul.mubr.msk.f32.gmra.mxu1 %vm523_vm0, %v9383_v13 }
 0x3e8   :  { %7877 = vmatprep.mubr.msk.f32.mxu1 %vm760_vm1, %v9417_v21  ;;  %v6628_v21 = vld [vmem:[%s10282_s10] ss:$0 sm:$0xff] }
 0x49b   :  { %v7855_v14 = vpop.f32.mrf.mxu1 }
 0x49d   :  { %v1018_v15 = vpop.f32.mrf.mxu1 }
 0x49f   :  { %v7858_v49 = vpop.f32.mrf.mxu1 }
 0x4a1   :  { %v1028_v50 = vpop.f32.mrf.mxu1 }
 0x4a3   :  { %v7865_v51 = vpop.f32.mrf.mxu1 }
 0x4a4   :  { %v1123_v57 = vmul.f32 %v7865_v51, %v7855_v14  ;;  %v1471_v14 = vld [vmem:[#allocation10 + $0x178] sm:$0xff] }
 0x4a5   :  { %v1103_v52 = vpop.f32.mrf.mxu1  ;;  %v1467_v51 = vld [vmem:[#allocation10 + $0x158] sm:$0xff] }
 0x4a6   :  { %v1122_v59 = vmul.f32 %v1103_v52, %v1018_v15  ;;  %v1455_v15 = vld [vmem:[#allocation10 + $0xf8] sm:$0xff]  ;;  %v1438_v52 = vld [vmem:[#allocation10 + $0x70] sm:$0xff] }
 0x4a7   :  { %v7868_v53 = vpop.f32.mrf.mxu1 }
 0x4a8   :  { %v1125_v54 = vmul.f32 %v7868_v53, %v7858_v49  ;;  %v1468_v49 = vld [vmem:[#allocation10 + $0x160] sm:$0xff]  ;;  %v1466_v53 = vld [vmem:[#allocation10 + $0x150] sm:$0xff] }
 0x4a9   :  { %v1113_v55 = vpop.f32.mrf.mxu1 }
 0x4aa   :  { %v1124_v56 = vmul.f32 %v1113_v55, %v1028_v50  ;;  %7869 = vmatprep.subr.mxu1 %v1125_v54  ;;  %v1454_v50 = vld [vmem:[#allocation10 + $0xf0] sm:$0xff]  ;;  %v1465_v55 = vld [vmem:[#allocation10 + $0x148] sm:$0xff] }
 0x4ab   :  { %7870 = vmatpush3.msra.mxu1 %v1125_v54  ;;  %v1437_v54 = vld [vmem:[#allocation10 + $0x68] sm:$0xff] }
 0x4ac   :  { %7871 = vmatprep.subr.mxu1 %v1124_v56 }
 0x4ad   :  { %7872 = vmatpush3.msra.mxu1 %v1124_v56  ;;  %v1436_v56 = vld [vmem:[#allocation10 + $0x60] sm:$0xff] }
 0x4ae   :  { %7873 = vmatprep.subr.mxu1 %v1123_v57 }
 0x4af   :  { %7874 = vmatpush3.msra.mxu1 %v1123_v57  ;;  %v1451_v57 = vld [vmem:[#allocation10 + $0xd8] sm:$0xff] }
 0x4b0   :  { %7875 = vmatprep.subr.mxu1 %v1122_v59 }
 0x4b1   :  { %7876 = vmatpush3.msra.mxu1 %v1122_v59  ;;  %v1435_v59 = vld [vmem:[#allocation10 + $0x58] sm:$0xff] }
 0x4b2   :  { %7878 = vmatmul.mubr.msk.f32.vlgmr.msra.gmra.mxu1 %vm760_vm1, %v9428_v28 }
 0x4b3   :  { %7884 = vmatprep.mubr.msk.f32.mxu1 %vm523_vm0, %v9355_v7 }
 0x572   :  { %v7879_v60 = vpop.f32.mrf.mxu1 }
 0x573   :  { %v1205_v61 = vadd.f32 %v7879_v60, %v6628_v21  ;;  %v1463_v60 = vld [vmem:[#allocation10 + $0x138] sm:$0xff] }
 0x574   :  { %v1199_v62 = vpop.f32.mrf.mxu1 }
 0x575   :  { %1210 = vadd.xlane.f32.xlu0 %v1205_v61  ;;  %v1200_v63 = vadd.f32 %v6628_v21, %v1199_v62  ;;  %v1450_v21 = vld [vmem:[#allocation10 + $0xd0] sm:$0xff]  ;;  %v1449_v62 = vld [vmem:[#allocation10 + $0xc8] sm:$0xff] }
 0x579   :  { %1208 = vadd.xlane.f32.xlu0 %v1200_v63 }
 0x5fe   :  { %v1211_v2 = vpop.xlane.xlu0 %1210 }
 0x5ff   :  { %v1213_v9 = vmul.f32 0.015625, %v1211_v2  ;;  %v1461_v2 = vld [vmem:[#allocation10 + $0x128] sm:$0xff] }
 0x601   :  { %v1215_v17 = vsub.f32 %v1205_v61, %v1213_v9  ;;  %v1434_v61 = vld [vmem:[#allocation10 + $0x50] sm:$0xff]  ;;  %v1432_v9 = vld [vmem:[#allocation10 + $0x40] sm:$0xff] }
 0x602   :  { %v1209_v7 = vpop.xlane.xlu0 %1208 }
 0x603   :  { %v1212_v22 = vmul.f32 0.015625, %v1209_v7  ;;  %v1217_v23 = vmul.f32 %v9470_v16, %v1215_v17  ;;  %v1460_v17 = vld [vmem:[#allocation10 + $0x120] sm:$0xff]  ;;  %v1431_v7 = vld [vmem:[#allocation10 + $0x38] sm:$0xff] }
 0x605   :  { %v1214_v24 = vsub.f32 %v1200_v63, %v1212_v22  ;;  %v1219_v25 = vmul.f32 %v1217_v23, %v1217_v23  ;;  %v1462_v63 = vld [vmem:[#allocation10 + $0x130] sm:$0xff] }
 0x606   :  { %v1446_v22 = vld [vmem:[#allocation10 + $0xb0] sm:$0xff] }
 0x607   :  { %1222 = vadd.xlane.f32.xlu1 %v1219_v25  ;;  %v1216_v26 = vmul.f32 %v9470_v16, %v1214_v24  ;;  %v1430_v24 = vld [vmem:[#allocation10 + $0x30] sm:$0xff]  ;;  %v1445_v25 = vld [vmem:[#allocation10 + $0xa8] sm:$0xff] }
 0x609   :  { %v1218_v27 = vmul.f32 %v1216_v26, %v1216_v26 }
 0x60b   :  { %1220 = vadd.xlane.f32.xlu1 %v1218_v27  ;;  %v1429_v27 = vld [vmem:[#allocation10 + $0x28] sm:$0xff] }
 0x690   :  { %v1223_v28 = vpop.xlane.xlu1 %1222 }
 0x691   :  { %v1225_v29 = vmul.f32 0.015625, %v1223_v28  ;;  %v1444_v28 = vld [vmem:[#allocation10 + $0xa0] sm:$0xff] }
 0x693   :  { %v1227_v31 = vadd.f32 1e-05, %v1225_v29  ;;  %v1457_v29 = vld [vmem:[#allocation10 + $0x108] sm:$0xff] }
 0x694   :  { %v1221_v32 = vpop.xlane.xlu1 %1220 }
 0x695   :  { %8929 = vrsqrt.f32 %v1227_v31  ;;  %v1224_v33 = vmul.f32 0.015625, %v1221_v32  ;;  %v1428_v31 = vld [vmem:[#allocation10 + $0x20] sm:$0xff]  ;;  %v1443_v32 = vld [vmem:[#allocation10 + $0x98] sm:$0xff] }
 0x697   :  { %v1226_v34 = vadd.f32 1e-05, %v1224_v33  ;;  %v1456_v33 = vld [vmem:[#allocation10 + $0x100] sm:$0xff] }
 0x699   :  { %8931 = vrsqrt.f32 %v1226_v34  ;;  %v1427_v34 = vld [vmem:[#allocation10 + $0x18] sm:$0xff] }
 0x6a2   :  { %v8930_v35 = vpop.eup %8929 }
 0x6a3   :  { %v1231_v37 = vmul.f32 %v8930_v35, %v1217_v23  ;;  %v1459_v23 = vld [vmem:[#allocation10 + $0x118] sm:$0xff]  ;;  %v1442_v35 = vld [vmem:[#allocation10 + $0x90] sm:$0xff] }
 0x6a5   :  { %v1240_v39 = vmul.f32 %v6631_v36, %v1231_v37  ;;  %v1784_v37 = vld [vmem:[#allocation2 + $0xf0] sm:$0xff] }
 0x6a6   :  { %v8932_v40 = vpop.eup %8931 }
 0x6a7   :  { %v1249_v41 = vadd.f32 %v6632_v38, %v1240_v39  ;;  %v1230_v42 = vmul.f32 %v8932_v40, %v1216_v26  ;;  %v1458_v26 = vld [vmem:[#allocation10 + $0x110] sm:$0xff]  ;;  %v1783_v39 = vld [vmem:[#allocation2 + $0xe8] sm:$0xff]  ;;  %v1782_v40 = vld [vmem:[#allocation2 + $0xe0] sm:$0xff] }
 0x6a9   :  { %v1251_v43 = vmax.f32 %v1249_v41, 0.0  ;;  %v1239_v44 = vmul.f32 %v6631_v36, %v1230_v42  ;;  %v1785_v36 = vld [vmem:[#allocation2 + $0xf8] sm:$0xff]  ;;  %v1780_v42 = vld [vmem:[#allocation2 + $0xd0] sm:$0xff] }
 0x6aa   :  { %v1781_v41 = vld [vmem:[#allocation2 + $0xd8] sm:$0xff] }
 0x6ab   :  { %v9481_v45 = vadd.f32 %v1251_v43, %v9321_v30  ;;  %v1248_v46 = vadd.f32 %v6632_v38, %v1239_v44  ;;  %v1470_v30 = vld [vmem:[#allocation10 + $0x170] sm:$0xff]  ;;  %v1777_v43 = vld [vmem:[#allocation2 + $0xb8] sm:$0xff]  ;;  %v1775_v44 = vld [vmem:[#allocation2 + $0xa8] sm:$0xff] }
 0x6ac   :  { %v1426_v38 = vld [vmem:[#allocation10 + $0x10] sm:$0xff] }
 0x6ad   :  { %v1250_v47 = vmax.f32 %v1248_v46, 0.0  ;;  %7880 = vmatprep.subr.mxu1 %v9481_v45  ;;  %7890 = vmatprep.subr.mxu0 %v9481_v45  ;;  %v1774_v46 = vld [vmem:[#allocation2 + $0xa0] sm:$0xff] }
 0x6ae   :  { %7881 = vmatpush3.msra.mxu1 %v9481_v45  ;;  %7891 = vmatpush3.msra.mxu0 %v9481_v45 }
 0x6af   :  { %v9488_v48 = vadd.f32 %v1250_v47, %v9315_v5  ;;  %v1469_v5 = vld [vmem:[#allocation10 + $0x168] sm:$0xff]  ;;  %v1773_v47 = vld [vmem:[#allocation2 + $0x98] sm:$0xff] }
 0x6b1   :  { %7882 = vmatprep.subr.mxu1 %v9488_v48  ;;  %7892 = vmatprep.subr.mxu0 %v9488_v48 }
 0x6b2   :  { %7883 = vmatpush3.msra.mxu1 %v9488_v48  ;;  %7893 = vmatpush3.msra.mxu0 %v9488_v48 }
 0x6b3   :  { %7885 = vmatmul.mubr.msk.f32.vlgmr.msra.gmra.mxu1 %vm523_vm0, %v9369_v11  ;;  %7895 = vmatmul.mubr.msk.f32.vlgmr.msra.gmra.mxu0 %vm523_vm0, %v9396_v18  ;;  %v1439_v11 = vld [vmem:[#allocation10 + $0x78] sm:$0xff] }
 0x6b4   :  { %7900 = vmatprep.subr.mxu0 %v1471_v14  ;;  %7897 = vmatprep.mubr.msk.f32.mxu0 %vm523_vm0, %v9401_v19 }
 0x6b5   :  { %7901 = vmatpush3.msra.mxu0 %v1471_v14  ;;  %7887 = vmatprep.mubr.msk.f32.mxu1 %vm523_vm0, %v9374_v12  ;;  %v1453_v12 = vld [vmem:[#allocation10 + $0xe8] sm:$0xff]  ;;  %v1772_v14 = vld [vmem:[#allocation2 + $0x90] sm:$0xff] }
 0x6b6   :  { %7902 = vmatprep.subr.mxu0 %v1470_v30  ;;  %6950 = vmatprep.subr.mxu1 %v1455_v15  ;;  %v1770_v15 = vld [vmem:[#allocation2 + $0x80] sm:$0xff] }
 0x6b7   :  { %7903 = vmatpush3.msra.mxu0 %v1470_v30  ;;  %7888 = vmatmul.mubr.msk.f32.gmra.mxu1 %vm523_vm0, %v9383_v13  ;;  %v1452_v13 = vld [vmem:[#allocation10 + $0xe0] sm:$0xff]  ;;  %v1771_v30 = vld [vmem:[#allocation2 + $0x88] sm:$0xff] }
 0x6b8   :  { %7904 = vmatprep.subr.mxu0 %v1469_v5  ;;  %7898 = vmatmul.mubr.msk.f32.gmra.mxu0 %vm523_vm0, %v9410_v20 }
 0x6b9   :  { %7905 = vmatpush3.msra.mxu0 %v1469_v5  ;;  %7932 = vmatprep.mubr.f32.mxu0 %v9331_v58  ;;  %v1464_v58 = vld [vmem:[#allocation10 + $0x140] sm:$0xff]  ;;  %v1969_v5 = vld [vmem:[#allocation7 + $0xf8] sm:$0xff] }
 0x6ba   :  { %7906 = vmatprep.subr.mxu0 %v1468_v49  ;;  %6951 = vmatpush3.msra.mxu1 %v1439_v11  ;;  %v1441_v11 = vld [vmem:[#allocation10 + $0x88] sm:$0xff] }
 0x6bb   :  { %7907 = vmatpush3.msra.mxu0 %v1468_v49  ;;  %6952 = vmatprep.subr.mxu1 %v1454_v50  ;;  %v1968_v49 = vld [vmem:[#allocation7 + $0xf0] sm:$0xff]  ;;  %v1425_v50 = vld [vmem:[#allocation10 + $0x8] sm:$0xff] }
 0x6bc   :  { %7908 = vmatprep.subr.mxu0 %v1467_v51  ;;  %6953 = vmatpush3.msra.mxu1 %v1438_v52  ;;  %v1440_v52 = vld [vmem:[#allocation10 + $0x80] sm:$0xff] }
 0x6bd   :  { %7909 = vmatpush3.msra.mxu0 %v1467_v51  ;;  %6954 = vmatprep.subr.mxu1 %v1453_v12  ;;  %v1967_v51 = vld [vmem:[#allocation7 + $0xe8] sm:$0xff]  ;;  %v1424_v12 = vld [vmem:[#allocation10] sm:$0xff] }
 0x6be   :  { %7910 = vmatprep.subr.mxu0 %v1466_v53  ;;  %6955 = vmatpush3.msra.mxu1 %v1437_v54  ;;  %v1965_v54 = vld [vmem:[#allocation7 + $0xd8] sm:$0xff] }
 0x6bf   :  { %7911 = vmatpush3.msra.mxu0 %v1466_v53  ;;  %6956 = vmatprep.subr.mxu1 %v1452_v13  ;;  %v1966_v53 = vld [vmem:[#allocation7 + $0xe0] sm:$0xff]  ;;  %v1964_v13 = vld [vmem:[#allocation7 + $0xd0] sm:$0xff] }
 0x6c0   :  { %7912 = vmatprep.subr.mxu0 %v1465_v55  ;;  %6957 = vmatpush3.msra.mxu1 %v1436_v56  ;;  %v1962_v56 = vld [vmem:[#allocation7 + $0xc0] sm:$0xff] }
 0x6c1   :  { %7913 = vmatpush3.msra.mxu0 %v1465_v55  ;;  %6958 = vmatprep.subr.mxu1 %v1451_v57  ;;  %v1963_v55 = vld [vmem:[#allocation7 + $0xc8] sm:$0xff]  ;;  %v1961_v57 = vld [vmem:[#allocation7 + $0xb8] sm:$0xff] }
 0x6c2   :  { %7914 = vmatprep.subr.mxu0 %v1464_v58  ;;  %6959 = vmatpush3.msra.mxu1 %v1435_v59  ;;  %v1959_v59 = vld [vmem:[#allocation7 + $0xa8] sm:$0xff] }
 0x6c3   :  { %7915 = vmatpush3.msra.mxu0 %v1464_v58  ;;  %6960 = vmatprep.subr.mxu1 %v1450_v21  ;;  %v1960_v58 = vld [vmem:[#allocation7 + $0xb0] sm:$0xff]  ;;  %v1958_v21 = vld [vmem:[#allocation7 + $0xa0] sm:$0xff] }
 0x6c4   :  { %7916 = vmatprep.subr.mxu0 %v1463_v60  ;;  %6961 = vmatpush3.msra.mxu1 %v1434_v61  ;;  %v1956_v61 = vld [vmem:[#allocation7 + $0x90] sm:$0xff] }
 0x6c5   :  { %7917 = vmatpush3.msra.mxu0 %v1463_v60  ;;  %6962 = vmatprep.subr.mxu1 %v1449_v62  ;;  %v1957_v60 = vld [vmem:[#allocation7 + $0x98] sm:$0xff]  ;;  %v1955_v62 = vld [vmem:[#allocation7 + $0x88] sm:$0xff] }
 0x6c6   :  { %7918 = vmatprep.subr.mxu0 %v1462_v63  ;;  %6963 = vmatpush3.msra.mxu1 %v1433_v0  ;;  %v1668_v0 = vld [vmem:[%s10287_s15 + $0x78] sm:$0xff] }
 0x6c7   :  { %7919 = vmatpush3.msra.mxu0 %v1462_v63  ;;  %6964 = vmatprep.subr.mxu1 %v1448_v1  ;;  %v1954_v63 = vld [vmem:[#allocation7 + $0x80] sm:$0xff] }
 0x6c8   :  { %7920 = vmatprep.subr.mxu0 %v1461_v2  ;;  %6965 = vmatpush3.msra.mxu1 %v1432_v9 }
 0x6c9   :  { %7921 = vmatpush3.msra.mxu0 %v1461_v2  ;;  %6966 = vmatprep.subr.mxu1 %v1447_v10 }
 0x6ca   :  { %7922 = vmatprep.subr.mxu0 %v1460_v17  ;;  %6967 = vmatpush3.msra.mxu1 %v1431_v7 }
 0x6cb   :  { %7923 = vmatpush3.msra.mxu0 %v1460_v17  ;;  %6968 = vmatprep.subr.mxu1 %v1446_v22  ;;  %v1667_v17 = vld [vmem:[%s10287_s15 + $0x70] sm:$0xff] }
 0x6cc   :  { %7924 = vmatprep.subr.mxu0 %v1459_v23  ;;  %6969 = vmatpush3.msra.mxu1 %v1430_v24  ;;  %v1665_v24 = vld [vmem:[%s10287_s15 + $0x60] sm:$0xff] }
 0x6cd   :  { %7925 = vmatpush3.msra.mxu0 %v1459_v23  ;;  %6970 = vmatprep.subr.mxu1 %v1445_v25 }
 0x6ce   :  { %7926 = vmatprep.subr.mxu0 %v1458_v26  ;;  %6971 = vmatpush3.msra.mxu1 %v1429_v27  ;;  %v1663_v27 = vld [vmem:[%s10287_s15 + $0x50] sm:$0xff] }
 0x6cf   :  { %7927 = vmatpush3.msra.mxu0 %v1458_v26  ;;  %6972 = vmatprep.subr.mxu1 %v1444_v28  ;;  %v1664_v26 = vld [vmem:[%s10287_s15 + $0x58] sm:$0xff]  ;;  %v1662_v28 = vld [vmem:[%s10287_s15 + $0x48] sm:$0xff] }
 0x6d0   :  { %7928 = vmatprep.subr.mxu0 %v1457_v29  ;;  %6973 = vmatpush3.msra.mxu1 %v1428_v31  ;;  %v1660_v31 = vld [vmem:[%s10287_s15 + $0x38] sm:$0xff] }
 0x6d1   :  { %7929 = vmatpush3.msra.mxu0 %v1457_v29  ;;  %6974 = vmatprep.subr.mxu1 %v1443_v32  ;;  %v1661_v29 = vld [vmem:[%s10287_s15 + $0x40] sm:$0xff]  ;;  %v1659_v32 = vld [vmem:[%s10287_s15 + $0x30] sm:$0xff] }
 0x6d2   :  { %7930 = vmatprep.subr.mxu0 %v1456_v33  ;;  %6975 = vmatpush3.msra.mxu1 %v1427_v34  ;;  %v1657_v34 = vld [vmem:[%s10287_s15 + $0x20] sm:$0xff] }
 0x6d3   :  { %7931 = vmatpush3.msra.mxu0 %v1456_v33  ;;  %6976 = vmatprep.subr.mxu1 %v1442_v35  ;;  %v1658_v33 = vld [vmem:[%s10287_s15 + $0x28] sm:$0xff]  ;;  %v1656_v35 = vld [vmem:[%s10287_s15 + $0x18] sm:$0xff] }
 0x6d4   :  { %7933 = vmatmul.mubr.f32.vlgmr.msra.gmra.mxu0 %v9337_v3  ;;  %7976 = vmatprep.subr.mxu0 %v1785_v36  ;;  %v1779_v3 = vld [vmem:[#allocation2 + $0xc8] sm:$0xff] }
 0x6d5   :  { %7977 = vmatpush3.msra.mxu0 %v1785_v36  ;;  %7935 = vmatprep.mubr.f32.mxu0 %v9342_v4  ;;  %v1778_v4 = vld [vmem:[#allocation2 + $0xc0] sm:$0xff] }
 0x6d6   :  { %7978 = vmatprep.subr.mxu0 %v1784_v37  ;;  %6977 = vmatpush3.msra.mxu1 %v1426_v38  ;;  %v1654_v38 = vld [vmem:[%s10287_s15 + $0x8] sm:$0xff] }
 0x6d7   :  { %7979 = vmatpush3.msra.mxu0 %v1784_v37  ;;  %6978 = vmatprep.subr.mxu1 %v1441_v11  ;;  %v1655_v37 = vld [vmem:[%s10287_s15 + $0x10] sm:$0xff] }
 0x6d8   :  { %7936 = vmatmul.mubr.f32.gmra.mxu0 %v9349_v6  ;;  %7980 = vmatprep.subr.mxu0 %v1783_v39  ;;  %v1776_v6 = vld [vmem:[#allocation2 + $0xb0] sm:$0xff] }
 0x6d9   :  { %7981 = vmatpush3.msra.mxu0 %v1783_v39  ;;  %8008 = vmatprep.mubr.f32.mxu0 %v9488_v48 }
 0x6da   :  { %7982 = vmatprep.subr.mxu0 %v1782_v40  ;;  %6979 = vmatpush3.msra.mxu1 %v1425_v50 }
 0x6db   :  { %7983 = vmatpush3.msra.mxu0 %v1782_v40  ;;  %6980 = vmatprep.subr.mxu1 %v1440_v52  ;;  %v1653_v40 = vld [vmem:[%s10287_s15] sm:$0xff] }
 0x6dc   :  { %7984 = vmatprep.subr.mxu0 %v1781_v41  ;;  %6981 = vmatpush3.msra.mxu1 %v1424_v12 }
 0x6dd   :  { %7985 = vmatpush3.msra.mxu0 %v1781_v41  ;;  %7938 = vmatprep.subr.mxu1 %v1668_v0  ;;  %v1877_v41 = vld [vmem:[#allocation5 + $0xf8] sm:$0xff] }
 0x6de   :  { %7986 = vmatprep.subr.mxu0 %v1780_v42 }
 0x6df   :  { %7987 = vmatpush3.msra.mxu0 %v1780_v42 }
 0x6e0   :  { %7988 = vmatprep.subr.mxu0 %v1779_v3 }
 0x6e1   :  { %7989 = vmatpush3.msra.mxu0 %v1779_v3 }
 0x6e2   :  { %7990 = vmatprep.subr.mxu0 %v1778_v4 }
 0x6e3   :  { %7991 = vmatpush3.msra.mxu0 %v1778_v4 }
 0x6e4   :  { %7992 = vmatprep.subr.mxu0 %v1777_v43 }
 0x6e5   :  { %7993 = vmatpush3.msra.mxu0 %v1777_v43 }
 0x6e6   :  { %7994 = vmatprep.subr.mxu0 %v1776_v6 }
 0x6e7   :  { %7995 = vmatpush3.msra.mxu0 %v1776_v6 }
 0x6e8   :  { %7996 = vmatprep.subr.mxu0 %v1775_v44 }
 0x6e9   :  { %7997 = vmatpush3.msra.mxu0 %v1775_v44 }
 0x6ea   :  { %7998 = vmatprep.subr.mxu0 %v1774_v46 }
 0x6eb   :  { %7999 = vmatpush3.msra.mxu0 %v1774_v46  ;;  %v9577_v46 = vld [vmem:[%s10299_s5] sm:$0xff] }
 0x6ec   :  { %8000 = vmatprep.subr.mxu0 %v1773_v47 }
 0x6ed   :  { %8001 = vmatpush3.msra.mxu0 %v1773_v47 }
 0x6ee   :  { %8002 = vmatprep.subr.mxu0 %v1772_v14 }
 0x6ef   :  { %8003 = vmatpush3.msra.mxu0 %v1772_v14  ;;  %v6641_v14 = vld [vmem:[%s10286_s14] ss:$0 sm:$0xff] }
 0x6f0   :  { %8004 = vmatprep.subr.mxu0 %v1771_v30 }
 0x6f1   :  { %8005 = vmatpush3.msra.mxu0 %v1771_v30 }
 0x6f2   :  { %8006 = vmatprep.subr.mxu0 %v1770_v15 }
 0x6f3   :  { %8007 = vmatpush3.msra.mxu0 %v1770_v15 }
 0x6f4   :  { %8009 = vmatmul.mubr.f32.vlgmr.msra.gmra.mxu0 %v9481_v45  ;;  %8046 = vmatprep.subr.mxu0 %v1969_v5 }
 0x6f5   :  { %8047 = vmatpush3.msra.mxu0 %v1969_v5  ;;  %8078 = vmatprep.mubr.f32.mxu0 %v9488_v48 }
 0x6f6   :  { %8048 = vmatprep.subr.mxu0 %v1968_v49 }
 0x6f7   :  { %8049 = vmatpush3.msra.mxu0 %v1968_v49 }
 0x6f8   :  { %8050 = vmatprep.subr.mxu0 %v1967_v51 }
 0x6f9   :  { %8051 = vmatpush3.msra.mxu0 %v1967_v51 }
 0x6fa   :  { %8052 = vmatprep.subr.mxu0 %v1966_v53 }
 0x6fb   :  { %8053 = vmatpush3.msra.mxu0 %v1966_v53 }
 0x6fc   :  { %8054 = vmatprep.subr.mxu0 %v1965_v54 }
 0x6fd   :  { %8055 = vmatpush3.msra.mxu0 %v1965_v54 }
 0x6fe   :  { %8056 = vmatprep.subr.mxu0 %v1964_v13 }
 0x6ff   :  { %8057 = vmatpush3.msra.mxu0 %v1964_v13 }
 0x700   :  { %8058 = vmatprep.subr.mxu0 %v1963_v55 }
 0x701   :  { %8059 = vmatpush3.msra.mxu0 %v1963_v55 }
 0x702   :  { %8060 = vmatprep.subr.mxu0 %v1962_v56 }
 0x703   :  { %8061 = vmatpush3.msra.mxu0 %v1962_v56 }
 0x704   :  { %8062 = vmatprep.subr.mxu0 %v1961_v57 }
 0x705   :  { %8063 = vmatpush3.msra.mxu0 %v1961_v57  ;;  %v1876_v57 = vld [vmem:[#allocation5 + $0xf0] sm:$0xff] }
 0x706   :  { %8064 = vmatprep.subr.mxu0 %v1960_v58 }
 0x707   :  { %8065 = vmatpush3.msra.mxu0 %v1960_v58 }
 0x708   :  { %8066 = vmatprep.subr.mxu0 %v1959_v59 }
 0x709   :  { %8067 = vmatpush3.msra.mxu0 %v1959_v59 }
 0x70a   :  { %8068 = vmatprep.subr.mxu0 %v1958_v21 }
 0x70b   :  { %8069 = vmatpush3.msra.mxu0 %v1958_v21  ;;  %v1875_v21 = vld [vmem:[#allocation5 + $0xe8] sm:$0xff] }
 0x70c   :  { %8070 = vmatprep.subr.mxu0 %v1957_v60 }
 0x70d   :  { %8071 = vmatpush3.msra.mxu0 %v1957_v60 }
 0x70e   :  { %8072 = vmatprep.subr.mxu0 %v1956_v61 }
 0x70f   :  { %8073 = vmatpush3.msra.mxu0 %v1956_v61 }
 0x710   :  { %8074 = vmatprep.subr.mxu0 %v1955_v62 }
 0x711   :  { %8075 = vmatpush3.msra.mxu0 %v1955_v62  ;;  %v1874_v62 = vld [vmem:[#allocation5 + $0xe0] sm:$0xff] }
 0x712   :  { %8076 = vmatprep.subr.mxu0 %v1954_v63 }
 0x713   :  { %8077 = vmatpush3.msra.mxu0 %v1954_v63 }
 0x714   :  { %8079 = vmatmul.mubr.f32.vlgmr.msra.gmra.mxu0 %v9481_v45 }
 0x715   :  { %8123 = vmatprep.mubr.msk.f32.mxu0 %vm523_vm0, %v9362_v8  ;;  %v1666_v8 = vld [vmem:[%s10287_s15 + $0x68] sm:$0xff] }
 0x773   :  { %v7886_v1 = vpop.f32.mrf.mxu1  ;;  %v7896_v2 = vpop.f32.mrf.mxu0 }
 0x775   :  { %v1320_v9 = vpop.f32.mrf.mxu1  ;;  %v1405_v10 = vpop.f32.mrf.mxu0 }
 0x776   :  { %1543 = vmatprep.mubr.f32.mxu1 %v1405_v10  ;;  %v1870_v10 = vld [vmem:[#allocation5 + $0xc0] sm:$0xff] }
 0x777   :  { %1544 = vmatmul.mubr.f32.vlgmr.msra.gmra.mxu1 %v1320_v9  ;;  %v7889_v22 = vpop.f32.mrf.mxu1  ;;  %v1871_v9 = vld [vmem:[#allocation5 + $0xc8] sm:$0xff] }
 0x778   :  { %1548 = vmatprep.mubr.f32.mxu1 %v7896_v2  ;;  %v7899_v7 = vpop.f32.mrf.mxu0  ;;  %7939 = vmatpush3.msra.mxu1 %v1668_v0  ;;  %v1873_v0 = vld [vmem:[#allocation5 + $0xd8] sm:$0xff]  ;;  %v1872_v2 = vld [vmem:[#allocation5 + $0xd0] sm:$0xff] }
 0x779   :  { %7940 = vmatprep.subr.mxu1 %v1667_v17  ;;  %v1330_v25 = vpop.f32.mrf.mxu1 }
 0x77a   :  { %v1415_v23 = vpop.f32.mrf.mxu0  ;;  %7941 = vmatpush3.msra.mxu1 %v1667_v17  ;;  %v1869_v17 = vld [vmem:[#allocation5 + $0xb8] sm:$0xff] }
 0x77b   :  { %1549 = vmatmul.mubr.f32.gmra.mxu1 %v7886_v1  ;;  %7942 = vmatprep.subr.mxu1 %v1666_v8 }
 0x77c   :  { %1553 = vmatprep.mubr.f32.mxu1 %v1415_v23  ;;  %7943 = vmatpush3.msra.mxu1 %v1666_v8  ;;  %v1866_v8 = vld [vmem:[#allocation5 + $0xa0] sm:$0xff]  ;;  %v1865_v23 = vld [vmem:[#allocation5 + $0x98] sm:$0xff] }
 0x77d   :  { %7944 = vmatprep.subr.mxu1 %v1665_v24 }
 0x77e   :  { %7945 = vmatpush3.msra.mxu1 %v1665_v24  ;;  %v1864_v24 = vld [vmem:[#allocation5 + $0x90] sm:$0xff] }
 0x77f   :  { %1554 = vmatmul.mubr.f32.gmra.mxu1 %v1330_v25  ;;  %7946 = vmatprep.subr.mxu1 %v1664_v26  ;;  %v1863_v25 = vld [vmem:[#allocation5 + $0x88] sm:$0xff] }
 0x780   :  { %1558 = vmatprep.mubr.f32.mxu1 %v7899_v7  ;;  %7947 = vmatpush3.msra.mxu1 %v1664_v26  ;;  %v1868_v7 = vld [vmem:[#allocation5 + $0xb0] sm:$0xff]  ;;  %v1862_v26 = vld [vmem:[#allocation5 + $0x80] sm:$0xff] }
 0x781   :  { %7948 = vmatprep.subr.mxu1 %v1663_v27 }
 0x782   :  { %7949 = vmatpush3.msra.mxu1 %v1663_v27  ;;  %v2061_v27 = vld [vmem:[#allocation8 + $0xf8] sm:$0xff] }
 0x783   :  { %1559 = vmatmul.mubr.f32.gmra.mxu1 %v7889_v22  ;;  %7950 = vmatprep.subr.mxu1 %v1662_v28  ;;  %v1867_v22 = vld [vmem:[#allocation5 + $0xa8] sm:$0xff] }
 0x784   :  { %7951 = vmatpush3.msra.mxu1 %v1662_v28  ;;  %v2060_v28 = vld [vmem:[#allocation8 + $0xf0] sm:$0xff] }
 0x785   :  { %7952 = vmatprep.subr.mxu1 %v1661_v29 }
 0x786   :  { %7953 = vmatpush3.msra.mxu1 %v1661_v29  ;;  %v2059_v29 = vld [vmem:[#allocation8 + $0xe8] sm:$0xff] }
 0x787   :  { %7954 = vmatprep.subr.mxu1 %v1660_v31 }
 0x788   :  { %7955 = vmatpush3.msra.mxu1 %v1660_v31  ;;  %v2058_v31 = vld [vmem:[#allocation8 + $0xe0] sm:$0xff] }
 0x789   :  { %7956 = vmatprep.subr.mxu1 %v1659_v32 }
 0x78a   :  { %7957 = vmatpush3.msra.mxu1 %v1659_v32  ;;  %v2057_v32 = vld [vmem:[#allocation8 + $0xd8] sm:$0xff] }
 0x78b   :  { %7958 = vmatprep.subr.mxu1 %v1658_v33 }
 0x78c   :  { %7959 = vmatpush3.msra.mxu1 %v1658_v33  ;;  %v2056_v33 = vld [vmem:[#allocation8 + $0xd0] sm:$0xff] }
 0x78d   :  { %7960 = vmatprep.subr.mxu1 %v1657_v34 }
 0x78e   :  { %7961 = vmatpush3.msra.mxu1 %v1657_v34  ;;  %v2055_v34 = vld [vmem:[#allocation8 + $0xc8] sm:$0xff] }
 0x78f   :  { %7962 = vmatprep.subr.mxu1 %v1656_v35 }
 0x790   :  { %7963 = vmatpush3.msra.mxu1 %v1656_v35  ;;  %v2054_v35 = vld [vmem:[#allocation8 + $0xc0] sm:$0xff] }
 0x791   :  { %7964 = vmatprep.subr.mxu1 %v1655_v37 }
 0x792   :  { %7965 = vmatpush3.msra.mxu1 %v1655_v37  ;;  %v2052_v37 = vld [vmem:[#allocation8 + $0xb0] sm:$0xff] }
 0x793   :  { %7966 = vmatprep.subr.mxu1 %v1654_v38 }
 0x794   :  { %v7934_v36 = vpop.f32.mrf.mxu0  ;;  %7967 = vmatpush3.msra.mxu1 %v1654_v38  ;;  %v2051_v38 = vld [vmem:[#allocation8 + $0xa8] sm:$0xff] }
 0x795   :  { %7968 = vmatprep.subr.mxu1 %v1653_v40 }
 0x796   :  { %v1630_v39 = vpop.f32.mrf.mxu0  ;;  %7969 = vmatpush3.msra.mxu1 %v1653_v40  ;;  %v2049_v40 = vld [vmem:[#allocation8 + $0x98] sm:$0xff] }
 0x797   :  { %8011 = vmatprep.subr.mxu1 %v1877_v41 }
 0x798   :  { %v7937_v42 = vpop.f32.mrf.mxu0 }
 0x79a   :  { %v1640_v3 = vpop.f32.mrf.mxu0 }
 0x7b4   :  { %v9564_v4 = vpop.f32.mrf.mxu0 }
 0x7b6   :  { %v9566_v43 = vpop.f32.mrf.mxu0 }
 0x7d4   :  { %v8080_v6 = vpop.f32.mrf.mxu0 }
 0x7d5   :  { %8119 = vmatprep.subr.mxu0 %v8080_v6 }
 0x7d6   :  { %v2036_v44 = vpop.f32.mrf.mxu0  ;;  %8120 = vmatpush3.msra.mxu0 %v8080_v6  ;;  %v6642_v6 = vld [vmem:[%s10288_s16] ss:$0 sm:$0xff] }
 0x7d7   :  { %8121 = vmatprep.subr.mxu0 %v2036_v44 }
 0x7d8   :  { %8122 = vmatpush3.msra.mxu0 %v2036_v44 }
 0x7d9   :  { %8124 = vmatmul.mubr.msk.f32.vlgmr.msra.gmra.mxu0 %vm523_vm0, %v9396_v18 }
 0x7da   :  { %8126 = vmatprep.mubr.msk.f32.mxu0 %vm523_vm0, %v9401_v19 }
 0x7dd   :  { %8127 = vmatmul.mubr.msk.f32.gmra.mxu0 %vm523_vm0, %v9410_v20 }
 0x7de   :  { %8133 = vmatprep.mubr.msk.f32.mxu0 %vm523_vm0, %v9577_v46 }
 0x837   :  { %v6982_v47 = vpop.f32.mrf.mxu1 }
 0x839   :  { %v6983_v18 = vpop.f32.mrf.mxu1 }
 0x83a   :  { %v6984_v30 = vadd.f32 %v6983_v18, %v6982_v47 }
 0x83b   :  { %v6985_v15 = vpop.f32.mrf.mxu1 }
 0x83c   :  { %v1546_v19 = vadd.f32 %v6984_v30, %v6641_v14  ;;  %v8994_v30 = vld [vmem:[%s10298_s6 + $0x8] sm:$0xff] }
 0x83d   :  { %v6986_v5 = vpop.f32.mrf.mxu1 }
 0x83e   :  { %v6987_v49 = vadd.f32 %v6986_v5, %v6985_v15  ;;  %v1631_v20 = vadd.f32 %v1630_v39, %v1546_v19  ;;  %v2050_v39 = vld [vmem:[#allocation8 + $0xa0] sm:$0xff]  ;;  %v8995_v19 = vld [vmem:[%s10298_s6] sm:$0xff] }
 0x83f   :  { %v6988_v11 = vpop.f32.mrf.mxu1 }
 0x840   :  { %v1551_v50 = vadd.f32 %v6987_v49, %v6641_v14  ;;  %v1649_v51 = vmax.f32 %v1631_v20, 0.0 }
 0x841   :  { %v6989_v52 = vpop.f32.mrf.mxu1 }
 0x842   :  { %v1636_v12 = vadd.f32 %v7934_v36, %v1551_v50  ;;  %v6990_v53 = vadd.f32 %v6989_v52, %v6988_v11  ;;  %7970 = vmatprep.mubr.f32.mxu1 %v1649_v51  ;;  %v2053_v36 = vld [vmem:[#allocation8 + $0xb8] sm:$0xff]  ;;  %v8996_v52 = vld [vmem:[%s10298_s6 + $0x18] sm:$0xff] }
 0x843   :  { %v6991_v54 = vpop.f32.mrf.mxu1 }
 0x844   :  { %v1650_v13 = vmax.f32 %v1636_v12, 0.0  ;;  %v1556_v55 = vadd.f32 %v6990_v53, %v6641_v14 }
 0x845   :  { %v6992_v56 = vpop.f32.mrf.mxu1 }
 0x846   :  { %v6993_v58 = vadd.f32 %v6992_v56, %v6991_v54  ;;  %7971 = vmatmul.mubr.f32.vlgmr.msra.gmra.mxu1 %v1650_v13  ;;  %v1641_v59 = vadd.f32 %v1640_v3, %v1556_v55  ;;  %v2046_v3 = vld [vmem:[#allocation8 + $0x80] sm:$0xff] }
 0x847   :  { %8012 = vmatpush3.msra.mxu1 %v1877_v41  ;;  %v2048_v41 = vld [vmem:[#allocation8 + $0x90] sm:$0xff]  ;;  %v8997_v54 = vld [vmem:[%s10298_s6 + $0x10] sm:$0xff] }
 0x848   :  { %v1561_v60 = vadd.f32 %v6993_v58, %v6641_v14  ;;  %8013 = vmatprep.subr.mxu1 %v1876_v57  ;;  %v1651_v61 = vmax.f32 %v1641_v59, 0.0  ;;  %v9643_v58 = vld [vmem:[%s10275_s3] sm:$0xff] }
 0x849   :  { %8014 = vmatpush3.msra.mxu1 %v1876_v57  ;;  %v9636_v57 = vld [vmem:[%s10299_s5 + $0x18] sm:$0xff] }
 0x84a   :  { %8015 = vmatprep.subr.mxu1 %v1875_v21  ;;  %7973 = vmatprep.mubr.f32.mxu1 %v1651_v61  ;;  %v1646_v63 = vadd.f32 %v7937_v42, %v1561_v60  ;;  %v2047_v42 = vld [vmem:[#allocation8 + $0x88] sm:$0xff]  ;;  %v9656_v60 = vld [vmem:[%s10276_s4] sm:$0xff] }
 0x84b   :  { %8016 = vmatpush3.msra.mxu1 %v1875_v21 }
 0x84c   :  { %8017 = vmatprep.subr.mxu1 %v1874_v62  ;;  %v1652_v1 = vmax.f32 %v1646_v63, 0.0 }
 0x84d   :  { %8018 = vmatpush3.msra.mxu1 %v1874_v62 }
 0x84e   :  { %8019 = vmatprep.subr.mxu1 %v1873_v0  ;;  %7974 = vmatmul.mubr.f32.gmra.mxu1 %v1652_v1 }
 0x84f   :  { %8020 = vmatpush3.msra.mxu1 %v1873_v0  ;;  %8043 = vmatprep.mubr.f32.mxu1 %v9488_v48 }
 0x850   :  { %8021 = vmatprep.subr.mxu1 %v1872_v2 }
 0x851   :  { %8022 = vmatpush3.msra.mxu1 %v1872_v2 }
 0x852   :  { %8023 = vmatprep.subr.mxu1 %v1871_v9 }
 0x853   :  { %8024 = vmatpush3.msra.mxu1 %v1871_v9 }
 0x854   :  { %8025 = vmatprep.subr.mxu1 %v1870_v10 }
 0x855   :  { %8026 = vmatpush3.msra.mxu1 %v1870_v10 }
 0x856   :  { %8027 = vmatprep.subr.mxu1 %v1869_v17 }
 0x857   :  { %8028 = vmatpush3.msra.mxu1 %v1869_v17 }
 0x858   :  { %8029 = vmatprep.subr.mxu1 %v1868_v7 }
 0x859   :  { %8030 = vmatpush3.msra.mxu1 %v1868_v7 }
 0x85a   :  { %8031 = vmatprep.subr.mxu1 %v1867_v22 }
 0x85b   :  { %8032 = vmatpush3.msra.mxu1 %v1867_v22 }
 0x85c   :  { %8033 = vmatprep.subr.mxu1 %v1866_v8 }
 0x85d   :  { %8034 = vmatpush3.msra.mxu1 %v1866_v8 }
 0x85e   :  { %8035 = vmatprep.subr.mxu1 %v1865_v23 }
 0x85f   :  { %8036 = vmatpush3.msra.mxu1 %v1865_v23 }
 0x860   :  { %8037 = vmatprep.subr.mxu1 %v1864_v24 }
 0x861   :  { %8038 = vmatpush3.msra.mxu1 %v1864_v24 }
 0x862   :  { %8039 = vmatprep.subr.mxu1 %v1863_v25 }
 0x863   :  { %8040 = vmatpush3.msra.mxu1 %v1863_v25 }
 0x864   :  { %8041 = vmatprep.subr.mxu1 %v1862_v26 }
 0x865   :  { %8042 = vmatpush3.msra.mxu1 %v1862_v26 }
 0x866   :  { %8044 = vmatmul.mubr.f32.vlgmr.msra.gmra.mxu1 %v9481_v45  ;;  %8081 = vmatprep.subr.mxu1 %v2061_v27 }
 0x867   :  { %8082 = vmatpush3.msra.mxu1 %v2061_v27 }
 0x868   :  { %8083 = vmatprep.subr.mxu1 %v2060_v28 }
 0x869   :  { %8084 = vmatpush3.msra.mxu1 %v2060_v28 }
 0x86a   :  { %8085 = vmatprep.subr.mxu1 %v2059_v29 }
 0x86b   :  { %8086 = vmatpush3.msra.mxu1 %v2059_v29 }
 0x86c   :  { %8087 = vmatprep.subr.mxu1 %v2058_v31 }
 0x86d   :  { %8088 = vmatpush3.msra.mxu1 %v2058_v31 }
 0x86e   :  { %8089 = vmatprep.subr.mxu1 %v2057_v32 }
 0x86f   :  { %8090 = vmatpush3.msra.mxu1 %v2057_v32 }
 0x870   :  { %8091 = vmatprep.subr.mxu1 %v2056_v33 }
 0x871   :  { %8092 = vmatpush3.msra.mxu1 %v2056_v33 }
 0x872   :  { %8093 = vmatprep.subr.mxu1 %v2055_v34 }
 0x873   :  { %8094 = vmatpush3.msra.mxu1 %v2055_v34 }
 0x874   :  { %8095 = vmatprep.subr.mxu1 %v2054_v35 }
 0x875   :  { %8096 = vmatpush3.msra.mxu1 %v2054_v35 }
 0x876   :  { %8097 = vmatprep.subr.mxu1 %v2053_v36 }
 0x877   :  { %8098 = vmatpush3.msra.mxu1 %v2053_v36 }
 0x878   :  { %8099 = vmatprep.subr.mxu1 %v2052_v37 }
 0x879   :  { %8100 = vmatpush3.msra.mxu1 %v2052_v37 }
 0x87a   :  { %8101 = vmatprep.subr.mxu1 %v2051_v38 }
 0x87b   :  { %8102 = vmatpush3.msra.mxu1 %v2051_v38 }
 0x87c   :  { %8103 = vmatprep.subr.mxu1 %v2050_v39 }
 0x87d   :  { %8104 = vmatpush3.msra.mxu1 %v2050_v39 }
 0x87e   :  { %8105 = vmatprep.subr.mxu1 %v2049_v40 }
 0x87f   :  { %8106 = vmatpush3.msra.mxu1 %v2049_v40 }
 0x880   :  { %8107 = vmatprep.subr.mxu1 %v2048_v41 }
 0x881   :  { %8108 = vmatpush3.msra.mxu1 %v2048_v41 }
 0x882   :  { %8109 = vmatprep.subr.mxu1 %v2047_v42 }
 0x883   :  { %8110 = vmatpush3.msra.mxu1 %v2047_v42 }
 0x884   :  { %8111 = vmatprep.subr.mxu1 %v2046_v3 }
 0x885   :  { %8112 = vmatpush3.msra.mxu1 %v2046_v3 }
 0x886   :  { %8168 = vmatprep.subr.mxu1 %v9564_v4 }
 0x899   :  { %v8125_v61 = vpop.f32.mrf.mxu0 }
 0x89b   :  { %v2213_v62 = vpop.f32.mrf.mxu0 }
 0x89d   :  { %v8128_v63 = vpop.f32.mrf.mxu0 }
 0x89f   :  { %v2223_v0 = vpop.f32.mrf.mxu0 }
 0x906   :  { %v7972_v44 = vpop.f32.mrf.mxu1 }
 0x907   :  { %v1748_v47 = vadd.f32 %v7972_v44, %v6642_v6 }
 0x908   :  { %v1742_v14 = vpop.f32.mrf.mxu1 }
 0x909   :  { %v1743_v18 = vadd.f32 %v6642_v6, %v1742_v14  ;;  %v1762_v15 = vadd.f32 %v8994_v30, %v1748_v47 }
 0x90b   :  { %v1761_v5 = vadd.f32 %v8995_v19, %v1743_v18  ;;  %v9598_v20 = vmax.f32 %v1762_v15, 0.0 }
 0x90d   :  { %v9596_v49 = vmax.f32 %v1761_v5, 0.0 }
 0x90e   :  { %v7975_v11 = vpop.f32.mrf.mxu1 }
 0x90f   :  { %8113 = vmatprep.mubr.f32.mxu1 %v9596_v49  ;;  %v1758_v50 = vadd.f32 %v7975_v11, %v6642_v6 }
 0x910   :  { %8114 = vmatmul.mubr.f32.vlgmr.msra.gmra.mxu1 %v9598_v20  ;;  %v1752_v51 = vpop.f32.mrf.mxu1 }
 0x911   :  { %8169 = vmatpush3.msra.mxu1 %v9564_v4  ;;  %v1764_v12 = vadd.f32 %v8996_v52, %v1758_v50  ;;  %v1753_v53 = vadd.f32 %v6642_v6, %v1752_v51  ;;  %v9622_v4 = vld [vmem:[%s10299_s5 + $0x8] sm:$0xff] }
 0x912   :  { %8170 = vmatprep.subr.mxu1 %v9566_v43 }
 0x913   :  { %8171 = vmatpush3.msra.mxu1 %v9566_v43  ;;  %v1763_v13 = vadd.f32 %v8997_v54, %v1753_v53  ;;  %v9611_v55 = vmax.f32 %v1764_v12, 0.0  ;;  %v9629_v43 = vld [vmem:[%s10299_s5 + $0x10] sm:$0xff] }
 0x915   :  { %v9613_v56 = vmax.f32 %v1763_v13, 0.0 }
 0x917   :  { %8116 = vmatprep.mubr.f32.mxu1 %v9613_v56 }
 0x918   :  { %8117 = vmatmul.mubr.f32.gmra.mxu1 %v9611_v55 }
 0x919   :  { %8172 = vmatprep.mubr.msk.f32.mxu1 %vm523_vm0, %v9577_v46 }
 0x91c   :  { %8173 = vmatmul.mubr.msk.f32.vlgmr.msra.gmra.mxu1 %vm523_vm0, %v9622_v4 }
 0x91d   :  { %8175 = vmatprep.mubr.msk.f32.mxu1 %vm523_vm0, %v9629_v43 }
 0x920   :  { %8176 = vmatmul.mubr.msk.f32.gmra.mxu1 %vm523_vm0, %v9636_v57 }
 0x921   :  { %8203 = vmatprep.mubr.msk.f32.mxu1 %vm523_vm0, %v9643_v58 }
 0x926   :  { %v8045_v59 = vpop.f32.mrf.mxu1 }
 0x927   :  { %8129 = vmatprep.subr.mxu0 %v8045_v59 }
 0x928   :  { %v1944_v21 = vpop.f32.mrf.mxu1  ;;  %8130 = vmatpush3.msra.mxu0 %v8045_v59 }
 0x929   :  { %8131 = vmatprep.subr.mxu0 %v1944_v21 }
 0x92a   :  { %8132 = vmatpush3.msra.mxu0 %v1944_v21 }
 0x92b   :  { %8134 = vmatmul.mubr.msk.f32.vlgmr.msra.gmra.mxu0 %vm523_vm0, %v9622_v4 }
 0x92c   :  { %8136 = vmatprep.mubr.msk.f32.mxu0 %vm523_vm0, %v9629_v43 }
 0x92f   :  { %8137 = vmatmul.mubr.msk.f32.gmra.mxu0 %vm523_vm0, %v9636_v57 }
 0x930   :  { %8147 = vmatprep.mubr.msk.f32.mxu0 %vm760_vm1, %v9656_v60 }
 0x9d0   :  { %v8115_v1 = vpop.f32.mrf.mxu1 }
 0x9d2   :  { %v2128_v17 = vpop.f32.mrf.mxu1 }
 0x9d8   :  { %v8118_v23 = vpop.f32.mrf.mxu1 }
 0x9da   :  { %v2138_v32 = vpop.f32.mrf.mxu1 }
 0x9eb   :  { %v8135_v2 = vpop.f32.mrf.mxu0 }
 0x9ec   :  { %v2304_v9 = vadd.f32 %v8135_v2, %v8125_v61  ;;  %v9676_v2 = vld [vmem:[%s10275_s3 + $0x8] sm:$0xff] }
 0x9ed   :  { %v2298_v10 = vpop.f32.mrf.mxu0 }
 0x9ee   :  { %v2299_v7 = vadd.f32 %v2298_v10, %v2213_v62  ;;  %v2318_v22 = vadd.f32 %v8115_v1, %v2304_v9  ;;  %v9683_v9 = vld [vmem:[%s10275_s3 + $0x10] sm:$0xff]  ;;  %v9690_v10 = vld [vmem:[%s10275_s3 + $0x18] sm:$0xff] }
 0x9ef   :  { %v8138_v8 = vpop.f32.mrf.mxu0 }
 0x9f0   :  { %v2317_v24 = vadd.f32 %v2299_v7, %v2128_v17  ;;  %v2314_v25 = vadd.f32 %v8138_v8, %v8128_v63  ;;  %v2326_v29 = vmul.f32 0.2, %v2318_v22  ;;  %vm2322_vm10 = vcmp.gt.f32.partialorder %v2318_v22, 0.0  ;;  %v9667_v63 = vld [vmem:[%s10276_s4 + $0x8] sm:$0xff]  ;;  %v6657_v17 = vld [vmem:[%s10281_s9 + $0x4] sm:$0xf] }
 0x9f1   :  { %v2308_v26 = vpop.f32.mrf.mxu0 }
 0x9f2   :  { %vm2321_vm9 = vcmp.gt.f32.partialorder %v2317_v24, 0.0  ;;  %v2325_v27 = vmul.f32 0.2, %v2317_v24  ;;  %v2320_v28 = vadd.f32 %v8118_v23, %v2314_v25  ;;  %v2309_v31 = vadd.f32 %v2308_v26, %v2223_v0 }
 0x9f3   :  { %v2330_v36 = vsel %vm2322_vm10, %v2318_v22, %v2326_v29 }
 0x9f4   :  { %vm2324_vm11 = vcmp.gt.f32.partialorder %v2320_v28, 0.0  ;;  %v2328_v33 = vmul.f32 0.2, %v2320_v28  ;;  %v2329_v34 = vsel %vm2321_vm9, %v2317_v24, %v2325_v27  ;;  %v2319_v35 = vadd.f32 %v2309_v31, %v2138_v32 }
 0x9f5   :  { %v2333_v39 = vsel %vm734_vm5, %v2329_v34, -inf  ;;  %v2334_v41 = vsel %vm734_vm5, %v2330_v36, -inf }
 0x9f6   :  { %v2332_v37 = vsel %vm2324_vm11, %v2320_v28, %v2328_v33  ;;  %vm2323_vm12 = vcmp.gt.f32.partialorder %v2319_v35, 0.0  ;;  %v2327_v38 = vmul.f32 0.2, %v2319_v35  ;;  %v2337_v6 = vmax.f32 %v2333_v39, %v2334_v41 }
 0x9f7   :  { %v2336_v42 = vsel %vm734_vm5, %v2332_v37, -inf }
 0x9f8   :  { %v2331_v40 = vsel %vm2323_vm12, %v2319_v35, %v2327_v38 }
 0x9f9   :  { %v2335_v3 = vsel %vm734_vm5, %v2331_v40, -inf }
 0x9fa   :  { %v2338_v44 = vmax.f32 %v2335_v3, %v2336_v42 }
 0x9fc   :  { %v2339_v47 = vmax.f32 %v2337_v6, %v2338_v44 }
 0x9fe   :  { %v2340_v14 = vrot.slane %v2339_v47, 4 }
 0xa00   :  { %v2341_v18 = vmax.f32 %v2339_v47, %v2340_v14 }
 0xa02   :  { %v2342_v30 = vrot.slane %v2341_v18, 2 }
 0xa04   :  { %v2343_v15 = vmax.f32 %v2341_v18, %v2342_v30 }
 0xa06   :  { %v2344_v19 = vrot.slane %v2343_v15, 1 }
 0xa08   :  { %v2345_v5 = vmax.f32 %v2343_v15, %v2344_v19 }
 0xa0a   :  { %v2349_v11 = vsub.f32 %v2332_v37, %v2345_v5  ;;  %v2348_v50 = vsub.f32 %v2331_v40, %v2345_v5  ;;  %v2347_v51 = vsub.f32 %v2330_v36, %v2345_v5  ;;  %v2346_v12 = vsub.f32 %v2329_v34, %v2345_v5  ;;  %v8174_v37 = vpop.f32.mrf.mxu1 }
 0xa0c   :  { %v2356_v52 = vmul.f32 1.442695, %v2349_v11  ;;  %v2354_v53 = vmul.f32 1.442695, %v2348_v50  ;;  %v2352_v54 = vmul.f32 1.442695, %v2347_v51  ;;  %v2694_v38 = vpop.f32.mrf.mxu1 }
 0xa0d   :  { %v2350_v13 = vmul.f32 1.442695, %v2346_v12 }
 0xa0e   :  { %8933 = vpow2.f32 %v2356_v52  ;;  %v8177_v41 = vpop.f32.mrf.mxu1 }
 0xa0f   :  { %8935 = vpow2.f32 %v2354_v53 }
 0xa10   :  { %8937 = vpow2.f32 %v2352_v54  ;;  %v2704_v6 = vpop.f32.mrf.mxu1 }
 0xa11   :  { %8939 = vpow2.f32 %v2350_v13 }
 0xa1b   :  { %v8934_v59 = vpop.eup %8933 }
 0xa1c   :  { %8139 = vmatprep.subr.mxu0 %v8934_v59  ;;  %v8936_v21 = vpop.eup %8935 }
 0xa1d   :  { %8140 = vmatpush3.msra.mxu0 %v8934_v59  ;;  %v8938_v61 = vpop.eup %8937 }
 0xa1e   :  { %8141 = vmatprep.subr.mxu0 %v8936_v21  ;;  %v8940_v62 = vpop.eup %8939 }
 0xa1f   :  { %8142 = vmatpush3.msra.mxu0 %v8936_v21 }
 0xa20   :  { %8143 = vmatprep.subr.mxu0 %v8938_v61 }
 0xa21   :  { %8144 = vmatpush3.msra.mxu0 %v8938_v61 }
 0xa22   :  { %8145 = vmatprep.subr.mxu0 %v8940_v62 }
 0xa23   :  { %8146 = vmatpush3.msra.mxu0 %v8940_v62 }
 0xa24   :  { %8148 = vmatmul.mubr.msk.f32.vlgmr.msra.gmra.mxu0 %vm760_vm1, %v9667_v63 }
 0xa25   :  { %8154 = vmatprep.mubr.msk.f32.mxu0 %vm523_vm0, %v9643_v58 }
 0xae4   :  { %v8149_v0 = vpop.f32.mrf.mxu0 }
 0xae5   :  { %8150 = vmatprep.subr.mxu0 %v8149_v0 }
 0xae6   :  { %v2424_v1 = vpop.f32.mrf.mxu0  ;;  %8151 = vmatpush3.msra.mxu0 %v8149_v0 }
 0xae7   :  { %8152 = vmatprep.subr.mxu0 %v2424_v1 }
 0xae8   :  { %8153 = vmatpush3.msra.mxu0 %v2424_v1 }
 0xae9   :  { %8155 = vmatmul.mubr.msk.f32.vlgmr.msra.gmra.mxu0 %vm523_vm0, %v9676_v2  ;;  %8160 = vmatprep.subr.msk.mxu0 %vm948_vm7, %v6657_v17 }
 0xaea   :  { %8157 = vmatprep.mubr.msk.f32.mxu0 %vm523_vm0, %v9683_v9  ;;  %8161 = vmatpush3.msk.msra.mxu0 %vm948_vm7, %v6657_v17 }
 0xaed   :  { %8158 = vmatmul.mubr.msk.f32.gmra.mxu0 %vm523_vm0, %v9690_v10 }
 0xba9   :  { %v8156_v7 = vpop.f32.mrf.mxu0 }
 0xbaa   :  { %v2505_v22 = vadd.f32 1e-16, %v8156_v7  ;;  %v6672_v7 = vld [vmem:[%s10283_s11 + $0x1] ss:$0 sm:$0xff] }
 0xbab   :  { %v2499_v8 = vpop.f32.mrf.mxu0 }
 0xbac   :  { %v2500_v23 = vadd.f32 1e-16, %v2499_v8  ;;  %8941 = vrcp.f32 %v2505_v22 }
 0xbad   :  { %v8159_v24 = vpop.f32.mrf.mxu0 }
 0xbae   :  { %8943 = vrcp.f32 %v2500_v23  ;;  %v2515_v25 = vadd.f32 1e-16, %v8159_v24  ;;  %v6674_v23 = vld [vmem:[%s10284_s12 + $0x1] ss:$0 sm:$0xff] }
 0xbaf   :  { %v2509_v26 = vpop.f32.mrf.mxu0 }
 0xbb0   :  { %v2510_v27 = vadd.f32 1e-16, %v2509_v26  ;;  %8945 = vrcp.f32 %v2515_v25 }
 0xbb2   :  { %8947 = vrcp.f32 %v2510_v27 }
 0xbb9   :  { %v8942_v28 = vpop.eup %8941 }
 0xbba   :  { %v2521_v32 = vmul.f32 %v8942_v28, %v8938_v61 }
 0xbbb   :  { %v8944_v29 = vpop.eup %8943 }
 0xbbc   :  { %v2519_v31 = vmul.f32 %v8944_v29, %v8940_v62 }
 0xbbd   :  { %v8946_v33 = vpop.eup %8945 }
 0xbbe   :  { %8162 = vmatprep.mubr.msk.f32.mxu0 %vm734_vm5, %v2519_v31  ;;  %v2525_v36 = vmul.f32 %v8946_v33, %v8934_v59 }
 0xbbf   :  { %v8948_v34 = vpop.eup %8947  ;;  %8163 = vmatmul.mubr.msk.f32.vlgmr.msra.gmra.mxu0 %vm734_vm5, %v2521_v32 }
 0xbc0   :  { %v2523_v35 = vmul.f32 %v8948_v34, %v8936_v21  ;;  %v3066_v34 = vld [vmem:[#allocation10 + $0x2f8] sm:$0xff] }
 0xbc2   :  { %8165 = vmatprep.mubr.msk.f32.mxu0 %vm734_vm5, %v2523_v35  ;;  %v3064_v35 = vld [vmem:[#allocation10 + $0x2e8] sm:$0xff] }
 0xbc3   :  { %8166 = vmatmul.mubr.msk.f32.gmra.mxu0 %vm734_vm5, %v2525_v36  ;;  %v3063_v36 = vld [vmem:[#allocation10 + $0x2e0] sm:$0xff] }
 0xbc4   :  { %8186 = vmatprep.mubr.msk.f32.mxu0 %vm760_vm1, %v9656_v60  ;;  %v6668_v60 = vld [vmem:[%s10282_s10 + $0x1] ss:$0 sm:$0xff] }
 0xc7f   :  { %v8164_v39 = vpop.f32.mrf.mxu0 }
 0xc80   :  { %v2714_v14 = vmul.f32 %v8174_v37, %v8164_v39  ;;  %v3049_v37 = vld [vmem:[#allocation10 + $0x270] sm:$0xff] }
 0xc81   :  { %v2609_v40 = vpop.f32.mrf.mxu0  ;;  %v3033_v39 = vld [vmem:[#allocation10 + $0x1f0] sm:$0xff] }
 0xc82   :  { %v2713_v18 = vmul.f32 %v2694_v38, %v2609_v40  ;;  %v3062_v38 = vld [vmem:[#allocation10 + $0x2d8] sm:$0xff]  ;;  %v3061_v40 = vld [vmem:[#allocation10 + $0x2d0] sm:$0xff] }
 0xc83   :  { %v8167_v42 = vpop.f32.mrf.mxu0 }
 0xc84   :  { %v2716_v3 = vmul.f32 %v8177_v41, %v8167_v42  ;;  %v3032_v41 = vld [vmem:[#allocation10 + $0x1e8] sm:$0xff] }
 0xc85   :  { %v2619_v44 = vpop.f32.mrf.mxu0  ;;  %v3060_v42 = vld [vmem:[#allocation10 + $0x2c8] sm:$0xff] }
 0xc86   :  { %v2715_v47 = vmul.f32 %v2704_v6, %v2619_v44  ;;  %8178 = vmatprep.subr.mxu0 %v2716_v3  ;;  %v3046_v6 = vld [vmem:[#allocation10 + $0x258] sm:$0xff]  ;;  %v3059_v44 = vld [vmem:[#allocation10 + $0x2c0] sm:$0xff] }
 0xc87   :  { %8179 = vmatpush3.msra.mxu0 %v2716_v3  ;;  %v3031_v3 = vld [vmem:[#allocation10 + $0x1e0] sm:$0xff] }
 0xc88   :  { %8180 = vmatprep.subr.mxu0 %v2715_v47 }
 0xc89   :  { %8181 = vmatpush3.msra.mxu0 %v2715_v47  ;;  %v3030_v47 = vld [vmem:[#allocation10 + $0x1d8] sm:$0xff] }
 0xc8a   :  { %8182 = vmatprep.subr.mxu0 %v2714_v14 }
 0xc8b   :  { %8183 = vmatpush3.msra.mxu0 %v2714_v14  ;;  %v3045_v14 = vld [vmem:[#allocation10 + $0x250] sm:$0xff] }
 0xc8c   :  { %8184 = vmatprep.subr.mxu0 %v2713_v18 }
 0xc8d   :  { %8185 = vmatpush3.msra.mxu0 %v2713_v18  ;;  %v3058_v18 = vld [vmem:[#allocation10 + $0x2b8] sm:$0xff] }
 0xc8e   :  { %8187 = vmatmul.mubr.msk.f32.vlgmr.msra.gmra.mxu0 %vm760_vm1, %v9667_v63 }
 0xc8f   :  { %8193 = vmatprep.mubr.msk.f32.mxu0 %vm523_vm0, %v9577_v46 }
 0xd4e   :  { %v8188_v30 = vpop.f32.mrf.mxu0 }
 0xd4f   :  { %v2797_v15 = vadd.f32 %v8188_v30, %v6668_v60  ;;  %v3044_v30 = vld [vmem:[#allocation10 + $0x248] sm:$0xff] }
 0xd50   :  { %v2791_v19 = vpop.f32.mrf.mxu0 }
 0xd51   :  { %v2792_v5 = vadd.f32 %v6668_v60, %v2791_v19  ;;  %2802 = vadd.xlane.f32.xlu0 %v2797_v15  ;;  %v3029_v60 = vld [vmem:[#allocation10 + $0x1d0] sm:$0xff]  ;;  %v3028_v19 = vld [vmem:[#allocation10 + $0x1c8] sm:$0xff] }
 0xd53   :  { %2800 = vadd.xlane.f32.xlu1 %v2792_v5 }
 0xdda   :  { %v2803_v11 = vpop.xlane.xlu0 %2802 }
 0xddb   :  { %v2805_v50 = vmul.f32 0.015625, %v2803_v11  ;;  %v3056_v11 = vld [vmem:[#allocation10 + $0x2a8] sm:$0xff] }
 0xddc   :  { %v2801_v51 = vpop.xlane.xlu1 %2800 }
 0xddd   :  { %v2807_v52 = vsub.f32 %v2797_v15, %v2805_v50  ;;  %v2804_v12 = vmul.f32 0.015625, %v2801_v51  ;;  %v3057_v15 = vld [vmem:[#allocation10 + $0x2b0] sm:$0xff]  ;;  %v3027_v50 = vld [vmem:[#allocation10 + $0x1c0] sm:$0xff]  ;;  %v3042_v51 = vld [vmem:[#allocation10 + $0x238] sm:$0xff] }
 0xddf   :  { %v2806_v53 = vsub.f32 %v2792_v5, %v2804_v12  ;;  %v2809_v54 = vmul.f32 %v9470_v16, %v2807_v52  ;;  %v3043_v5 = vld [vmem:[#allocation10 + $0x240] sm:$0xff]  ;;  %v3026_v12 = vld [vmem:[#allocation10 + $0x1b8] sm:$0xff] }
 0xde0   :  { %v3055_v52 = vld [vmem:[#allocation10 + $0x2a0] sm:$0xff] }
 0xde1   :  { %v2811_v13 = vmul.f32 %v2809_v54, %v2809_v54  ;;  %v2808_v46 = vmul.f32 %v9470_v16, %v2806_v53  ;;  %v3041_v53 = vld [vmem:[#allocation10 + $0x230] sm:$0xff] }
 0xde3   :  { %2814 = vadd.xlane.f32.xlu0 %v2811_v13  ;;  %v2810_v59 = vmul.f32 %v2808_v46, %v2808_v46  ;;  %v3025_v13 = vld [vmem:[#allocation10 + $0x1b0] sm:$0xff] }
 0xde5   :  { %2812 = vadd.xlane.f32.xlu1 %v2810_v59  ;;  %v3053_v59 = vld [vmem:[#allocation10 + $0x290] sm:$0xff] }
 0xe6c   :  { %v2815_v21 = vpop.xlane.xlu0 %2814 }
 0xe6d   :  { %v2817_v61 = vmul.f32 0.015625, %v2815_v21  ;;  %v3024_v21 = vld [vmem:[#allocation10 + $0x1a8] sm:$0xff] }
 0xe6e   :  { %v2813_v62 = vpop.xlane.xlu1 %2812 }
 0xe6f   :  { %v2819_v63 = vadd.f32 1e-05, %v2817_v61  ;;  %v2816_v0 = vmul.f32 0.015625, %v2813_v62  ;;  %v3039_v61 = vld [vmem:[#allocation10 + $0x220] sm:$0xff]  ;;  %v3052_v62 = vld [vmem:[#allocation10 + $0x288] sm:$0xff] }
 0xe71   :  { %8949 = vrsqrt.f32 %v2819_v63  ;;  %v2818_v1 = vadd.f32 1e-05, %v2816_v0  ;;  %v3023_v63 = vld [vmem:[#allocation10 + $0x1a0] sm:$0xff]  ;;  %v3038_v0 = vld [vmem:[#allocation10 + $0x218] sm:$0xff] }
 0xe73   :  { %8951 = vrsqrt.f32 %v2818_v1  ;;  %v3051_v1 = vld [vmem:[#allocation10 + $0x280] sm:$0xff] }
 0xe7e   :  { %v8950_v17 = vpop.eup %8949 }
 0xe7f   :  { %v2823_v22 = vmul.f32 %v8950_v17, %v2809_v54  ;;  %v3054_v54 = vld [vmem:[#allocation10 + $0x298] sm:$0xff] }
 0xe80   :  { %v8952_v8 = vpop.eup %8951  ;;  %v3022_v17 = vld [vmem:[#allocation10 + $0x198] sm:$0xff] }
 0xe81   :  { %v2833_v24 = vmul.f32 %v6672_v7, %v2823_v22  ;;  %v2822_v25 = vmul.f32 %v8952_v8, %v2808_v46  ;;  %v3040_v46 = vld [vmem:[#allocation10 + $0x228] sm:$0xff]  ;;  %v3383_v22 = vld [vmem:[#allocation2 + $0x178] sm:$0xff]  ;;  %v3382_v8 = vld [vmem:[#allocation2 + $0x170] sm:$0xff] }
 0xe83   :  { %v2843_v26 = vadd.f32 %v6674_v23, %v2833_v24  ;;  %v2832_v27 = vmul.f32 %v6672_v7, %v2822_v25  ;;  %v3037_v7 = vld [vmem:[#allocation10 + $0x210] sm:$0xff]  ;;  %v3381_v24 = vld [vmem:[#allocation2 + $0x168] sm:$0xff]  ;;  %v3380_v25 = vld [vmem:[#allocation2 + $0x160] sm:$0xff] }
 0xe85   :  { %v2845_v28 = vmax.f32 %v2843_v26, 0.0  ;;  %v2842_v29 = vadd.f32 %v6674_v23, %v2832_v27  ;;  %v3021_v23 = vld [vmem:[#allocation10 + $0x190] sm:$0xff]  ;;  %v3379_v26 = vld [vmem:[#allocation2 + $0x158] sm:$0xff] }
 0xe86   :  { %v3378_v27 = vld [vmem:[#allocation2 + $0x150] sm:$0xff] }
 0xe87   :  { %v9721_v31 = vadd.f32 %v2845_v28, %v9481_v45  ;;  %v2844_v32 = vmax.f32 %v2842_v29, 0.0  ;;  %v3065_v45 = vld [vmem:[#allocation10 + $0x2f0] sm:$0xff]  ;;  %v3377_v28 = vld [vmem:[#allocation2 + $0x148] sm:$0xff]  ;;  %v3376_v29 = vld [vmem:[#allocation2 + $0x140] sm:$0xff] }
 0xe89   :  { %v9724_v33 = vadd.f32 %v2844_v32, %v9488_v48  ;;  %8189 = vmatprep.subr.mxu0 %v9721_v31  ;;  %8199 = vmatprep.subr.mxu1 %v9721_v31  ;;  %v3050_v48 = vld [vmem:[#allocation10 + $0x278] sm:$0xff] }
 0xe8a   :  { %8190 = vmatpush3.msra.mxu0 %v9721_v31  ;;  %8200 = vmatpush3.msra.mxu1 %v9721_v31  ;;  %v3375_v32 = vld [vmem:[#allocation2 + $0x138] sm:$0xff] }
 0xe8b   :  { %8191 = vmatprep.subr.mxu0 %v9724_v33  ;;  %8201 = vmatprep.subr.mxu1 %v9724_v33 }
 0xe8c   :  { %8192 = vmatpush3.msra.mxu0 %v9724_v33  ;;  %8202 = vmatpush3.msra.mxu1 %v9724_v33 }
 0xe8d   :  { %8194 = vmatmul.mubr.msk.f32.vlgmr.msra.gmra.mxu0 %vm523_vm0, %v9622_v4  ;;  %8204 = vmatmul.mubr.msk.f32.vlgmr.msra.gmra.mxu1 %vm523_vm0, %v9676_v2  ;;  %v3034_v4 = vld [vmem:[#allocation10 + $0x1f8] sm:$0xff] }
 0xe8e   :  { %8209 = vmatprep.subr.mxu1 %v3066_v34  ;;  %8206 = vmatprep.mubr.msk.f32.mxu1 %vm523_vm0, %v9683_v9 }
 0xe8f   :  { %8210 = vmatpush3.msra.mxu1 %v3066_v34  ;;  %8196 = vmatprep.mubr.msk.f32.mxu0 %vm523_vm0, %v9629_v43  ;;  %v3048_v43 = vld [vmem:[#allocation10 + $0x268] sm:$0xff]  ;;  %v3374_v34 = vld [vmem:[#allocation2 + $0x130] sm:$0xff] }
 0xe90   :  { %8211 = vmatprep.subr.mxu1 %v3065_v45  ;;  %7161 = vmatprep.subr.mxu0 %v3050_v48  ;;  %v3372_v48 = vld [vmem:[#allocation2 + $0x120] sm:$0xff] }
 0xe91   :  { %8212 = vmatpush3.msra.mxu1 %v3065_v45  ;;  %8197 = vmatmul.mubr.msk.f32.gmra.mxu0 %vm523_vm0, %v9636_v57  ;;  %v3047_v57 = vld [vmem:[#allocation10 + $0x260] sm:$0xff]  ;;  %v3373_v45 = vld [vmem:[#allocation2 + $0x128] sm:$0xff] }
 0xe92   :  { %8207 = vmatmul.mubr.msk.f32.gmra.mxu1 %vm523_vm0, %v9690_v10  ;;  %8213 = vmatprep.subr.mxu1 %v3064_v35 }
 0xe93   :  { %8214 = vmatpush3.msra.mxu1 %v3064_v35  ;;  %8241 = vmatprep.mubr.f32.mxu1 %v9596_v49  ;;  %v3371_v35 = vld [vmem:[#allocation2 + $0x118] sm:$0xff] }
 0xe94   :  { %8215 = vmatprep.subr.mxu1 %v3063_v36  ;;  %7162 = vmatpush3.msra.mxu0 %v3034_v4  ;;  %v3369_v4 = vld [vmem:[#allocation2 + $0x108] sm:$0xff] }
 0xe95   :  { %8216 = vmatpush3.msra.mxu1 %v3063_v36  ;;  %7163 = vmatprep.subr.mxu0 %v3049_v37  ;;  %v3370_v36 = vld [vmem:[#allocation2 + $0x110] sm:$0xff]  ;;  %v3368_v37 = vld [vmem:[#allocation2 + $0x100] sm:$0xff] }
 0xe96   :  { %8217 = vmatprep.subr.mxu1 %v3062_v38  ;;  %7164 = vmatpush3.msra.mxu0 %v3033_v39  ;;  %v3566_v39 = vld [vmem:[#allocation7 + $0x170] sm:$0xff] }
 0xe97   :  { %8218 = vmatpush3.msra.mxu1 %v3062_v38  ;;  %7165 = vmatprep.subr.mxu0 %v3048_v43  ;;  %v3567_v38 = vld [vmem:[#allocation7 + $0x178] sm:$0xff]  ;;  %v3036_v43 = vld [vmem:[#allocation10 + $0x208] sm:$0xff] }
 0xe98   :  { %8219 = vmatprep.subr.mxu1 %v3061_v40  ;;  %7166 = vmatpush3.msra.mxu0 %v3032_v41  ;;  %v3565_v41 = vld [vmem:[#allocation7 + $0x168] sm:$0xff] }
 0xe99   :  { %8220 = vmatpush3.msra.mxu1 %v3061_v40  ;;  %7167 = vmatprep.subr.mxu0 %v3047_v57  ;;  %v3020_v40 = vld [vmem:[#allocation10 + $0x188] sm:$0xff]  ;;  %v3035_v57 = vld [vmem:[#allocation10 + $0x200] sm:$0xff] }
 0xe9a   :  { %8221 = vmatprep.subr.mxu1 %v3060_v42  ;;  %7168 = vmatpush3.msra.mxu0 %v3031_v3  ;;  %v3564_v3 = vld [vmem:[#allocation7 + $0x160] sm:$0xff] }
 0xe9b   :  { %8222 = vmatpush3.msra.mxu1 %v3060_v42  ;;  %7169 = vmatprep.subr.mxu0 %v3046_v6  ;;  %v3019_v42 = vld [vmem:[#allocation10 + $0x180] sm:$0xff]  ;;  %v3563_v6 = vld [vmem:[#allocation7 + $0x158] sm:$0xff] }
 0xe9c   :  { %8223 = vmatprep.subr.mxu1 %v3059_v44  ;;  %7170 = vmatpush3.msra.mxu0 %v3030_v47  ;;  %v3561_v47 = vld [vmem:[#allocation7 + $0x148] sm:$0xff] }
 0xe9d   :  { %8224 = vmatpush3.msra.mxu1 %v3059_v44  ;;  %7171 = vmatprep.subr.mxu0 %v3045_v14  ;;  %v3562_v44 = vld [vmem:[#allocation7 + $0x150] sm:$0xff]  ;;  %v3560_v14 = vld [vmem:[#allocation7 + $0x140] sm:$0xff] }
 0xe9e   :  { %8225 = vmatprep.subr.mxu1 %v3058_v18  ;;  %7172 = vmatpush3.msra.mxu0 %v3029_v60  ;;  %v3558_v60 = vld [vmem:[#allocation7 + $0x130] sm:$0xff] }
 0xe9f   :  { %8226 = vmatpush3.msra.mxu1 %v3058_v18  ;;  %7173 = vmatprep.subr.mxu0 %v3044_v30  ;;  %v3559_v18 = vld [vmem:[#allocation7 + $0x138] sm:$0xff]  ;;  %v3557_v30 = vld [vmem:[#allocation7 + $0x128] sm:$0xff] }
 0xea0   :  { %8227 = vmatprep.subr.mxu1 %v3057_v15  ;;  %7174 = vmatpush3.msra.mxu0 %v3028_v19  ;;  %v3555_v19 = vld [vmem:[#allocation7 + $0x118] sm:$0xff] }
 0xea1   :  { %8228 = vmatpush3.msra.mxu1 %v3057_v15  ;;  %7175 = vmatprep.subr.mxu0 %v3043_v5  ;;  %v3556_v15 = vld [vmem:[#allocation7 + $0x120] sm:$0xff]  ;;  %v3554_v5 = vld [vmem:[#allocation7 + $0x110] sm:$0xff] }
 0xea2   :  { %8229 = vmatprep.subr.mxu1 %v3056_v11  ;;  %7176 = vmatpush3.msra.mxu0 %v3027_v50  ;;  %v3552_v50 = vld [vmem:[#allocation7 + $0x100] sm:$0xff] }
 0xea3   :  { %8230 = vmatpush3.msra.mxu1 %v3056_v11  ;;  %7177 = vmatprep.subr.mxu0 %v3042_v51  ;;  %v3553_v11 = vld [vmem:[#allocation7 + $0x108] sm:$0xff] }
 0xea4   :  { %8231 = vmatprep.subr.mxu1 %v3055_v52  ;;  %7178 = vmatpush3.msra.mxu0 %v3026_v12  ;;  %v6700_v51 = vld [vmem:[%s10287_s15 + $0xf8] sm:$0xff] }
 0xea5   :  { %8232 = vmatpush3.msra.mxu1 %v3055_v52  ;;  %7179 = vmatprep.subr.mxu0 %v3041_v53 }
 0xea6   :  { %8233 = vmatprep.subr.mxu1 %v3054_v54  ;;  %7180 = vmatpush3.msra.mxu0 %v3025_v13  ;;  %v6699_v13 = vld [vmem:[%s10287_s15 + $0xf0] sm:$0xff] }
 0xea7   :  { %8234 = vmatpush3.msra.mxu1 %v3054_v54  ;;  %7181 = vmatprep.subr.mxu0 %v3040_v46 }
 0xea8   :  { %8235 = vmatprep.subr.mxu1 %v3053_v59  ;;  %7182 = vmatpush3.msra.mxu0 %v3024_v21 }
 0xea9   :  { %8236 = vmatpush3.msra.mxu1 %v3053_v59  ;;  %7183 = vmatprep.subr.mxu0 %v3039_v61  ;;  %v6697_v61 = vld [vmem:[%s10287_s15 + $0xe0] sm:$0xff] }
 0xeaa   :  { %8237 = vmatprep.subr.mxu1 %v3052_v62  ;;  %7184 = vmatpush3.msra.mxu0 %v3023_v63  ;;  %v6696_v63 = vld [vmem:[%s10287_s15 + $0xd8] sm:$0xff] }
 0xeab   :  { %8238 = vmatpush3.msra.mxu1 %v3052_v62  ;;  %7185 = vmatprep.subr.mxu0 %v3038_v0  ;;  %v6695_v0 = vld [vmem:[%s10287_s15 + $0xd0] sm:$0xff] }
 0xeac   :  { %8239 = vmatprep.subr.mxu1 %v3051_v1  ;;  %7186 = vmatpush3.msra.mxu0 %v3022_v17  ;;  %v6693_v17 = vld [vmem:[%s10287_s15 + $0xc0] sm:$0xff] }
 0xead   :  { %8240 = vmatpush3.msra.mxu1 %v3051_v1  ;;  %7187 = vmatprep.subr.mxu0 %v3037_v7  ;;  %v6694_v1 = vld [vmem:[%s10287_s15 + $0xc8] sm:$0xff]  ;;  %v6692_v7 = vld [vmem:[%s10287_s15 + $0xb8] sm:$0xff] }
 0xeae   :  { %8242 = vmatmul.mubr.f32.vlgmr.msra.gmra.mxu1 %v9598_v20  ;;  %8285 = vmatprep.subr.mxu1 %v3383_v22 }
 0xeaf   :  { %8244 = vmatprep.mubr.f32.mxu1 %v9613_v56  ;;  %8286 = vmatpush3.msra.mxu1 %v3383_v22  ;;  %v6691_v22 = vld [vmem:[%s10287_s15 + $0xb0] sm:$0xff] }
 0xeb0   :  { %8287 = vmatprep.subr.mxu1 %v3382_v8  ;;  %7188 = vmatpush3.msra.mxu0 %v3021_v23  ;;  %v6689_v23 = vld [vmem:[%s10287_s15 + $0xa0] sm:$0xff] }
 0xeb1   :  { %8288 = vmatpush3.msra.mxu1 %v3382_v8  ;;  %7189 = vmatprep.subr.mxu0 %v3036_v43  ;;  %v6690_v8 = vld [vmem:[%s10287_s15 + $0xa8] sm:$0xff] }
 0xeb2   :  { %8245 = vmatmul.mubr.f32.gmra.mxu1 %v9611_v55  ;;  %8289 = vmatprep.subr.mxu1 %v3381_v24 }
 0xeb3   :  { %8290 = vmatpush3.msra.mxu1 %v3381_v24  ;;  %8317 = vmatprep.mubr.f32.mxu1 %v9724_v33  ;;  %v6688_v24 = vld [vmem:[%s10287_s15 + $0x98] sm:$0xff] }
 0xeb4   :  { %8291 = vmatprep.subr.mxu1 %v3380_v25  ;;  %7190 = vmatpush3.msra.mxu0 %v3020_v40 }
 0xeb5   :  { %8292 = vmatpush3.msra.mxu1 %v3380_v25  ;;  %7191 = vmatprep.subr.mxu0 %v3035_v57  ;;  %v6687_v25 = vld [vmem:[%s10287_s15 + $0x90] sm:$0xff] }
 0xeb6   :  { %8293 = vmatprep.subr.mxu1 %v3379_v26  ;;  %7192 = vmatpush3.msra.mxu0 %v3019_v42 }
 0xeb7   :  { %8294 = vmatpush3.msra.mxu1 %v3379_v26  ;;  %8247 = vmatprep.subr.mxu0 %v6700_v51 }
 0xeb8   :  { %8295 = vmatprep.subr.mxu1 %v3378_v27 }
 0xeb9   :  { %8296 = vmatpush3.msra.mxu1 %v3378_v27  ;;  %v6686_v27 = vld [vmem:[%s10287_s15 + $0x88] sm:$0xff] }
 0xeba   :  { %8297 = vmatprep.subr.mxu1 %v3377_v28 }
 0xebb   :  { %8298 = vmatpush3.msra.mxu1 %v3377_v28  ;;  %v6685_v28 = vld [vmem:[%s10287_s15 + $0x80] sm:$0xff] }
 0xebc   :  { %8299 = vmatprep.subr.mxu1 %v3376_v29 }
 0xebd   :  { %8300 = vmatpush3.msra.mxu1 %v3376_v29 }
 0xebe   :  { %8301 = vmatprep.subr.mxu1 %v3375_v32 }
 0xebf   :  { %8302 = vmatpush3.msra.mxu1 %v3375_v32  ;;  %v3475_v32 = vld [vmem:[#allocation5 + $0x178] sm:$0xff] }
 0xec0   :  { %8303 = vmatprep.subr.mxu1 %v3374_v34 }
 0xec1   :  { %8304 = vmatpush3.msra.mxu1 %v3374_v34 }
 0xec2   :  { %8305 = vmatprep.subr.mxu1 %v3373_v45 }
 0xec3   :  { %8306 = vmatpush3.msra.mxu1 %v3373_v45 }
 0xec4   :  { %8307 = vmatprep.subr.mxu1 %v3372_v48 }
 0xec5   :  { %8308 = vmatpush3.msra.mxu1 %v3372_v48 }
 0xec6   :  { %8309 = vmatprep.subr.mxu1 %v3371_v35 }
 0xec7   :  { %8310 = vmatpush3.msra.mxu1 %v3371_v35 }
 0xec8   :  { %8311 = vmatprep.subr.mxu1 %v3370_v36 }
 0xec9   :  { %8312 = vmatpush3.msra.mxu1 %v3370_v36 }
 0xeca   :  { %8313 = vmatprep.subr.mxu1 %v3369_v4 }
 0xecb   :  { %8314 = vmatpush3.msra.mxu1 %v3369_v4 }
 0xecc   :  { %8315 = vmatprep.subr.mxu1 %v3368_v37 }
 0xecd   :  { %8316 = vmatpush3.msra.mxu1 %v3368_v37  ;;  %v9817_v37 = vld [vmem:[%s10299_s5] sm:$0xff] }
 0xece   :  { %8318 = vmatmul.mubr.f32.vlgmr.msra.gmra.mxu1 %v9721_v31  ;;  %8355 = vmatprep.subr.mxu1 %v3567_v38 }
 0xecf   :  { %8356 = vmatpush3.msra.mxu1 %v3567_v38  ;;  %8387 = vmatprep.mubr.f32.mxu1 %v9724_v33 }
 0xed0   :  { %8357 = vmatprep.subr.mxu1 %v3566_v39 }
 0xed1   :  { %8358 = vmatpush3.msra.mxu1 %v3566_v39  ;;  %v6684_v39 = vld [vmem:[%s10286_s14 + $0x1] ss:$0 sm:$0xff] }
 0xed2   :  { %8359 = vmatprep.subr.mxu1 %v3565_v41 }
 0xed3   :  { %8360 = vmatpush3.msra.mxu1 %v3565_v41 }
 0xed4   :  { %8361 = vmatprep.subr.mxu1 %v3564_v3 }
 0xed5   :  { %8362 = vmatpush3.msra.mxu1 %v3564_v3 }
 0xed6   :  { %8363 = vmatprep.subr.mxu1 %v3563_v6 }
 0xed7   :  { %8364 = vmatpush3.msra.mxu1 %v3563_v6 }
 0xed8   :  { %8365 = vmatprep.subr.mxu1 %v3562_v44 }
 0xed9   :  { %8366 = vmatpush3.msra.mxu1 %v3562_v44 }
 0xeda   :  { %8367 = vmatprep.subr.mxu1 %v3561_v47 }
 0xedb   :  { %8368 = vmatpush3.msra.mxu1 %v3561_v47 }
 0xedc   :  { %8369 = vmatprep.subr.mxu1 %v3560_v14 }
 0xedd   :  { %8370 = vmatpush3.msra.mxu1 %v3560_v14 }
 0xede   :  { %8371 = vmatprep.subr.mxu1 %v3559_v18 }
 0xedf   :  { %8372 = vmatpush3.msra.mxu1 %v3559_v18 }
 0xee0   :  { %8373 = vmatprep.subr.mxu1 %v3558_v60 }
 0xee1   :  { %8374 = vmatpush3.msra.mxu1 %v3558_v60 }
 0xee2   :  { %8375 = vmatprep.subr.mxu1 %v3557_v30 }
 0xee3   :  { %8376 = vmatpush3.msra.mxu1 %v3557_v30 }
 0xee4   :  { %8377 = vmatprep.subr.mxu1 %v3556_v15 }
 0xee5   :  { %8378 = vmatpush3.msra.mxu1 %v3556_v15 }
 0xee6   :  { %8379 = vmatprep.subr.mxu1 %v3555_v19 }
 0xee7   :  { %8380 = vmatpush3.msra.mxu1 %v3555_v19  ;;  %v3474_v19 = vld [vmem:[#allocation5 + $0x170] sm:$0xff] }
 0xee8   :  { %8381 = vmatprep.subr.mxu1 %v3554_v5 }
 0xee9   :  { %8382 = vmatpush3.msra.mxu1 %v3554_v5 }
 0xeea   :  { %8383 = vmatprep.subr.mxu1 %v3553_v11 }
 0xeeb   :  { %8384 = vmatpush3.msra.mxu1 %v3553_v11 }
 0xeec   :  { %8385 = vmatprep.subr.mxu1 %v3552_v50 }
 0xeed   :  { %8386 = vmatpush3.msra.mxu1 %v3552_v50  ;;  %v3473_v50 = vld [vmem:[#allocation5 + $0x168] sm:$0xff] }
 0xeee   :  { %8388 = vmatmul.mubr.f32.vlgmr.msra.gmra.mxu1 %v9721_v31 }
 0xeef   :  { %8432 = vmatprep.mubr.msk.f32.mxu1 %vm523_vm0, %v9643_v58  ;;  %v6698_v58 = vld [vmem:[%s10287_s15 + $0xe8] sm:$0xff] }
 0xf4d   :  { %v8195_v52 = vpop.f32.mrf.mxu0  ;;  %v8205_v12 = vpop.f32.mrf.mxu1 }
 0xf4f   :  { %v2914_v53 = vpop.f32.mrf.mxu0  ;;  %v2999_v54 = vpop.f32.mrf.mxu1 }
 0xf50   :  { %3139 = vmatprep.mubr.f32.mxu0 %v2999_v54  ;;  %v3471_v54 = vld [vmem:[#allocation5 + $0x158] sm:$0xff] }
 0xf51   :  { %3140 = vmatmul.mubr.f32.vlgmr.msra.gmra.mxu0 %v2914_v53  ;;  %v8198_v59 = vpop.f32.mrf.mxu0 }
 0xf52   :  { %3144 = vmatprep.mubr.f32.mxu0 %v8205_v12  ;;  %v8208_v46 = vpop.f32.mrf.mxu1  ;;  %8248 = vmatpush3.msra.mxu0 %v6700_v51  ;;  %v3472_v12 = vld [vmem:[#allocation5 + $0x160] sm:$0xff] }
 0xf53   :  { %8249 = vmatprep.subr.mxu0 %v6699_v13  ;;  %v2924_v62 = vpop.f32.mrf.mxu0 }
 0xf54   :  { %v3009_v21 = vpop.f32.mrf.mxu1  ;;  %8250 = vmatpush3.msra.mxu0 %v6699_v13 }
 0xf55   :  { %3145 = vmatmul.mubr.f32.gmra.mxu0 %v8195_v52  ;;  %8251 = vmatprep.subr.mxu0 %v6698_v58 }
 0xf56   :  { %3149 = vmatprep.mubr.f32.mxu0 %v3009_v21  ;;  %8252 = vmatpush3.msra.mxu0 %v6698_v58  ;;  %v3468_v58 = vld [vmem:[#allocation5 + $0x140] sm:$0xff]  ;;  %v3467_v21 = vld [vmem:[#allocation5 + $0x138] sm:$0xff] }
 0xf57   :  { %8253 = vmatprep.subr.mxu0 %v6697_v61 }
 0xf58   :  { %8254 = vmatpush3.msra.mxu0 %v6697_v61  ;;  %v3466_v61 = vld [vmem:[#allocation5 + $0x130] sm:$0xff] }
 0xf59   :  { %3150 = vmatmul.mubr.f32.gmra.mxu0 %v2924_v62  ;;  %8255 = vmatprep.subr.mxu0 %v6696_v63  ;;  %v3465_v62 = vld [vmem:[#allocation5 + $0x128] sm:$0xff] }
 0xf5a   :  { %3154 = vmatprep.mubr.f32.mxu0 %v8208_v46  ;;  %8256 = vmatpush3.msra.mxu0 %v6696_v63  ;;  %v3470_v46 = vld [vmem:[#allocation5 + $0x150] sm:$0xff]  ;;  %v3464_v63 = vld [vmem:[#allocation5 + $0x120] sm:$0xff] }
 0xf5b   :  { %8257 = vmatprep.subr.mxu0 %v6695_v0 }
 0xf5c   :  { %8258 = vmatpush3.msra.mxu0 %v6695_v0  ;;  %v3463_v0 = vld [vmem:[#allocation5 + $0x118] sm:$0xff] }
 0xf5d   :  { %3155 = vmatmul.mubr.f32.gmra.mxu0 %v8198_v59  ;;  %8259 = vmatprep.subr.mxu0 %v6694_v1  ;;  %v3469_v59 = vld [vmem:[#allocation5 + $0x148] sm:$0xff] }
 0xf5e   :  { %8260 = vmatpush3.msra.mxu0 %v6694_v1  ;;  %v3462_v1 = vld [vmem:[#allocation5 + $0x110] sm:$0xff] }
 0xf5f   :  { %8261 = vmatprep.subr.mxu0 %v6693_v17 }
 0xf60   :  { %8262 = vmatpush3.msra.mxu0 %v6693_v17  ;;  %v3461_v17 = vld [vmem:[#allocation5 + $0x108] sm:$0xff] }
 0xf61   :  { %8263 = vmatprep.subr.mxu0 %v6692_v7 }
 0xf62   :  { %8264 = vmatpush3.msra.mxu0 %v6692_v7  ;;  %v3460_v7 = vld [vmem:[#allocation5 + $0x100] sm:$0xff] }
 0xf63   :  { %8265 = vmatprep.subr.mxu0 %v6691_v22 }
 0xf64   :  { %8266 = vmatpush3.msra.mxu0 %v6691_v22  ;;  %v3659_v22 = vld [vmem:[#allocation8 + $0x178] sm:$0xff] }
 0xf65   :  { %8267 = vmatprep.subr.mxu0 %v6690_v8 }
 0xf66   :  { %8268 = vmatpush3.msra.mxu0 %v6690_v8  ;;  %v3658_v8 = vld [vmem:[#allocation8 + $0x170] sm:$0xff] }
 0xf67   :  { %8269 = vmatprep.subr.mxu0 %v6689_v23 }
 0xf68   :  { %8270 = vmatpush3.msra.mxu0 %v6689_v23  ;;  %v3657_v23 = vld [vmem:[#allocation8 + $0x168] sm:$0xff] }
 0xf69   :  { %8271 = vmatprep.subr.mxu0 %v6688_v24 }
 0xf6a   :  { %8272 = vmatpush3.msra.mxu0 %v6688_v24  ;;  %v3656_v24 = vld [vmem:[#allocation8 + $0x160] sm:$0xff] }
 0xf6b   :  { %8273 = vmatprep.subr.mxu0 %v6687_v25 }
 0xf6c   :  { %8274 = vmatpush3.msra.mxu0 %v6687_v25  ;;  %v3655_v25 = vld [vmem:[#allocation8 + $0x158] sm:$0xff] }
 0xf6d   :  { %8275 = vmatprep.subr.mxu0 %v6686_v27 }
 0xf6e   :  { %v8243_v26 = vpop.f32.mrf.mxu1  ;;  %8276 = vmatpush3.msra.mxu0 %v6686_v27  ;;  %v3653_v27 = vld [vmem:[#allocation8 + $0x148] sm:$0xff] }
 0xf6f   :  { %8277 = vmatprep.subr.mxu0 %v6685_v28 }
 0xf70   :  { %v3226_v29 = vpop.f32.mrf.mxu1  ;;  %8278 = vmatpush3.msra.mxu0 %v6685_v28  ;;  %v3652_v28 = vld [vmem:[#allocation8 + $0x140] sm:$0xff] }
 0xf71   :  { %8320 = vmatprep.subr.mxu0 %v3475_v32 }
 0xf72   :  { %v8246_v34 = vpop.f32.mrf.mxu1 }
 0xf74   :  { %v3236_v45 = vpop.f32.mrf.mxu1 }
 0xf8e   :  { %v9804_v48 = vpop.f32.mrf.mxu1 }
 0xf90   :  { %v9806_v35 = vpop.f32.mrf.mxu1 }
 0xfae   :  { %v8389_v36 = vpop.f32.mrf.mxu1 }
 0xfaf   :  { %8428 = vmatprep.subr.mxu1 %v8389_v36 }
 0xfb0   :  { %v3634_v4 = vpop.f32.mrf.mxu1  ;;  %8429 = vmatpush3.msra.mxu1 %v8389_v36  ;;  %v3647_v36 = vld [vmem:[#allocation8 + $0x118] sm:$0xff] }
 0xfb1   :  { %8430 = vmatprep.subr.mxu1 %v3634_v4 }
 0xfb2   :  { %8431 = vmatpush3.msra.mxu1 %v3634_v4  ;;  %v3646_v4 = vld [vmem:[#allocation8 + $0x110] sm:$0xff] }
 0xfb3   :  { %8433 = vmatmul.mubr.msk.f32.vlgmr.msra.gmra.mxu1 %vm523_vm0, %v9676_v2 }
 0xfb4   :  { %8435 = vmatprep.mubr.msk.f32.mxu1 %vm523_vm0, %v9683_v9 }
 0xfb7   :  { %8436 = vmatmul.mubr.msk.f32.gmra.mxu1 %vm523_vm0, %v9690_v10 }
 0xfb8   :  { %8442 = vmatprep.mubr.msk.f32.mxu1 %vm523_vm0, %v9817_v37 }
0x1011   :  { %v7193_v38 = vpop.f32.mrf.mxu0 }
0x1013   :  { %v7194_v2 = vpop.f32.mrf.mxu0 }
0x1014   :  { %v7195_v43 = vadd.f32 %v7194_v2, %v7193_v38  ;;  %v3645_v38 = vld [vmem:[#allocation8 + $0x108] sm:$0xff]  ;;  %v6702_v2 = vld [vmem:[%s10288_s16 + $0x1] ss:$0 sm:$0xff] }
0x1015   :  { %v7196_v40 = vpop.f32.mrf.mxu0 }
0x1016   :  { %v3142_v9 = vadd.f32 %v7195_v43, %v6684_v39 }
0x1017   :  { %v7197_v41 = vpop.f32.mrf.mxu0 }
0x1018   :  { %v7198_v57 = vadd.f32 %v7197_v41, %v7196_v40  ;;  %v3227_v10 = vadd.f32 %v3226_v29, %v3142_v9  ;;  %v3651_v29 = vld [vmem:[#allocation8 + $0x138] sm:$0xff] }
0x1019   :  { %v7199_v42 = vpop.f32.mrf.mxu0 }
0x101a   :  { %v3147_v3 = vadd.f32 %v7198_v57, %v6684_v39  ;;  %v3245_v6 = vmax.f32 %v3227_v10, 0.0 }
0x101b   :  { %v7200_v44 = vpop.f32.mrf.mxu0 }
0x101c   :  { %v3232_v47 = vadd.f32 %v8243_v26, %v3147_v3  ;;  %v7201_v14 = vadd.f32 %v7200_v44, %v7199_v42  ;;  %8279 = vmatprep.mubr.f32.mxu0 %v3245_v6  ;;  %v3654_v26 = vld [vmem:[#allocation8 + $0x150] sm:$0xff] }
0x101d   :  { %v7202_v18 = vpop.f32.mrf.mxu0 }
0x101e   :  { %v3246_v60 = vmax.f32 %v3232_v47, 0.0  ;;  %v3152_v30 = vadd.f32 %v7201_v14, %v6684_v39 }
0x101f   :  { %v7203_v15 = vpop.f32.mrf.mxu0 }
0x1020   :  { %v7204_v5 = vadd.f32 %v7203_v15, %v7202_v18  ;;  %8280 = vmatmul.mubr.f32.vlgmr.msra.gmra.mxu0 %v3246_v60  ;;  %v3237_v11 = vadd.f32 %v3236_v45, %v3152_v30  ;;  %v3648_v45 = vld [vmem:[#allocation8 + $0x120] sm:$0xff] }
0x1021   :  { %8321 = vmatpush3.msra.mxu0 %v3475_v32  ;;  %v3650_v32 = vld [vmem:[#allocation8 + $0x130] sm:$0xff] }
0x1022   :  { %v3157_v51 = vadd.f32 %v7204_v5, %v6684_v39  ;;  %8322 = vmatprep.subr.mxu0 %v3474_v19  ;;  %v3247_v52 = vmax.f32 %v3237_v11, 0.0  ;;  %v3644_v39 = vld [vmem:[#allocation8 + $0x100] sm:$0xff] }
0x1023   :  { %8323 = vmatpush3.msra.mxu0 %v3474_v19  ;;  %v9888_v19 = vld [vmem:[%s10276_s4] sm:$0xff] }
0x1024   :  { %8324 = vmatprep.subr.mxu0 %v3473_v50  ;;  %8282 = vmatprep.mubr.f32.mxu0 %v3247_v52  ;;  %v3242_v53 = vadd.f32 %v8246_v34, %v3157_v51  ;;  %v3649_v34 = vld [vmem:[#allocation8 + $0x128] sm:$0xff] }
0x1025   :  { %8325 = vmatpush3.msra.mxu0 %v3473_v50 }
0x1026   :  { %8326 = vmatprep.subr.mxu0 %v3472_v12  ;;  %v3248_v13 = vmax.f32 %v3242_v53, 0.0 }
0x1027   :  { %8327 = vmatpush3.msra.mxu0 %v3472_v12 }
0x1028   :  { %8328 = vmatprep.subr.mxu0 %v3471_v54  ;;  %8283 = vmatmul.mubr.f32.gmra.mxu0 %v3248_v13 }
0x1029   :  { %8329 = vmatpush3.msra.mxu0 %v3471_v54  ;;  %8352 = vmatprep.mubr.f32.mxu0 %v9724_v33 }
0x102a   :  { %8330 = vmatprep.subr.mxu0 %v3470_v46 }
0x102b   :  { %8331 = vmatpush3.msra.mxu0 %v3470_v46 }
0x102c   :  { %8332 = vmatprep.subr.mxu0 %v3469_v59 }
0x102d   :  { %8333 = vmatpush3.msra.mxu0 %v3469_v59 }
0x102e   :  { %8334 = vmatprep.subr.mxu0 %v3468_v58 }
0x102f   :  { %8335 = vmatpush3.msra.mxu0 %v3468_v58 }
0x1030   :  { %8336 = vmatprep.subr.mxu0 %v3467_v21 }
0x1031   :  { %8337 = vmatpush3.msra.mxu0 %v3467_v21 }
0x1032   :  { %8338 = vmatprep.subr.mxu0 %v3466_v61 }
0x1033   :  { %8339 = vmatpush3.msra.mxu0 %v3466_v61 }
0x1034   :  { %8340 = vmatprep.subr.mxu0 %v3465_v62 }
0x1035   :  { %8341 = vmatpush3.msra.mxu0 %v3465_v62 }
0x1036   :  { %8342 = vmatprep.subr.mxu0 %v3464_v63 }
0x1037   :  { %8343 = vmatpush3.msra.mxu0 %v3464_v63 }
0x1038   :  { %8344 = vmatprep.subr.mxu0 %v3463_v0 }
0x1039   :  { %8345 = vmatpush3.msra.mxu0 %v3463_v0 }
0x103a   :  { %8346 = vmatprep.subr.mxu0 %v3462_v1 }
0x103b   :  { %8347 = vmatpush3.msra.mxu0 %v3462_v1 }
0x103c   :  { %8348 = vmatprep.subr.mxu0 %v3461_v17 }
0x103d   :  { %8349 = vmatpush3.msra.mxu0 %v3461_v17 }
0x103e   :  { %8350 = vmatprep.subr.mxu0 %v3460_v7 }
0x103f   :  { %8351 = vmatpush3.msra.mxu0 %v3460_v7 }
0x1040   :  { %8353 = vmatmul.mubr.f32.vlgmr.msra.gmra.mxu0 %v9721_v31  ;;  %8390 = vmatprep.subr.mxu0 %v3659_v22 }
0x1041   :  { %8391 = vmatpush3.msra.mxu0 %v3659_v22 }
0x1042   :  { %8392 = vmatprep.subr.mxu0 %v3658_v8 }
0x1043   :  { %8393 = vmatpush3.msra.mxu0 %v3658_v8 }
0x1044   :  { %8394 = vmatprep.subr.mxu0 %v3657_v23 }
0x1045   :  { %8395 = vmatpush3.msra.mxu0 %v3657_v23 }
0x1046   :  { %8396 = vmatprep.subr.mxu0 %v3656_v24 }
0x1047   :  { %8397 = vmatpush3.msra.mxu0 %v3656_v24 }
0x1048   :  { %8398 = vmatprep.subr.mxu0 %v3655_v25 }
0x1049   :  { %8399 = vmatpush3.msra.mxu0 %v3655_v25 }
0x104a   :  { %8400 = vmatprep.subr.mxu0 %v3654_v26 }
0x104b   :  { %8401 = vmatpush3.msra.mxu0 %v3654_v26 }
0x104c   :  { %8402 = vmatprep.subr.mxu0 %v3653_v27 }
0x104d   :  { %8403 = vmatpush3.msra.mxu0 %v3653_v27 }
0x104e   :  { %8404 = vmatprep.subr.mxu0 %v3652_v28 }
0x104f   :  { %8405 = vmatpush3.msra.mxu0 %v3652_v28 }
0x1050   :  { %8406 = vmatprep.subr.mxu0 %v3651_v29 }
0x1051   :  { %8407 = vmatpush3.msra.mxu0 %v3651_v29 }
0x1052   :  { %8408 = vmatprep.subr.mxu0 %v3650_v32 }
0x1053   :  { %8409 = vmatpush3.msra.mxu0 %v3650_v32 }
0x1054   :  { %8410 = vmatprep.subr.mxu0 %v3649_v34 }
0x1055   :  { %8411 = vmatpush3.msra.mxu0 %v3649_v34 }
0x1056   :  { %8412 = vmatprep.subr.mxu0 %v3648_v45 }
0x1057   :  { %8413 = vmatpush3.msra.mxu0 %v3648_v45 }
0x1058   :  { %8414 = vmatprep.subr.mxu0 %v3647_v36 }
0x1059   :  { %8415 = vmatpush3.msra.mxu0 %v3647_v36 }
0x105a   :  { %8416 = vmatprep.subr.mxu0 %v3646_v4 }
0x105b   :  { %8417 = vmatpush3.msra.mxu0 %v3646_v4 }
0x105c   :  { %8418 = vmatprep.subr.mxu0 %v3645_v38 }
0x105d   :  { %8419 = vmatpush3.msra.mxu0 %v3645_v38 }
0x105e   :  { %8420 = vmatprep.subr.mxu0 %v3644_v39 }
0x105f   :  { %8421 = vmatpush3.msra.mxu0 %v3644_v39 }
0x1060   :  { %8477 = vmatprep.subr.mxu0 %v9804_v48 }
0x1073   :  { %v8434_v5 = vpop.f32.mrf.mxu1 }
0x1075   :  { %v3811_v11 = vpop.f32.mrf.mxu1 }
0x1077   :  { %v8437_v50 = vpop.f32.mrf.mxu1 }
0x1079   :  { %v3821_v51 = vpop.f32.mrf.mxu1 }
0x10e0   :  { %v8281_v43 = vpop.f32.mrf.mxu0 }
0x10e1   :  { %v3346_v40 = vadd.f32 %v8281_v43, %v6702_v2 }
0x10e2   :  { %v3340_v9 = vpop.f32.mrf.mxu0 }
0x10e3   :  { %v3341_v41 = vadd.f32 %v6702_v2, %v3340_v9  ;;  %v3360_v57 = vadd.f32 %v3346_v40, %v9598_v20 }
0x10e5   :  { %v3359_v10 = vadd.f32 %v3341_v41, %v9596_v49  ;;  %v9834_v3 = vmax.f32 %v3360_v57, 0.0 }
0x10e7   :  { %v9832_v42 = vmax.f32 %v3359_v10, 0.0 }
0x10e8   :  { %v8284_v6 = vpop.f32.mrf.mxu0 }
0x10e9   :  { %v3356_v44 = vadd.f32 %v8284_v6, %v6702_v2  ;;  %8422 = vmatprep.mubr.f32.mxu0 %v9832_v42 }
0x10ea   :  { %v3350_v47 = vpop.f32.mrf.mxu0  ;;  %8423 = vmatmul.mubr.f32.vlgmr.msra.gmra.mxu0 %v9834_v3 }
0x10eb   :  { %v3351_v14 = vadd.f32 %v6702_v2, %v3350_v47  ;;  %8478 = vmatpush3.msra.mxu0 %v9804_v48  ;;  %v3362_v18 = vadd.f32 %v3356_v44, %v9611_v55  ;;  %v9854_v55 = vld [vmem:[%s10299_s5 + $0x8] sm:$0xff]  ;;  %v9868_v48 = vld [vmem:[%s10299_s5 + $0x18] sm:$0xff] }
0x10ec   :  { %8479 = vmatprep.subr.mxu0 %v9806_v35 }
0x10ed   :  { %v3361_v49 = vadd.f32 %v3351_v14, %v9613_v56  ;;  %8480 = vmatpush3.msra.mxu0 %v9806_v35  ;;  %v9845_v60 = vmax.f32 %v3362_v18, 0.0  ;;  %v9861_v56 = vld [vmem:[%s10299_s5 + $0x10] sm:$0xff]  ;;  %v9875_v35 = vld [vmem:[%s10275_s3] sm:$0xff] }
0x10ef   :  { %v9843_v20 = vmax.f32 %v3361_v49, 0.0 }
0x10f1   :  { %8425 = vmatprep.mubr.f32.mxu0 %v9843_v20 }
0x10f2   :  { %8426 = vmatmul.mubr.f32.gmra.mxu0 %v9845_v60 }
0x10f3   :  { %8481 = vmatprep.mubr.msk.f32.mxu0 %vm523_vm0, %v9817_v37 }
0x10f6   :  { %8482 = vmatmul.mubr.msk.f32.vlgmr.msra.gmra.mxu0 %vm523_vm0, %v9854_v55 }
0x10f7   :  { %8484 = vmatprep.mubr.msk.f32.mxu0 %vm523_vm0, %v9861_v56 }
0x10fa   :  { %8485 = vmatmul.mubr.msk.f32.gmra.mxu0 %vm523_vm0, %v9868_v48 }
0x10fb   :  { %8512 = vmatprep.mubr.msk.f32.mxu0 %vm523_vm0, %v9875_v35 }
0x1100   :  { %v8354_v30 = vpop.f32.mrf.mxu0 }
0x1101   :  { %8438 = vmatprep.subr.mxu1 %v8354_v30 }
0x1102   :  { %v3542_v15 = vpop.f32.mrf.mxu0  ;;  %8439 = vmatpush3.msra.mxu1 %v8354_v30 }
0x1103   :  { %8440 = vmatprep.subr.mxu1 %v3542_v15 }
0x1104   :  { %8441 = vmatpush3.msra.mxu1 %v3542_v15 }
0x1105   :  { %8443 = vmatmul.mubr.msk.f32.vlgmr.msra.gmra.mxu1 %vm523_vm0, %v9854_v55 }
0x1106   :  { %8445 = vmatprep.mubr.msk.f32.mxu1 %vm523_vm0, %v9861_v56 }
0x1109   :  { %8446 = vmatmul.mubr.msk.f32.gmra.mxu1 %vm523_vm0, %v9868_v48 }
0x110a   :  { %8456 = vmatprep.mubr.msk.f32.mxu1 %vm760_vm1, %v9888_v19 }
0x11aa   :  { %v8424_v52 = vpop.f32.mrf.mxu0 }
0x11ac   :  { %v3726_v13 = vpop.f32.mrf.mxu0 }
0x11b2   :  { %v8427_v21 = vpop.f32.mrf.mxu0 }
0x11b4   :  { %v3736_v22 = vpop.f32.mrf.mxu0 }
0x11c5   :  { %v8444_v12 = vpop.f32.mrf.mxu1 }
0x11c6   :  { %v3902_v53 = vadd.f32 %v8444_v12, %v8434_v5  ;;  %v9908_v12 = vld [vmem:[%s10275_s3 + $0x8] sm:$0xff] }
0x11c7   :  { %v3896_v54 = vpop.f32.mrf.mxu1 }
0x11c8   :  { %v3897_v46 = vadd.f32 %v3896_v54, %v3811_v11  ;;  %v3916_v59 = vadd.f32 %v8424_v52, %v3902_v53  ;;  %v9915_v53 = vld [vmem:[%s10275_s3 + $0x10] sm:$0xff]  ;;  %v9922_v54 = vld [vmem:[%s10275_s3 + $0x18] sm:$0xff] }
0x11c9   :  { %v8447_v58 = vpop.f32.mrf.mxu1 }
0x11ca   :  { %v3915_v61 = vadd.f32 %v3897_v46, %v3726_v13  ;;  %v3912_v62 = vadd.f32 %v8447_v58, %v8437_v50  ;;  %v3924_v17 = vmul.f32 0.2, %v3916_v59  ;;  %vm3920_vm14 = vcmp.gt.f32.partialorder %v3916_v59, 0.0  ;;  %v9899_v50 = vld [vmem:[%s10276_s4 + $0x8] sm:$0xff] }
0x11cb   :  { %v3906_v63 = vpop.f32.mrf.mxu1  ;;  %v6717_v13 = vld [vmem:[%s10281_s9 + $0x8] sm:$0xf] }
0x11cc   :  { %vm3919_vm13 = vcmp.gt.f32.partialorder %v3915_v61, 0.0  ;;  %v3923_v0 = vmul.f32 0.2, %v3915_v61  ;;  %v3918_v1 = vadd.f32 %v8427_v21, %v3912_v62  ;;  %v3907_v7 = vadd.f32 %v3906_v63, %v3821_v51 }
0x11cd   :  { %v3928_v25 = vsel %vm3920_vm14, %v3916_v59, %v3924_v17 }
0x11ce   :  { %vm3922_vm15 = vcmp.gt.f32.partialorder %v3918_v1, 0.0  ;;  %v3926_v8 = vmul.f32 0.2, %v3918_v1  ;;  %v3927_v23 = vsel %vm3919_vm13, %v3915_v61, %v3923_v0  ;;  %v3917_v24 = vadd.f32 %v3907_v7, %v3736_v22 }
0x11cf   :  { %v3931_v28 = vsel %vm734_vm5, %v3927_v23, -inf  ;;  %v3932_v32 = vsel %vm734_vm5, %v3928_v25, -inf }
0x11d0   :  { %v3930_v26 = vsel %vm3922_vm15, %v3918_v1, %v3926_v8  ;;  %vm3921_vm2 = vcmp.gt.f32.partialorder %v3917_v24, 0.0  ;;  %v3925_v27 = vmul.f32 0.2, %v3917_v24  ;;  %v3935_v36 = vmax.f32 %v3931_v28, %v3932_v32 }
0x11d1   :  { %v3934_v34 = vsel %vm734_vm5, %v3930_v26, -inf }
0x11d2   :  { %v3929_v29 = vsel %vm3921_vm2, %v3917_v24, %v3925_v27 }
0x11d3   :  { %v3933_v45 = vsel %vm734_vm5, %v3929_v29, -inf }
0x11d4   :  { %v3936_v4 = vmax.f32 %v3933_v45, %v3934_v34 }
0x11d6   :  { %v3937_v38 = vmax.f32 %v3935_v36, %v3936_v4 }
0x11d8   :  { %v3938_v39 = vrot.slane %v3937_v38, 4 }
0x11da   :  { %v3939_v2 = vmax.f32 %v3937_v38, %v3938_v39 }
0x11dc   :  { %v3940_v43 = vrot.slane %v3939_v2, 2 }
0x11de   :  { %v3941_v40 = vmax.f32 %v3939_v2, %v3940_v43 }
0x11e0   :  { %v3942_v9 = vrot.slane %v3941_v40, 1 }
0x11e2   :  { %v3943_v41 = vmax.f32 %v3941_v40, %v3942_v9 }
0x11e4   :  { %v3947_v57 = vsub.f32 %v3930_v26, %v3943_v41  ;;  %v3946_v10 = vsub.f32 %v3929_v29, %v3943_v41  ;;  %v3945_v6 = vsub.f32 %v3928_v25, %v3943_v41  ;;  %v3944_v47 = vsub.f32 %v3927_v23, %v3943_v41  ;;  %v8483_v26 = vpop.f32.mrf.mxu0 }
0x11e6   :  { %v3954_v44 = vmul.f32 1.442695, %v3947_v57  ;;  %v3952_v14 = vmul.f32 1.442695, %v3946_v10  ;;  %v3950_v18 = vmul.f32 1.442695, %v3945_v6  ;;  %v4292_v27 = vpop.f32.mrf.mxu0 }
0x11e7   :  { %v3948_v49 = vmul.f32 1.442695, %v3944_v47 }
0x11e8   :  { %8953 = vpow2.f32 %v3954_v44  ;;  %v8486_v32 = vpop.f32.mrf.mxu0 }
0x11e9   :  { %8955 = vpow2.f32 %v3952_v14 }
0x11ea   :  { %8957 = vpow2.f32 %v3950_v18  ;;  %v4302_v36 = vpop.f32.mrf.mxu0 }
0x11eb   :  { %8959 = vpow2.f32 %v3948_v49 }
0x11f5   :  { %v8954_v30 = vpop.eup %8953 }
0x11f6   :  { %8448 = vmatprep.subr.mxu1 %v8954_v30  ;;  %v8956_v15 = vpop.eup %8955 }
0x11f7   :  { %8449 = vmatpush3.msra.mxu1 %v8954_v30  ;;  %v8958_v5 = vpop.eup %8957 }
0x11f8   :  { %8450 = vmatprep.subr.mxu1 %v8956_v15  ;;  %v8960_v11 = vpop.eup %8959 }
0x11f9   :  { %8451 = vmatpush3.msra.mxu1 %v8956_v15 }
0x11fa   :  { %8452 = vmatprep.subr.mxu1 %v8958_v5 }
0x11fb   :  { %8453 = vmatpush3.msra.mxu1 %v8958_v5 }
0x11fc   :  { %8454 = vmatprep.subr.mxu1 %v8960_v11 }
0x11fd   :  { %8455 = vmatpush3.msra.mxu1 %v8960_v11 }
0x11fe   :  { %8457 = vmatmul.mubr.msk.f32.vlgmr.msra.gmra.mxu1 %vm760_vm1, %v9899_v50 }
0x11ff   :  { %8463 = vmatprep.mubr.msk.f32.mxu1 %vm523_vm0, %v9875_v35 }
0x12be   :  { %v8458_v51 = vpop.f32.mrf.mxu1 }
0x12bf   :  { %8459 = vmatprep.subr.mxu1 %v8458_v51 }
0x12c0   :  { %v4022_v52 = vpop.f32.mrf.mxu1  ;;  %8460 = vmatpush3.msra.mxu1 %v8458_v51 }
0x12c1   :  { %8461 = vmatprep.subr.mxu1 %v4022_v52 }
0x12c2   :  { %8462 = vmatpush3.msra.mxu1 %v4022_v52 }
0x12c3   :  { %8464 = vmatmul.mubr.msk.f32.vlgmr.msra.gmra.mxu1 %vm523_vm0, %v9908_v12  ;;  %8469 = vmatprep.subr.msk.mxu1 %vm948_vm7, %v6717_v13 }
0x12c4   :  { %8466 = vmatprep.mubr.msk.f32.mxu1 %vm523_vm0, %v9915_v53  ;;  %8470 = vmatpush3.msk.msra.mxu1 %vm948_vm7, %v6717_v13 }
0x12c7   :  { %8467 = vmatmul.mubr.msk.f32.gmra.mxu1 %vm523_vm0, %v9922_v54 }
0x1383   :  { %v8465_v46 = vpop.f32.mrf.mxu1 }
0x1384   :  { %v4103_v59 = vadd.f32 1e-16, %v8465_v46  ;;  %v6732_v46 = vld [vmem:[%s10283_s11 + $0x2] ss:$0 sm:$0xff] }
0x1385   :  { %v4097_v58 = vpop.f32.mrf.mxu1 }
0x1386   :  { %v4098_v21 = vadd.f32 1e-16, %v4097_v58  ;;  %8961 = vrcp.f32 %v4103_v59 }
0x1387   :  { %v8468_v61 = vpop.f32.mrf.mxu1 }
0x1388   :  { %8963 = vrcp.f32 %v4098_v21  ;;  %v4113_v62 = vadd.f32 1e-16, %v8468_v61  ;;  %v6734_v21 = vld [vmem:[%s10284_s12 + $0x2] ss:$0 sm:$0xff] }
0x1389   :  { %v4107_v63 = vpop.f32.mrf.mxu1 }
0x138a   :  { %v4108_v0 = vadd.f32 1e-16, %v4107_v63  ;;  %8965 = vrcp.f32 %v4113_v62 }
0x138c   :  { %8967 = vrcp.f32 %v4108_v0 }
0x1393   :  { %v8962_v1 = vpop.eup %8961 }
0x1394   :  { %v4119_v22 = vmul.f32 %v8962_v1, %v8958_v5 }
0x1395   :  { %v8964_v17 = vpop.eup %8963 }
0x1396   :  { %v4117_v7 = vmul.f32 %v8964_v17, %v8960_v11 }
0x1397   :  { %v8966_v8 = vpop.eup %8965 }
0x1398   :  { %8471 = vmatprep.mubr.msk.f32.mxu1 %vm734_vm5, %v4117_v7  ;;  %v4123_v25 = vmul.f32 %v8966_v8, %v8954_v30 }
0x1399   :  { %v8968_v23 = vpop.eup %8967  ;;  %8472 = vmatmul.mubr.msk.f32.vlgmr.msra.gmra.mxu1 %vm734_vm5, %v4119_v22 }
0x139a   :  { %v4121_v24 = vmul.f32 %v8968_v23, %v8956_v15  ;;  %v4664_v23 = vld [vmem:[#allocation10 + $0x478] sm:$0xff] }
0x139c   :  { %8474 = vmatprep.mubr.msk.f32.mxu1 %vm734_vm5, %v4121_v24  ;;  %v4662_v24 = vld [vmem:[#allocation10 + $0x468] sm:$0xff] }
0x139d   :  { %8475 = vmatmul.mubr.msk.f32.gmra.mxu1 %vm734_vm5, %v4123_v25  ;;  %v4661_v25 = vld [vmem:[#allocation10 + $0x460] sm:$0xff] }
0x139e   :  { %8495 = vmatprep.mubr.msk.f32.mxu1 %vm760_vm1, %v9888_v19  ;;  %v6728_v19 = vld [vmem:[%s10282_s10 + $0x2] ss:$0 sm:$0xff] }
0x1459   :  { %v8473_v28 = vpop.f32.mrf.mxu1 }
0x145a   :  { %v4312_v39 = vmul.f32 %v8483_v26, %v8473_v28  ;;  %v4647_v26 = vld [vmem:[#allocation10 + $0x3f0] sm:$0xff] }
0x145b   :  { %v4207_v29 = vpop.f32.mrf.mxu1  ;;  %v4631_v28 = vld [vmem:[#allocation10 + $0x370] sm:$0xff] }
0x145c   :  { %v4311_v2 = vmul.f32 %v4292_v27, %v4207_v29  ;;  %v4660_v27 = vld [vmem:[#allocation10 + $0x458] sm:$0xff]  ;;  %v4659_v29 = vld [vmem:[#allocation10 + $0x450] sm:$0xff] }
0x145d   :  { %v8476_v34 = vpop.f32.mrf.mxu1 }
0x145e   :  { %v4314_v45 = vmul.f32 %v8486_v32, %v8476_v34  ;;  %v4630_v32 = vld [vmem:[#allocation10 + $0x368] sm:$0xff] }
0x145f   :  { %v4217_v4 = vpop.f32.mrf.mxu1  ;;  %v4658_v34 = vld [vmem:[#allocation10 + $0x448] sm:$0xff] }
0x1460   :  { %v4313_v38 = vmul.f32 %v4302_v36, %v4217_v4  ;;  %8487 = vmatprep.subr.mxu1 %v4314_v45  ;;  %v4644_v36 = vld [vmem:[#allocation10 + $0x3d8] sm:$0xff]  ;;  %v4657_v4 = vld [vmem:[#allocation10 + $0x440] sm:$0xff] }
0x1461   :  { %8488 = vmatpush3.msra.mxu1 %v4314_v45  ;;  %v4629_v45 = vld [vmem:[#allocation10 + $0x360] sm:$0xff] }
0x1462   :  { %8489 = vmatprep.subr.mxu1 %v4313_v38 }
0x1463   :  { %8490 = vmatpush3.msra.mxu1 %v4313_v38  ;;  %v4628_v38 = vld [vmem:[#allocation10 + $0x358] sm:$0xff] }
0x1464   :  { %8491 = vmatprep.subr.mxu1 %v4312_v39 }
0x1465   :  { %8492 = vmatpush3.msra.mxu1 %v4312_v39  ;;  %v4643_v39 = vld [vmem:[#allocation10 + $0x3d0] sm:$0xff] }
0x1466   :  { %8493 = vmatprep.subr.mxu1 %v4311_v2 }
0x1467   :  { %8494 = vmatpush3.msra.mxu1 %v4311_v2  ;;  %v4656_v2 = vld [vmem:[#allocation10 + $0x438] sm:$0xff] }
0x1468   :  { %8496 = vmatmul.mubr.msk.f32.vlgmr.msra.gmra.mxu1 %vm760_vm1, %v9899_v50 }
0x1469   :  { %8502 = vmatprep.mubr.msk.f32.mxu1 %vm523_vm0, %v9817_v37 }
0x1528   :  { %v8497_v43 = vpop.f32.mrf.mxu1 }
0x1529   :  { %v4395_v40 = vadd.f32 %v8497_v43, %v6728_v19  ;;  %v4642_v43 = vld [vmem:[#allocation10 + $0x3c8] sm:$0xff] }
0x152a   :  { %v4389_v9 = vpop.f32.mrf.mxu1 }
0x152b   :  { %v4390_v41 = vadd.f32 %v6728_v19, %v4389_v9  ;;  %4400 = vadd.xlane.f32.xlu0 %v4395_v40  ;;  %v4627_v19 = vld [vmem:[#allocation10 + $0x350] sm:$0xff]  ;;  %v4626_v9 = vld [vmem:[#allocation10 + $0x348] sm:$0xff] }
0x152d   :  { %4398 = vadd.xlane.f32.xlu1 %v4390_v41 }
0x15b4   :  { %v4401_v57 = vpop.xlane.xlu0 %4400 }
0x15b5   :  { %v4403_v10 = vmul.f32 0.015625, %v4401_v57  ;;  %v4654_v57 = vld [vmem:[#allocation10 + $0x428] sm:$0xff] }
0x15b6   :  { %v4399_v6 = vpop.xlane.xlu1 %4398 }
0x15b7   :  { %v4405_v44 = vsub.f32 %v4395_v40, %v4403_v10  ;;  %v4402_v47 = vmul.f32 0.015625, %v4399_v6  ;;  %v4655_v40 = vld [vmem:[#allocation10 + $0x430] sm:$0xff]  ;;  %v4625_v10 = vld [vmem:[#allocation10 + $0x340] sm:$0xff]  ;;  %v4640_v6 = vld [vmem:[#allocation10 + $0x3b8] sm:$0xff] }
0x15b9   :  { %v4404_v14 = vsub.f32 %v4390_v41, %v4402_v47  ;;  %v4407_v18 = vmul.f32 %v9470_v16, %v4405_v44  ;;  %v4641_v41 = vld [vmem:[#allocation10 + $0x3c0] sm:$0xff]  ;;  %v4624_v47 = vld [vmem:[#allocation10 + $0x338] sm:$0xff] }
0x15ba   :  { %v4653_v44 = vld [vmem:[#allocation10 + $0x420] sm:$0xff] }
0x15bb   :  { %v4409_v49 = vmul.f32 %v4407_v18, %v4407_v18  ;;  %v4406_v37 = vmul.f32 %v9470_v16, %v4404_v14  ;;  %v4639_v14 = vld [vmem:[#allocation10 + $0x3b0] sm:$0xff] }
0x15bd   :  { %4412 = vadd.xlane.f32.xlu0 %v4409_v49  ;;  %v4408_v30 = vmul.f32 %v4406_v37, %v4406_v37  ;;  %v4623_v49 = vld [vmem:[#allocation10 + $0x330] sm:$0xff] }
0x15bf   :  { %4410 = vadd.xlane.f32.xlu1 %v4408_v30  ;;  %v4651_v30 = vld [vmem:[#allocation10 + $0x410] sm:$0xff] }
0x1646   :  { %v4413_v15 = vpop.xlane.xlu0 %4412 }
0x1647   :  { %v4415_v5 = vmul.f32 0.015625, %v4413_v15  ;;  %v4622_v15 = vld [vmem:[#allocation10 + $0x328] sm:$0xff] }
0x1648   :  { %v4411_v11 = vpop.xlane.xlu1 %4410 }
0x1649   :  { %v4417_v50 = vadd.f32 1e-05, %v4415_v5  ;;  %v4414_v51 = vmul.f32 0.015625, %v4411_v11  ;;  %v4637_v5 = vld [vmem:[#allocation10 + $0x3a0] sm:$0xff]  ;;  %v4650_v11 = vld [vmem:[#allocation10 + $0x408] sm:$0xff] }
0x164b   :  { %8969 = vrsqrt.f32 %v4417_v50  ;;  %v4416_v52 = vadd.f32 1e-05, %v4414_v51  ;;  %v4621_v50 = vld [vmem:[#allocation10 + $0x320] sm:$0xff]  ;;  %v4636_v51 = vld [vmem:[#allocation10 + $0x398] sm:$0xff] }
0x164d   :  { %8971 = vrsqrt.f32 %v4416_v52  ;;  %v4649_v52 = vld [vmem:[#allocation10 + $0x400] sm:$0xff] }
0x1658   :  { %v8970_v13 = vpop.eup %8969 }
0x1659   :  { %v4421_v59 = vmul.f32 %v8970_v13, %v4407_v18  ;;  %v4652_v18 = vld [vmem:[#allocation10 + $0x418] sm:$0xff] }
0x165a   :  { %v8972_v58 = vpop.eup %8971  ;;  %v4620_v13 = vld [vmem:[#allocation10 + $0x318] sm:$0xff] }
0x165b   :  { %v4431_v61 = vmul.f32 %v6732_v46, %v4421_v59  ;;  %v4420_v62 = vmul.f32 %v8972_v58, %v4406_v37  ;;  %v4638_v37 = vld [vmem:[#allocation10 + $0x3a8] sm:$0xff]  ;;  %v4981_v59 = vld [vmem:[#allocation2 + $0x1f8] sm:$0xff]  ;;  %v4980_v58 = vld [vmem:[#allocation2 + $0x1f0] sm:$0xff] }
0x165d   :  { %v4441_v63 = vadd.f32 %v6734_v21, %v4431_v61  ;;  %v4430_v0 = vmul.f32 %v6732_v46, %v4420_v62  ;;  %v4635_v46 = vld [vmem:[#allocation10 + $0x390] sm:$0xff]  ;;  %v4979_v61 = vld [vmem:[#allocation2 + $0x1e8] sm:$0xff]  ;;  %v4978_v62 = vld [vmem:[#allocation2 + $0x1e0] sm:$0xff] }
0x165f   :  { %v4443_v1 = vmax.f32 %v4441_v63, 0.0  ;;  %v4440_v17 = vadd.f32 %v6734_v21, %v4430_v0  ;;  %v4619_v21 = vld [vmem:[#allocation10 + $0x310] sm:$0xff]  ;;  %v4977_v63 = vld [vmem:[#allocation2 + $0x1d8] sm:$0xff] }
0x1660   :  { %v4976_v0 = vld [vmem:[#allocation2 + $0x1d0] sm:$0xff] }
0x1661   :  { %v9953_v7 = vadd.f32 %v4443_v1, %v9721_v31  ;;  %v4442_v22 = vmax.f32 %v4440_v17, 0.0  ;;  %v4663_v31 = vld [vmem:[#allocation10 + $0x470] sm:$0xff]  ;;  %v4975_v1 = vld [vmem:[#allocation2 + $0x1c8] sm:$0xff]  ;;  %v4974_v17 = vld [vmem:[#allocation2 + $0x1c0] sm:$0xff] }
0x1663   :  { %v9956_v8 = vadd.f32 %v4442_v22, %v9724_v33  ;;  %8498 = vmatprep.subr.mxu1 %v9953_v7  ;;  %8508 = vmatprep.subr.mxu0 %v9953_v7  ;;  %v4648_v33 = vld [vmem:[#allocation10 + $0x3f8] sm:$0xff] }
0x1664   :  { %8499 = vmatpush3.msra.mxu1 %v9953_v7  ;;  %8509 = vmatpush3.msra.mxu0 %v9953_v7  ;;  %v4973_v22 = vld [vmem:[#allocation2 + $0x1b8] sm:$0xff] }
0x1665   :  { %8500 = vmatprep.subr.mxu1 %v9956_v8  ;;  %8510 = vmatprep.subr.mxu0 %v9956_v8 }
0x1666   :  { %8501 = vmatpush3.msra.mxu1 %v9956_v8  ;;  %8511 = vmatpush3.msra.mxu0 %v9956_v8 }
0x1667   :  { %8503 = vmatmul.mubr.msk.f32.vlgmr.msra.gmra.mxu1 %vm523_vm0, %v9854_v55  ;;  %8513 = vmatmul.mubr.msk.f32.vlgmr.msra.gmra.mxu0 %vm523_vm0, %v9908_v12  ;;  %v4632_v55 = vld [vmem:[#allocation10 + $0x378] sm:$0xff] }
0x1668   :  { %8518 = vmatprep.subr.mxu0 %v4664_v23  ;;  %8515 = vmatprep.mubr.msk.f32.mxu0 %vm523_vm0, %v9915_v53 }
0x1669   :  { %8519 = vmatpush3.msra.mxu0 %v4664_v23  ;;  %8505 = vmatprep.mubr.msk.f32.mxu1 %vm523_vm0, %v9861_v56  ;;  %v4646_v56 = vld [vmem:[#allocation10 + $0x3e8] sm:$0xff]  ;;  %v4972_v23 = vld [vmem:[#allocation2 + $0x1b0] sm:$0xff] }
0x166a   :  { %8520 = vmatprep.subr.mxu0 %v4663_v31  ;;  %7372 = vmatprep.subr.mxu1 %v4648_v33  ;;  %v4970_v33 = vld [vmem:[#allocation2 + $0x1a0] sm:$0xff] }
0x166b   :  { %8521 = vmatpush3.msra.mxu0 %v4663_v31  ;;  %8506 = vmatmul.mubr.msk.f32.gmra.mxu1 %vm523_vm0, %v9868_v48  ;;  %v4645_v48 = vld [vmem:[#allocation10 + $0x3e0] sm:$0xff]  ;;  %v4971_v31 = vld [vmem:[#allocation2 + $0x1a8] sm:$0xff] }
0x166c   :  { %8516 = vmatmul.mubr.msk.f32.gmra.mxu0 %vm523_vm0, %v9922_v54  ;;  %8522 = vmatprep.subr.mxu0 %v4662_v24 }
0x166d   :  { %8523 = vmatpush3.msra.mxu0 %v4662_v24  ;;  %8550 = vmatprep.mubr.f32.mxu0 %v9832_v42  ;;  %v4969_v24 = vld [vmem:[#allocation2 + $0x198] sm:$0xff] }
0x166e   :  { %8524 = vmatprep.subr.mxu0 %v4661_v25  ;;  %7373 = vmatpush3.msra.mxu1 %v4632_v55  ;;  %v4967_v55 = vld [vmem:[#allocation2 + $0x188] sm:$0xff] }
0x166f   :  { %8525 = vmatpush3.msra.mxu0 %v4661_v25  ;;  %7374 = vmatprep.subr.mxu1 %v4647_v26  ;;  %v4968_v25 = vld [vmem:[#allocation2 + $0x190] sm:$0xff]  ;;  %v4966_v26 = vld [vmem:[#allocation2 + $0x180] sm:$0xff] }
0x1670   :  { %8526 = vmatprep.subr.mxu0 %v4660_v27  ;;  %7375 = vmatpush3.msra.mxu1 %v4631_v28  ;;  %v5164_v28 = vld [vmem:[#allocation7 + $0x1f0] sm:$0xff] }
0x1671   :  { %8527 = vmatpush3.msra.mxu0 %v4660_v27  ;;  %7376 = vmatprep.subr.mxu1 %v4646_v56  ;;  %v5165_v27 = vld [vmem:[#allocation7 + $0x1f8] sm:$0xff]  ;;  %v4634_v56 = vld [vmem:[#allocation10 + $0x388] sm:$0xff] }
0x1672   :  { %8528 = vmatprep.subr.mxu0 %v4659_v29  ;;  %7377 = vmatpush3.msra.mxu1 %v4630_v32  ;;  %v5163_v32 = vld [vmem:[#allocation7 + $0x1e8] sm:$0xff] }
0x1673   :  { %8529 = vmatpush3.msra.mxu0 %v4659_v29  ;;  %7378 = vmatprep.subr.mxu1 %v4645_v48  ;;  %v4618_v29 = vld [vmem:[#allocation10 + $0x308] sm:$0xff]  ;;  %v4633_v48 = vld [vmem:[#allocation10 + $0x380] sm:$0xff] }
0x1674   :  { %8530 = vmatprep.subr.mxu0 %v4658_v34  ;;  %7379 = vmatpush3.msra.mxu1 %v4629_v45  ;;  %v5162_v45 = vld [vmem:[#allocation7 + $0x1e0] sm:$0xff] }
0x1675   :  { %8531 = vmatpush3.msra.mxu0 %v4658_v34  ;;  %7380 = vmatprep.subr.mxu1 %v4644_v36  ;;  %v4617_v34 = vld [vmem:[#allocation10 + $0x300] sm:$0xff]  ;;  %v5161_v36 = vld [vmem:[#allocation7 + $0x1d8] sm:$0xff] }
0x1676   :  { %8532 = vmatprep.subr.mxu0 %v4657_v4  ;;  %7381 = vmatpush3.msra.mxu1 %v4628_v38  ;;  %v5159_v38 = vld [vmem:[#allocation7 + $0x1c8] sm:$0xff] }
0x1677   :  { %8533 = vmatpush3.msra.mxu0 %v4657_v4  ;;  %7382 = vmatprep.subr.mxu1 %v4643_v39  ;;  %v5160_v4 = vld [vmem:[#allocation7 + $0x1d0] sm:$0xff]  ;;  %v5158_v39 = vld [vmem:[#allocation7 + $0x1c0] sm:$0xff] }
0x1678   :  { %8534 = vmatprep.subr.mxu0 %v4656_v2  ;;  %7383 = vmatpush3.msra.mxu1 %v4627_v19  ;;  %v5156_v19 = vld [vmem:[#allocation7 + $0x1b0] sm:$0xff] }
0x1679   :  { %8535 = vmatpush3.msra.mxu0 %v4656_v2  ;;  %7384 = vmatprep.subr.mxu1 %v4642_v43  ;;  %v5157_v2 = vld [vmem:[#allocation7 + $0x1b8] sm:$0xff]  ;;  %v5155_v43 = vld [vmem:[#allocation7 + $0x1a8] sm:$0xff] }
0x167a   :  { %8536 = vmatprep.subr.mxu0 %v4655_v40  ;;  %7385 = vmatpush3.msra.mxu1 %v4626_v9  ;;  %v5153_v9 = vld [vmem:[#allocation7 + $0x198] sm:$0xff] }
0x167b   :  { %8537 = vmatpush3.msra.mxu0 %v4655_v40  ;;  %7386 = vmatprep.subr.mxu1 %v4641_v41  ;;  %v5154_v40 = vld [vmem:[#allocation7 + $0x1a0] sm:$0xff]  ;;  %v5152_v41 = vld [vmem:[#allocation7 + $0x190] sm:$0xff] }
0x167c   :  { %8538 = vmatprep.subr.mxu0 %v4654_v57  ;;  %7387 = vmatpush3.msra.mxu1 %v4625_v10  ;;  %v5150_v10 = vld [vmem:[#allocation7 + $0x180] sm:$0xff] }
0x167d   :  { %8539 = vmatpush3.msra.mxu0 %v4654_v57  ;;  %7388 = vmatprep.subr.mxu1 %v4640_v6  ;;  %v5151_v57 = vld [vmem:[#allocation7 + $0x188] sm:$0xff] }
0x167e   :  { %8540 = vmatprep.subr.mxu0 %v4653_v44  ;;  %7389 = vmatpush3.msra.mxu1 %v4624_v47  ;;  %v6760_v6 = vld [vmem:[%s10287_s15 + $0x178] sm:$0xff] }
0x167f   :  { %8541 = vmatpush3.msra.mxu0 %v4653_v44  ;;  %7390 = vmatprep.subr.mxu1 %v4639_v14 }
0x1680   :  { %8542 = vmatprep.subr.mxu0 %v4652_v18  ;;  %7391 = vmatpush3.msra.mxu1 %v4623_v49  ;;  %v6759_v49 = vld [vmem:[%s10287_s15 + $0x170] sm:$0xff] }
0x1681   :  { %8543 = vmatpush3.msra.mxu0 %v4652_v18  ;;  %7392 = vmatprep.subr.mxu1 %v4638_v37 }
0x1682   :  { %8544 = vmatprep.subr.mxu0 %v4651_v30  ;;  %7393 = vmatpush3.msra.mxu1 %v4622_v15 }
0x1683   :  { %8545 = vmatpush3.msra.mxu0 %v4651_v30  ;;  %7394 = vmatprep.subr.mxu1 %v4637_v5  ;;  %v6757_v5 = vld [vmem:[%s10287_s15 + $0x160] sm:$0xff] }
0x1684   :  { %8546 = vmatprep.subr.mxu0 %v4650_v11  ;;  %7395 = vmatpush3.msra.mxu1 %v4621_v50  ;;  %v6756_v50 = vld [vmem:[%s10287_s15 + $0x158] sm:$0xff] }
0x1685   :  { %8547 = vmatpush3.msra.mxu0 %v4650_v11  ;;  %7396 = vmatprep.subr.mxu1 %v4636_v51  ;;  %v6755_v51 = vld [vmem:[%s10287_s15 + $0x150] sm:$0xff] }
0x1686   :  { %8548 = vmatprep.subr.mxu0 %v4649_v52  ;;  %7397 = vmatpush3.msra.mxu1 %v4620_v13  ;;  %v6753_v13 = vld [vmem:[%s10287_s15 + $0x140] sm:$0xff] }
0x1687   :  { %8549 = vmatpush3.msra.mxu0 %v4649_v52  ;;  %7398 = vmatprep.subr.mxu1 %v4635_v46  ;;  %v6754_v52 = vld [vmem:[%s10287_s15 + $0x148] sm:$0xff]  ;;  %v6752_v46 = vld [vmem:[%s10287_s15 + $0x138] sm:$0xff] }
0x1688   :  { %8551 = vmatmul.mubr.f32.vlgmr.msra.gmra.mxu0 %v9834_v3  ;;  %8594 = vmatprep.subr.mxu0 %v4981_v59 }
0x1689   :  { %8553 = vmatprep.mubr.f32.mxu0 %v9843_v20  ;;  %8595 = vmatpush3.msra.mxu0 %v4981_v59  ;;  %v6751_v59 = vld [vmem:[%s10287_s15 + $0x130] sm:$0xff] }
0x168a   :  { %8596 = vmatprep.subr.mxu0 %v4980_v58  ;;  %7399 = vmatpush3.msra.mxu1 %v4619_v21  ;;  %v6749_v21 = vld [vmem:[%s10287_s15 + $0x120] sm:$0xff] }
0x168b   :  { %8597 = vmatpush3.msra.mxu0 %v4980_v58  ;;  %7400 = vmatprep.subr.mxu1 %v4634_v56  ;;  %v6750_v58 = vld [vmem:[%s10287_s15 + $0x128] sm:$0xff] }
0x168c   :  { %8554 = vmatmul.mubr.f32.gmra.mxu0 %v9845_v60  ;;  %8598 = vmatprep.subr.mxu0 %v4979_v61 }
0x168d   :  { %8599 = vmatpush3.msra.mxu0 %v4979_v61  ;;  %8626 = vmatprep.mubr.f32.mxu0 %v9956_v8  ;;  %v6748_v61 = vld [vmem:[%s10287_s15 + $0x118] sm:$0xff] }
0x168e   :  { %8600 = vmatprep.subr.mxu0 %v4978_v62  ;;  %7401 = vmatpush3.msra.mxu1 %v4618_v29 }
0x168f   :  { %8601 = vmatpush3.msra.mxu0 %v4978_v62  ;;  %7402 = vmatprep.subr.mxu1 %v4633_v48  ;;  %v6747_v62 = vld [vmem:[%s10287_s15 + $0x110] sm:$0xff] }
0x1690   :  { %8602 = vmatprep.subr.mxu0 %v4977_v63  ;;  %7403 = vmatpush3.msra.mxu1 %v4617_v34 }
0x1691   :  { %8603 = vmatpush3.msra.mxu0 %v4977_v63  ;;  %8556 = vmatprep.subr.mxu1 %v6760_v6 }
0x1692   :  { %8604 = vmatprep.subr.mxu0 %v4976_v0 }
0x1693   :  { %8605 = vmatpush3.msra.mxu0 %v4976_v0  ;;  %v6746_v0 = vld [vmem:[%s10287_s15 + $0x108] sm:$0xff] }
0x1694   :  { %8606 = vmatprep.subr.mxu0 %v4975_v1 }
0x1695   :  { %8607 = vmatpush3.msra.mxu0 %v4975_v1  ;;  %v6745_v1 = vld [vmem:[%s10287_s15 + $0x100] sm:$0xff] }
0x1696   :  { %8608 = vmatprep.subr.mxu0 %v4974_v17 }
0x1697   :  { %8609 = vmatpush3.msra.mxu0 %v4974_v17 }
0x1698   :  { %8610 = vmatprep.subr.mxu0 %v4973_v22 }
0x1699   :  { %8611 = vmatpush3.msra.mxu0 %v4973_v22  ;;  %v5073_v22 = vld [vmem:[#allocation5 + $0x1f8] sm:$0xff] }
0x169a   :  { %8612 = vmatprep.subr.mxu0 %v4972_v23 }
0x169b   :  { %8613 = vmatpush3.msra.mxu0 %v4972_v23 }
0x169c   :  { %8614 = vmatprep.subr.mxu0 %v4971_v31 }
0x169d   :  { %8615 = vmatpush3.msra.mxu0 %v4971_v31 }
0x169e   :  { %8616 = vmatprep.subr.mxu0 %v4970_v33 }
0x169f   :  { %8617 = vmatpush3.msra.mxu0 %v4970_v33 }
0x16a0   :  { %8618 = vmatprep.subr.mxu0 %v4969_v24 }
0x16a1   :  { %8619 = vmatpush3.msra.mxu0 %v4969_v24 }
0x16a2   :  { %8620 = vmatprep.subr.mxu0 %v4968_v25 }
0x16a3   :  { %8621 = vmatpush3.msra.mxu0 %v4968_v25 }
0x16a4   :  { %8622 = vmatprep.subr.mxu0 %v4967_v55 }
0x16a5   :  { %8623 = vmatpush3.msra.mxu0 %v4967_v55 }
0x16a6   :  { %8624 = vmatprep.subr.mxu0 %v4966_v26 }
0x16a7   :  { %8625 = vmatpush3.msra.mxu0 %v4966_v26  ;;  %v10049_v26 = vld [vmem:[%s10299_s5] sm:$0xff] }
0x16a8   :  { %8627 = vmatmul.mubr.f32.vlgmr.msra.gmra.mxu0 %v9953_v7  ;;  %8664 = vmatprep.subr.mxu0 %v5165_v27 }
0x16a9   :  { %8665 = vmatpush3.msra.mxu0 %v5165_v27  ;;  %8696 = vmatprep.mubr.f32.mxu0 %v9956_v8 }
0x16aa   :  { %8666 = vmatprep.subr.mxu0 %v5164_v28 }
0x16ab   :  { %8667 = vmatpush3.msra.mxu0 %v5164_v28  ;;  %v6744_v28 = vld [vmem:[%s10286_s14 + $0x2] ss:$0 sm:$0xff] }
0x16ac   :  { %8668 = vmatprep.subr.mxu0 %v5163_v32 }
0x16ad   :  { %8669 = vmatpush3.msra.mxu0 %v5163_v32 }
0x16ae   :  { %8670 = vmatprep.subr.mxu0 %v5162_v45 }
0x16af   :  { %8671 = vmatpush3.msra.mxu0 %v5162_v45 }
0x16b0   :  { %8672 = vmatprep.subr.mxu0 %v5161_v36 }
0x16b1   :  { %8673 = vmatpush3.msra.mxu0 %v5161_v36 }
0x16b2   :  { %8674 = vmatprep.subr.mxu0 %v5160_v4 }
0x16b3   :  { %8675 = vmatpush3.msra.mxu0 %v5160_v4 }
0x16b4   :  { %8676 = vmatprep.subr.mxu0 %v5159_v38 }
0x16b5   :  { %8677 = vmatpush3.msra.mxu0 %v5159_v38 }
0x16b6   :  { %8678 = vmatprep.subr.mxu0 %v5158_v39 }
0x16b7   :  { %8679 = vmatpush3.msra.mxu0 %v5158_v39 }
0x16b8   :  { %8680 = vmatprep.subr.mxu0 %v5157_v2 }
0x16b9   :  { %8681 = vmatpush3.msra.mxu0 %v5157_v2 }
0x16ba   :  { %8682 = vmatprep.subr.mxu0 %v5156_v19 }
0x16bb   :  { %8683 = vmatpush3.msra.mxu0 %v5156_v19 }
0x16bc   :  { %8684 = vmatprep.subr.mxu0 %v5155_v43 }
0x16bd   :  { %8685 = vmatpush3.msra.mxu0 %v5155_v43 }
0x16be   :  { %8686 = vmatprep.subr.mxu0 %v5154_v40 }
0x16bf   :  { %8687 = vmatpush3.msra.mxu0 %v5154_v40 }
0x16c0   :  { %8688 = vmatprep.subr.mxu0 %v5153_v9 }
0x16c1   :  { %8689 = vmatpush3.msra.mxu0 %v5153_v9  ;;  %v5072_v9 = vld [vmem:[#allocation5 + $0x1f0] sm:$0xff] }
0x16c2   :  { %8690 = vmatprep.subr.mxu0 %v5152_v41 }
0x16c3   :  { %8691 = vmatpush3.msra.mxu0 %v5152_v41 }
0x16c4   :  { %8692 = vmatprep.subr.mxu0 %v5151_v57 }
0x16c5   :  { %8693 = vmatpush3.msra.mxu0 %v5151_v57 }
0x16c6   :  { %8694 = vmatprep.subr.mxu0 %v5150_v10 }
0x16c7   :  { %8695 = vmatpush3.msra.mxu0 %v5150_v10  ;;  %v5071_v10 = vld [vmem:[#allocation5 + $0x1e8] sm:$0xff] }
0x16c8   :  { %8697 = vmatmul.mubr.f32.vlgmr.msra.gmra.mxu0 %v9953_v7 }
0x16c9   :  { %8741 = vmatprep.mubr.msk.f32.mxu0 %vm523_vm0, %v9875_v35  ;;  %v6758_v35 = vld [vmem:[%s10287_s15 + $0x168] sm:$0xff] }
0x1727   :  { %v8504_v44 = vpop.f32.mrf.mxu1  ;;  %v8514_v47 = vpop.f32.mrf.mxu0 }
0x1729   :  { %v4512_v14 = vpop.f32.mrf.mxu1  ;;  %v4597_v18 = vpop.f32.mrf.mxu0 }
0x172a   :  { %4737 = vmatprep.mubr.f32.mxu1 %v4597_v18  ;;  %v5069_v18 = vld [vmem:[#allocation5 + $0x1d8] sm:$0xff] }
0x172b   :  { %4738 = vmatmul.mubr.f32.vlgmr.msra.gmra.mxu1 %v4512_v14  ;;  %v8507_v30 = vpop.f32.mrf.mxu1 }
0x172c   :  { %4742 = vmatprep.mubr.f32.mxu1 %v8514_v47  ;;  %v8517_v37 = vpop.f32.mrf.mxu0  ;;  %8557 = vmatpush3.msra.mxu1 %v6760_v6  ;;  %v5070_v47 = vld [vmem:[#allocation5 + $0x1e0] sm:$0xff] }
0x172d   :  { %8558 = vmatprep.subr.mxu1 %v6759_v49  ;;  %v4522_v11 = vpop.f32.mrf.mxu1 }
0x172e   :  { %v4607_v15 = vpop.f32.mrf.mxu0  ;;  %8559 = vmatpush3.msra.mxu1 %v6759_v49 }
0x172f   :  { %4743 = vmatmul.mubr.f32.gmra.mxu1 %v8504_v44  ;;  %8560 = vmatprep.subr.mxu1 %v6758_v35 }
0x1730   :  { %4747 = vmatprep.mubr.f32.mxu1 %v4607_v15  ;;  %8561 = vmatpush3.msra.mxu1 %v6758_v35  ;;  %v5066_v35 = vld [vmem:[#allocation5 + $0x1c0] sm:$0xff]  ;;  %v5065_v15 = vld [vmem:[#allocation5 + $0x1b8] sm:$0xff] }
0x1731   :  { %8562 = vmatprep.subr.mxu1 %v6757_v5 }
0x1732   :  { %8563 = vmatpush3.msra.mxu1 %v6757_v5  ;;  %v5064_v5 = vld [vmem:[#allocation5 + $0x1b0] sm:$0xff] }
0x1733   :  { %4748 = vmatmul.mubr.f32.gmra.mxu1 %v4522_v11  ;;  %8564 = vmatprep.subr.mxu1 %v6756_v50  ;;  %v5063_v11 = vld [vmem:[#allocation5 + $0x1a8] sm:$0xff] }
0x1734   :  { %4752 = vmatprep.mubr.f32.mxu1 %v8517_v37  ;;  %8565 = vmatpush3.msra.mxu1 %v6756_v50  ;;  %v5068_v37 = vld [vmem:[#allocation5 + $0x1d0] sm:$0xff]  ;;  %v5062_v50 = vld [vmem:[#allocation5 + $0x1a0] sm:$0xff] }
0x1735   :  { %8566 = vmatprep.subr.mxu1 %v6755_v51 }
0x1736   :  { %8567 = vmatpush3.msra.mxu1 %v6755_v51  ;;  %v5061_v51 = vld [vmem:[#allocation5 + $0x198] sm:$0xff] }
0x1737   :  { %4753 = vmatmul.mubr.f32.gmra.mxu1 %v8507_v30  ;;  %8568 = vmatprep.subr.mxu1 %v6754_v52  ;;  %v5067_v30 = vld [vmem:[#allocation5 + $0x1c8] sm:$0xff] }
0x1738   :  { %8569 = vmatpush3.msra.mxu1 %v6754_v52  ;;  %v5060_v52 = vld [vmem:[#allocation5 + $0x190] sm:$0xff] }
0x1739   :  { %8570 = vmatprep.subr.mxu1 %v6753_v13 }
0x173a   :  { %8571 = vmatpush3.msra.mxu1 %v6753_v13  ;;  %v5059_v13 = vld [vmem:[#allocation5 + $0x188] sm:$0xff] }
0x173b   :  { %8572 = vmatprep.subr.mxu1 %v6752_v46 }
0x173c   :  { %8573 = vmatpush3.msra.mxu1 %v6752_v46  ;;  %v5058_v46 = vld [vmem:[#allocation5 + $0x180] sm:$0xff] }
0x173d   :  { %8574 = vmatprep.subr.mxu1 %v6751_v59 }
0x173e   :  { %8575 = vmatpush3.msra.mxu1 %v6751_v59  ;;  %v5257_v59 = vld [vmem:[#allocation8 + $0x1f8] sm:$0xff] }
0x173f   :  { %8576 = vmatprep.subr.mxu1 %v6750_v58 }
0x1740   :  { %8577 = vmatpush3.msra.mxu1 %v6750_v58  ;;  %v5256_v58 = vld [vmem:[#allocation8 + $0x1f0] sm:$0xff] }
0x1741   :  { %8578 = vmatprep.subr.mxu1 %v6749_v21 }
0x1742   :  { %8579 = vmatpush3.msra.mxu1 %v6749_v21  ;;  %v5255_v21 = vld [vmem:[#allocation8 + $0x1e8] sm:$0xff] }
0x1743   :  { %8580 = vmatprep.subr.mxu1 %v6748_v61 }
0x1744   :  { %8581 = vmatpush3.msra.mxu1 %v6748_v61  ;;  %v5254_v61 = vld [vmem:[#allocation8 + $0x1e0] sm:$0xff] }
0x1745   :  { %8582 = vmatprep.subr.mxu1 %v6747_v62 }
0x1746   :  { %8583 = vmatpush3.msra.mxu1 %v6747_v62  ;;  %v5253_v62 = vld [vmem:[#allocation8 + $0x1d8] sm:$0xff] }
0x1747   :  { %8584 = vmatprep.subr.mxu1 %v6746_v0 }
0x1748   :  { %v8552_v63 = vpop.f32.mrf.mxu0  ;;  %8585 = vmatpush3.msra.mxu1 %v6746_v0  ;;  %v5251_v0 = vld [vmem:[#allocation8 + $0x1c8] sm:$0xff] }
0x1749   :  { %8586 = vmatprep.subr.mxu1 %v6745_v1 }
0x174a   :  { %v4824_v17 = vpop.f32.mrf.mxu0  ;;  %8587 = vmatpush3.msra.mxu1 %v6745_v1  ;;  %v5250_v1 = vld [vmem:[#allocation8 + $0x1c0] sm:$0xff] }
0x174b   :  { %8629 = vmatprep.subr.mxu1 %v5073_v22 }
0x174c   :  { %v8555_v23 = vpop.f32.mrf.mxu0 }
0x174e   :  { %v4834_v31 = vpop.f32.mrf.mxu0 }
0x1768   :  { %v10036_v33 = vpop.f32.mrf.mxu0 }
0x176a   :  { %v10038_v24 = vpop.f32.mrf.mxu0 }
0x1788   :  { %v8698_v25 = vpop.f32.mrf.mxu0 }
0x1789   :  { %8737 = vmatprep.subr.mxu0 %v8698_v25 }
0x178a   :  { %v5232_v55 = vpop.f32.mrf.mxu0  ;;  %8738 = vmatpush3.msra.mxu0 %v8698_v25  ;;  %v5245_v25 = vld [vmem:[#allocation8 + $0x198] sm:$0xff] }
0x178b   :  { %8739 = vmatprep.subr.mxu0 %v5232_v55 }
0x178c   :  { %8740 = vmatpush3.msra.mxu0 %v5232_v55  ;;  %v5244_v55 = vld [vmem:[#allocation8 + $0x190] sm:$0xff] }
0x178d   :  { %8742 = vmatmul.mubr.msk.f32.vlgmr.msra.gmra.mxu0 %vm523_vm0, %v9908_v12 }
0x178e   :  { %8744 = vmatprep.mubr.msk.f32.mxu0 %vm523_vm0, %v9915_v53 }
0x1791   :  { %8745 = vmatmul.mubr.msk.f32.gmra.mxu0 %vm523_vm0, %v9922_v54 }
0x1792   :  { %8751 = vmatprep.mubr.msk.f32.mxu0 %vm523_vm0, %v10049_v26 }
0x17eb   :  { %v7404_v27 = vpop.f32.mrf.mxu1 }
0x17ed   :  { %v7405_v12 = vpop.f32.mrf.mxu1 }
0x17ee   :  { %v7406_v56 = vadd.f32 %v7405_v12, %v7404_v27  ;;  %v5243_v27 = vld [vmem:[#allocation8 + $0x188] sm:$0xff]  ;;  %v6762_v12 = vld [vmem:[%s10288_s16 + $0x2] ss:$0 sm:$0xff] }
0x17ef   :  { %v7407_v29 = vpop.f32.mrf.mxu1 }
0x17f0   :  { %v4740_v53 = vadd.f32 %v7406_v56, %v6744_v28 }
0x17f1   :  { %v7408_v32 = vpop.f32.mrf.mxu1 }
0x17f2   :  { %v7409_v48 = vadd.f32 %v7408_v32, %v7407_v29  ;;  %v4825_v54 = vadd.f32 %v4824_v17, %v4740_v53  ;;  %v5249_v17 = vld [vmem:[#allocation8 + $0x1b8] sm:$0xff] }
0x17f3   :  { %v7410_v34 = vpop.f32.mrf.mxu1 }
0x17f4   :  { %v4745_v45 = vadd.f32 %v7409_v48, %v6744_v28  ;;  %v4843_v36 = vmax.f32 %v4825_v54, 0.0 }
0x17f5   :  { %v7411_v4 = vpop.f32.mrf.mxu1 }
0x17f6   :  { %v4830_v38 = vadd.f32 %v8552_v63, %v4745_v45  ;;  %v7412_v39 = vadd.f32 %v7411_v4, %v7410_v34  ;;  %8588 = vmatprep.mubr.f32.mxu1 %v4843_v36  ;;  %v5252_v63 = vld [vmem:[#allocation8 + $0x1d0] sm:$0xff] }
0x17f7   :  { %v7413_v2 = vpop.f32.mrf.mxu1 }
0x17f8   :  { %v4844_v19 = vmax.f32 %v4830_v38, 0.0  ;;  %v4750_v43 = vadd.f32 %v7412_v39, %v6744_v28 }
0x17f9   :  { %v7414_v40 = vpop.f32.mrf.mxu1 }
0x17fa   :  { %v7415_v41 = vadd.f32 %v7414_v40, %v7413_v2  ;;  %8589 = vmatmul.mubr.f32.vlgmr.msra.gmra.mxu1 %v4844_v19  ;;  %v4835_v57 = vadd.f32 %v4834_v31, %v4750_v43  ;;  %v5246_v31 = vld [vmem:[#allocation8 + $0x1a0] sm:$0xff] }
0x17fb   :  { %8630 = vmatpush3.msra.mxu1 %v5073_v22  ;;  %v5248_v22 = vld [vmem:[#allocation8 + $0x1b0] sm:$0xff] }
0x17fc   :  { %v4755_v6 = vadd.f32 %v7415_v41, %v6744_v28  ;;  %8631 = vmatprep.subr.mxu1 %v5072_v9  ;;  %v4845_v44 = vmax.f32 %v4835_v57, 0.0  ;;  %v5242_v28 = vld [vmem:[#allocation8 + $0x180] sm:$0xff] }
0x17fd   :  { %8632 = vmatpush3.msra.mxu1 %v5072_v9  ;;  %v10120_v9 = vld [vmem:[%s10276_s4] sm:$0xff] }
0x17fe   :  { %8633 = vmatprep.subr.mxu1 %v5071_v10  ;;  %8591 = vmatprep.mubr.f32.mxu1 %v4845_v44  ;;  %v4840_v14 = vadd.f32 %v8555_v23, %v4755_v6  ;;  %v5247_v23 = vld [vmem:[#allocation8 + $0x1a8] sm:$0xff] }
0x17ff   :  { %8634 = vmatpush3.msra.mxu1 %v5071_v10 }
0x1800   :  { %8635 = vmatprep.subr.mxu1 %v5070_v47  ;;  %v4846_v49 = vmax.f32 %v4840_v14, 0.0 }
0x1801   :  { %8636 = vmatpush3.msra.mxu1 %v5070_v47 }
0x1802   :  { %8637 = vmatprep.subr.mxu1 %v5069_v18  ;;  %8592 = vmatmul.mubr.f32.gmra.mxu1 %v4846_v49 }
0x1803   :  { %8638 = vmatpush3.msra.mxu1 %v5069_v18  ;;  %8661 = vmatprep.mubr.f32.mxu1 %v9956_v8 }
0x1804   :  { %8639 = vmatprep.subr.mxu1 %v5068_v37 }
0x1805   :  { %8640 = vmatpush3.msra.mxu1 %v5068_v37 }
0x1806   :  { %8641 = vmatprep.subr.mxu1 %v5067_v30 }
0x1807   :  { %8642 = vmatpush3.msra.mxu1 %v5067_v30 }
0x1808   :  { %8643 = vmatprep.subr.mxu1 %v5066_v35 }
0x1809   :  { %8644 = vmatpush3.msra.mxu1 %v5066_v35 }
0x180a   :  { %8645 = vmatprep.subr.mxu1 %v5065_v15 }
0x180b   :  { %8646 = vmatpush3.msra.mxu1 %v5065_v15 }
0x180c   :  { %8647 = vmatprep.subr.mxu1 %v5064_v5 }
0x180d   :  { %8648 = vmatpush3.msra.mxu1 %v5064_v5 }
0x180e   :  { %8649 = vmatprep.subr.mxu1 %v5063_v11 }
0x180f   :  { %8650 = vmatpush3.msra.mxu1 %v5063_v11 }
0x1810   :  { %8651 = vmatprep.subr.mxu1 %v5062_v50 }
0x1811   :  { %8652 = vmatpush3.msra.mxu1 %v5062_v50 }
0x1812   :  { %8653 = vmatprep.subr.mxu1 %v5061_v51 }
0x1813   :  { %8654 = vmatpush3.msra.mxu1 %v5061_v51 }
0x1814   :  { %8655 = vmatprep.subr.mxu1 %v5060_v52 }
0x1815   :  { %8656 = vmatpush3.msra.mxu1 %v5060_v52 }
0x1816   :  { %8657 = vmatprep.subr.mxu1 %v5059_v13 }
0x1817   :  { %8658 = vmatpush3.msra.mxu1 %v5059_v13 }
0x1818   :  { %8659 = vmatprep.subr.mxu1 %v5058_v46 }
0x1819   :  { %8660 = vmatpush3.msra.mxu1 %v5058_v46 }
0x181a   :  { %8662 = vmatmul.mubr.f32.vlgmr.msra.gmra.mxu1 %v9953_v7  ;;  %8699 = vmatprep.subr.mxu1 %v5257_v59 }
0x181b   :  { %8700 = vmatpush3.msra.mxu1 %v5257_v59 }
0x181c   :  { %8701 = vmatprep.subr.mxu1 %v5256_v58 }
0x181d   :  { %8702 = vmatpush3.msra.mxu1 %v5256_v58 }
0x181e   :  { %8703 = vmatprep.subr.mxu1 %v5255_v21 }
0x181f   :  { %8704 = vmatpush3.msra.mxu1 %v5255_v21 }
0x1820   :  { %8705 = vmatprep.subr.mxu1 %v5254_v61 }
0x1821   :  { %8706 = vmatpush3.msra.mxu1 %v5254_v61 }
0x1822   :  { %8707 = vmatprep.subr.mxu1 %v5253_v62 }
0x1823   :  { %8708 = vmatpush3.msra.mxu1 %v5253_v62 }
0x1824   :  { %8709 = vmatprep.subr.mxu1 %v5252_v63 }
0x1825   :  { %8710 = vmatpush3.msra.mxu1 %v5252_v63 }
0x1826   :  { %8711 = vmatprep.subr.mxu1 %v5251_v0 }
0x1827   :  { %8712 = vmatpush3.msra.mxu1 %v5251_v0 }
0x1828   :  { %8713 = vmatprep.subr.mxu1 %v5250_v1 }
0x1829   :  { %8714 = vmatpush3.msra.mxu1 %v5250_v1 }
0x182a   :  { %8715 = vmatprep.subr.mxu1 %v5249_v17 }
0x182b   :  { %8716 = vmatpush3.msra.mxu1 %v5249_v17 }
0x182c   :  { %8717 = vmatprep.subr.mxu1 %v5248_v22 }
0x182d   :  { %8718 = vmatpush3.msra.mxu1 %v5248_v22 }
0x182e   :  { %8719 = vmatprep.subr.mxu1 %v5247_v23 }
0x182f   :  { %8720 = vmatpush3.msra.mxu1 %v5247_v23 }
0x1830   :  { %8721 = vmatprep.subr.mxu1 %v5246_v31 }
0x1831   :  { %8722 = vmatpush3.msra.mxu1 %v5246_v31 }
0x1832   :  { %8723 = vmatprep.subr.mxu1 %v5245_v25 }
0x1833   :  { %8724 = vmatpush3.msra.mxu1 %v5245_v25 }
0x1834   :  { %8725 = vmatprep.subr.mxu1 %v5244_v55 }
0x1835   :  { %8726 = vmatpush3.msra.mxu1 %v5244_v55 }
0x1836   :  { %8727 = vmatprep.subr.mxu1 %v5243_v27 }
0x1837   :  { %8728 = vmatpush3.msra.mxu1 %v5243_v27 }
0x1838   :  { %8729 = vmatprep.subr.mxu1 %v5242_v28 }
0x1839   :  { %8730 = vmatpush3.msra.mxu1 %v5242_v28 }
0x183a   :  { %8786 = vmatprep.subr.mxu1 %v10036_v33 }
0x184d   :  { %v8743_v41 = vpop.f32.mrf.mxu0 }
0x184f   :  { %v5409_v57 = vpop.f32.mrf.mxu0 }
0x1851   :  { %v8746_v10 = vpop.f32.mrf.mxu0 }
0x1853   :  { %v5419_v6 = vpop.f32.mrf.mxu0 }
0x18ba   :  { %v8590_v56 = vpop.f32.mrf.mxu1 }
0x18bb   :  { %v4944_v29 = vadd.f32 %v8590_v56, %v6762_v12 }
0x18bc   :  { %v4938_v53 = vpop.f32.mrf.mxu1 }
0x18bd   :  { %v4939_v32 = vadd.f32 %v6762_v12, %v4938_v53  ;;  %v4958_v48 = vadd.f32 %v4944_v29, %v9834_v3 }
0x18bf   :  { %v4957_v54 = vadd.f32 %v4939_v32, %v9832_v42  ;;  %v10066_v45 = vmax.f32 %v4958_v48, 0.0 }
0x18c1   :  { %v10064_v34 = vmax.f32 %v4957_v54, 0.0 }
0x18c2   :  { %v8593_v36 = vpop.f32.mrf.mxu1 }
0x18c3   :  { %v4954_v4 = vadd.f32 %v8593_v36, %v6762_v12  ;;  %8731 = vmatprep.mubr.f32.mxu1 %v10064_v34 }
0x18c4   :  { %v4948_v38 = vpop.f32.mrf.mxu1  ;;  %8732 = vmatmul.mubr.f32.vlgmr.msra.gmra.mxu1 %v10066_v45 }
0x18c5   :  { %v4949_v39 = vadd.f32 %v6762_v12, %v4948_v38  ;;  %8787 = vmatpush3.msra.mxu1 %v10036_v33  ;;  %v4960_v2 = vadd.f32 %v4954_v4, %v9845_v60  ;;  %v10086_v60 = vld [vmem:[%s10299_s5 + $0x8] sm:$0xff]  ;;  %v10100_v33 = vld [vmem:[%s10299_s5 + $0x18] sm:$0xff] }
0x18c6   :  { %8788 = vmatprep.subr.mxu1 %v10038_v24 }
0x18c7   :  { %v4959_v42 = vadd.f32 %v4949_v39, %v9843_v20  ;;  %8789 = vmatpush3.msra.mxu1 %v10038_v24  ;;  %v10077_v19 = vmax.f32 %v4960_v2, 0.0  ;;  %v10093_v20 = vld [vmem:[%s10299_s5 + $0x10] sm:$0xff]  ;;  %v10107_v24 = vld [vmem:[%s10275_s3] sm:$0xff] }
0x18c9   :  { %v10075_v3 = vmax.f32 %v4959_v42, 0.0 }
0x18cb   :  { %8734 = vmatprep.mubr.f32.mxu1 %v10075_v3 }
0x18cc   :  { %8735 = vmatmul.mubr.f32.gmra.mxu1 %v10077_v19 }
0x18cd   :  { %8790 = vmatprep.mubr.msk.f32.mxu1 %vm523_vm0, %v10049_v26 }
0x18d0   :  { %8791 = vmatmul.mubr.msk.f32.vlgmr.msra.gmra.mxu1 %vm523_vm0, %v10086_v60 }
0x18d1   :  { %8793 = vmatprep.mubr.msk.f32.mxu1 %vm523_vm0, %v10093_v20 }
0x18d4   :  { %8794 = vmatmul.mubr.msk.f32.gmra.mxu1 %vm523_vm0, %v10100_v33 }
0x18d5   :  { %8821 = vmatprep.mubr.msk.f32.mxu1 %vm523_vm0, %v10107_v24 }
0x18da   :  { %v8663_v43 = vpop.f32.mrf.mxu1 }
0x18db   :  { %8747 = vmatprep.subr.mxu0 %v8663_v43 }
0x18dc   :  { %v5140_v40 = vpop.f32.mrf.mxu1  ;;  %8748 = vmatpush3.msra.mxu0 %v8663_v43 }
0x18dd   :  { %8749 = vmatprep.subr.mxu0 %v5140_v40 }
0x18de   :  { %8750 = vmatpush3.msra.mxu0 %v5140_v40 }
0x18df   :  { %8752 = vmatmul.mubr.msk.f32.vlgmr.msra.gmra.mxu0 %vm523_vm0, %v10086_v60 }
0x18e0   :  { %8754 = vmatprep.mubr.msk.f32.mxu0 %vm523_vm0, %v10093_v20 }
0x18e3   :  { %8755 = vmatmul.mubr.msk.f32.gmra.mxu0 %vm523_vm0, %v10100_v33 }
0x18e4   :  { %8765 = vmatprep.mubr.msk.f32.mxu0 %vm760_vm1, %v10120_v9 }
0x1984   :  { %v8733_v44 = vpop.f32.mrf.mxu1 }
0x1986   :  { %v5324_v49 = vpop.f32.mrf.mxu1 }
0x198c   :  { %v8736_v15 = vpop.f32.mrf.mxu1 }
0x198e   :  { %v5334_v59 = vpop.f32.mrf.mxu1 }
0x199f   :  { %v8753_v47 = vpop.f32.mrf.mxu0 }
0x19a0   :  { %v5500_v14 = vadd.f32 %v8753_v47, %v8743_v41  ;;  %v10140_v47 = vld [vmem:[%s10275_s3 + $0x8] sm:$0xff] }
0x19a1   :  { %v5494_v18 = vpop.f32.mrf.mxu0 }
0x19a2   :  { %v5495_v37 = vadd.f32 %v5494_v18, %v5409_v57  ;;  %v5514_v30 = vadd.f32 %v8733_v44, %v5500_v14  ;;  %v10147_v14 = vld [vmem:[%s10275_s3 + $0x10] sm:$0xff]  ;;  %v6777_v18 = vld [vmem:[%s10281_s9 + $0xc] sm:$0xf] }
0x19a3   :  { %v8756_v35 = vpop.f32.mrf.mxu0 }
0x19a4   :  { %v5513_v5 = vadd.f32 %v5495_v37, %v5324_v49  ;;  %v5510_v11 = vadd.f32 %v8756_v35, %v8746_v10  ;;  %v5522_v13 = vmul.f32 0.2, %v5514_v30  ;;  %vm5518_vm4 = vcmp.gt.f32.partialorder %v5514_v30, 0.0  ;;  %v10131_v10 = vld [vmem:[%s10276_s4 + $0x8] sm:$0xff] }
0x19a5   :  { %v5504_v50 = vpop.f32.mrf.mxu0 }
0x19a6   :  { %vm5517_vm3 = vcmp.gt.f32.partialorder %v5513_v5, 0.0  ;;  %v5521_v51 = vmul.f32 0.2, %v5513_v5  ;;  %v5516_v52 = vadd.f32 %v8736_v15, %v5510_v11  ;;  %v5505_v46 = vadd.f32 %v5504_v50, %v5419_v6 }
0x19a7   :  { %v5526_v62 = vsel %vm5518_vm4, %v5514_v30, %v5522_v13 }
0x19a8   :  { %vm5520_vm6 = vcmp.gt.f32.partialorder %v5516_v52, 0.0  ;;  %v5524_v58 = vmul.f32 0.2, %v5516_v52  ;;  %v5525_v21 = vsel %vm5517_vm3, %v5513_v5, %v5521_v51  ;;  %v5515_v61 = vadd.f32 %v5505_v46, %v5334_v59 }
0x19a9   :  { %v5529_v1 = vsel %vm734_vm5, %v5525_v21, -inf  ;;  %v5530_v22 = vsel %vm734_vm5, %v5526_v62, -inf }
0x19aa   :  { %v5528_v63 = vsel %vm5520_vm6, %v5516_v52, %v5524_v58  ;;  %vm5519_vm8 = vcmp.gt.f32.partialorder %v5515_v61, 0.0  ;;  %v5523_v0 = vmul.f32 0.2, %v5515_v61  ;;  %v5533_v25 = vmax.f32 %v5529_v1, %v5530_v22 }
0x19ab   :  { %v5532_v23 = vsel %vm734_vm5, %v5528_v63, -inf }
0x19ac   :  { %v5527_v17 = vsel %vm5519_vm8, %v5515_v61, %v5523_v0 }
0x19ad   :  { %v5531_v31 = vsel %vm734_vm5, %v5527_v17, -inf }
0x19ae   :  { %v5534_v55 = vmax.f32 %v5531_v31, %v5532_v23 }
0x19b0   :  { %v5535_v27 = vmax.f32 %v5533_v25, %v5534_v55 }
0x19b2   :  { %v5536_v28 = vrot.slane %v5535_v27, 4 }
0x19b4   :  { %v5537_v12 = vmax.f32 %v5535_v27, %v5536_v28 }
0x19b6   :  { %v5538_v56 = vrot.slane %v5537_v12, 2 }
0x19b8   :  { %v5539_v29 = vmax.f32 %v5537_v12, %v5538_v56 }
0x19ba   :  { %v5540_v53 = vrot.slane %v5539_v29, 1 }
0x19bc   :  { %v5541_v32 = vmax.f32 %v5539_v29, %v5540_v53 }
0x19be   :  { %v5545_v48 = vsub.f32 %v5528_v63, %v5541_v32  ;;  %v5544_v54 = vsub.f32 %v5527_v17, %v5541_v32  ;;  %v5543_v36 = vsub.f32 %v5526_v62, %v5541_v32  ;;  %v5542_v38 = vsub.f32 %v5525_v21, %v5541_v32  ;;  %v8792_v62 = vpop.f32.mrf.mxu1 }
0x19c0   :  { %v5552_v4 = vmul.f32 1.442695, %v5545_v48  ;;  %v5550_v39 = vmul.f32 1.442695, %v5544_v54  ;;  %v5548_v2 = vmul.f32 1.442695, %v5543_v36  ;;  %v5890_v63 = vpop.f32.mrf.mxu1 }
0x19c1   :  { %v5546_v42 = vmul.f32 1.442695, %v5542_v38 }
0x19c2   :  { %8973 = vpow2.f32 %v5552_v4  ;;  %v8795_v17 = vpop.f32.mrf.mxu1 }
0x19c3   :  { %8975 = vpow2.f32 %v5550_v39 }
0x19c4   :  { %8977 = vpow2.f32 %v5548_v2  ;;  %v5900_v31 = vpop.f32.mrf.mxu1 }
0x19c5   :  { %8979 = vpow2.f32 %v5546_v42 }
0x19cf   :  { %v8974_v43 = vpop.eup %8973 }
0x19d0   :  { %8757 = vmatprep.subr.mxu0 %v8974_v43  ;;  %v8976_v40 = vpop.eup %8975 }
0x19d1   :  { %8758 = vmatpush3.msra.mxu0 %v8974_v43  ;;  %v8978_v41 = vpop.eup %8977 }
0x19d2   :  { %8759 = vmatprep.subr.mxu0 %v8976_v40  ;;  %v8980_v57 = vpop.eup %8979 }
0x19d3   :  { %8760 = vmatpush3.msra.mxu0 %v8976_v40 }
0x19d4   :  { %8761 = vmatprep.subr.mxu0 %v8978_v41 }
0x19d5   :  { %8762 = vmatpush3.msra.mxu0 %v8978_v41 }
0x19d6   :  { %8763 = vmatprep.subr.mxu0 %v8980_v57 }
0x19d7   :  { %8764 = vmatpush3.msra.mxu0 %v8980_v57 }
0x19d8   :  { %8766 = vmatmul.mubr.msk.f32.vlgmr.msra.gmra.mxu0 %vm760_vm1, %v10131_v10 }
0x19d9   :  { %8772 = vmatprep.mubr.msk.f32.mxu0 %vm523_vm0, %v10107_v24  ;;  %v10154_v24 = vld [vmem:[%s10275_s3 + $0x18] sm:$0xff] }
0x1a98   :  { %v8767_v6 = vpop.f32.mrf.mxu0 }
0x1a99   :  { %8768 = vmatprep.subr.mxu0 %v8767_v6 }
0x1a9a   :  { %v5620_v44 = vpop.f32.mrf.mxu0  ;;  %8769 = vmatpush3.msra.mxu0 %v8767_v6 }
0x1a9b   :  { %8770 = vmatprep.subr.mxu0 %v5620_v44 }
0x1a9c   :  { %8771 = vmatpush3.msra.mxu0 %v5620_v44 }
0x1a9d   :  { %8773 = vmatmul.mubr.msk.f32.vlgmr.msra.gmra.mxu0 %vm523_vm0, %v10140_v47  ;;  %8778 = vmatprep.subr.msk.mxu0 %vm948_vm7, %v6777_v18 }
0x1a9e   :  { %8775 = vmatprep.mubr.msk.f32.mxu0 %vm523_vm0, %v10147_v14  ;;  %8779 = vmatpush3.msk.msra.mxu0 %vm948_vm7, %v6777_v18  ;;  %v6792_v18 = vld [vmem:[%s10283_s11 + $0x3] ss:$0 sm:$0xff] }
0x1aa1   :  { %8776 = vmatmul.mubr.msk.f32.gmra.mxu0 %vm523_vm0, %v10154_v24 }
0x1b5d   :  { %v8774_v49 = vpop.f32.mrf.mxu0 }
0x1b5e   :  { %v5701_v37 = vadd.f32 1e-16, %v8774_v49 }
0x1b5f   :  { %v5695_v30 = vpop.f32.mrf.mxu0 }
0x1b60   :  { %v5696_v35 = vadd.f32 1e-16, %v5695_v30  ;;  %8981 = vrcp.f32 %v5701_v37 }
0x1b61   :  { %v8777_v15 = vpop.f32.mrf.mxu0 }
0x1b62   :  { %8983 = vrcp.f32 %v5696_v35  ;;  %v5711_v5 = vadd.f32 1e-16, %v8777_v15 }
0x1b63   :  { %v5705_v11 = vpop.f32.mrf.mxu0 }
0x1b64   :  { %v5706_v50 = vadd.f32 1e-16, %v5705_v11  ;;  %8985 = vrcp.f32 %v5711_v5 }
0x1b66   :  { %8987 = vrcp.f32 %v5706_v50 }
0x1b6d   :  { %v8982_v51 = vpop.eup %8981 }
0x1b6e   :  { %v5717_v46 = vmul.f32 %v8982_v51, %v8978_v41 }
0x1b6f   :  { %v8984_v52 = vpop.eup %8983 }
0x1b70   :  { %v5715_v13 = vmul.f32 %v8984_v52, %v8980_v57 }
0x1b71   :  { %v8986_v59 = vpop.eup %8985 }
0x1b72   :  { %8780 = vmatprep.mubr.msk.f32.mxu0 %vm734_vm5, %v5715_v13  ;;  %v5721_v61 = vmul.f32 %v8986_v59, %v8974_v43  ;;  %v6261_v59 = vld [vmem:[#allocation10 + $0x5f0] sm:$0xff] }
0x1b73   :  { %v8988_v58 = vpop.eup %8987  ;;  %8781 = vmatmul.mubr.msk.f32.vlgmr.msra.gmra.mxu0 %vm734_vm5, %v5717_v46  ;;  %v6262_v46 = vld [vmem:[#allocation10 + $0x5f8] sm:$0xff] }
0x1b74   :  { %v5719_v21 = vmul.f32 %v8988_v58, %v8976_v40  ;;  %v6230_v58 = vld [vmem:[#allocation10 + $0x4f8] sm:$0xff] }
0x1b76   :  { %8783 = vmatprep.mubr.msk.f32.mxu0 %vm734_vm5, %v5719_v21  ;;  %v6257_v21 = vld [vmem:[#allocation10 + $0x5d0] sm:$0xff] }
0x1b77   :  { %8784 = vmatmul.mubr.msk.f32.gmra.mxu0 %vm734_vm5, %v5721_v61  ;;  %v6229_v61 = vld [vmem:[#allocation10 + $0x4f0] sm:$0xff] }
0x1b78   :  { %8804 = vmatprep.mubr.msk.f32.mxu0 %vm760_vm1, %v10120_v9  ;;  %v6788_v9 = vld [vmem:[%s10282_s10 + $0x3] ss:$0 sm:$0xff] }
0x1c33   :  { %v8782_v0 = vpop.f32.mrf.mxu0 }
0x1c34   :  { %v5910_v27 = vmul.f32 %v8792_v62, %v8782_v0  ;;  %v6228_v62 = vld [vmem:[#allocation10 + $0x4e8] sm:$0xff]  ;;  %v6255_v0 = vld [vmem:[#allocation10 + $0x5c0] sm:$0xff] }
0x1c35   :  { %v5805_v1 = vpop.f32.mrf.mxu0 }
0x1c36   :  { %v5909_v28 = vmul.f32 %v5890_v63, %v5805_v1  ;;  %v6243_v63 = vld [vmem:[#allocation10 + $0x560] sm:$0xff] }
0x1c37   :  { %v8785_v22 = vpop.f32.mrf.mxu0  ;;  %v6227_v1 = vld [vmem:[#allocation10 + $0x4e0] sm:$0xff] }
0x1c38   :  { %v5912_v23 = vmul.f32 %v8795_v17, %v8785_v22  ;;  %v6254_v17 = vld [vmem:[#allocation10 + $0x5b8] sm:$0xff] }
0x1c39   :  { %v5815_v25 = vpop.f32.mrf.mxu0  ;;  %v6226_v22 = vld [vmem:[#allocation10 + $0x4d8] sm:$0xff] }
0x1c3a   :  { %v5911_v55 = vmul.f32 %v5900_v31, %v5815_v25  ;;  %8796 = vmatprep.subr.mxu0 %v5912_v23  ;;  %v6253_v31 = vld [vmem:[#allocation10 + $0x5b0] sm:$0xff] }
0x1c3b   :  { %8797 = vmatpush3.msra.mxu0 %v5912_v23  ;;  %v6241_v23 = vld [vmem:[#allocation10 + $0x550] sm:$0xff] }
0x1c3c   :  { %8798 = vmatprep.subr.mxu0 %v5911_v55  ;;  %v6225_v25 = vld [vmem:[#allocation10 + $0x4d0] sm:$0xff] }
0x1c3d   :  { %8799 = vmatpush3.msra.mxu0 %v5911_v55  ;;  %v6240_v55 = vld [vmem:[#allocation10 + $0x548] sm:$0xff] }
0x1c3e   :  { %8800 = vmatprep.subr.mxu0 %v5910_v27 }
0x1c3f   :  { %8801 = vmatpush3.msra.mxu0 %v5910_v27  ;;  %v6252_v27 = vld [vmem:[#allocation10 + $0x5a8] sm:$0xff] }
0x1c40   :  { %8802 = vmatprep.subr.mxu0 %v5909_v28 }
0x1c41   :  { %8803 = vmatpush3.msra.mxu0 %v5909_v28  ;;  %v6224_v28 = vld [vmem:[#allocation10 + $0x4c8] sm:$0xff] }
0x1c42   :  { %8805 = vmatmul.mubr.msk.f32.vlgmr.msra.gmra.mxu0 %vm760_vm1, %v10131_v10 }
0x1c43   :  { %8811 = vmatprep.mubr.msk.f32.mxu0 %vm523_vm0, %v10049_v26 }
0x1d02   :  { %v8806_v12 = vpop.f32.mrf.mxu0 }
0x1d03   :  { %v5993_v56 = vadd.f32 %v8806_v12, %v6788_v9  ;;  %v6251_v12 = vld [vmem:[#allocation10 + $0x5a0] sm:$0xff] }
0x1d04   :  { %v5987_v29 = vpop.f32.mrf.mxu0 }
0x1d05   :  { %v5988_v53 = vadd.f32 %v6788_v9, %v5987_v29  ;;  %5998 = vadd.xlane.f32.xlu0 %v5993_v56  ;;  %v6239_v9 = vld [vmem:[#allocation10 + $0x540] sm:$0xff]  ;;  %v6238_v29 = vld [vmem:[#allocation10 + $0x538] sm:$0xff] }
0x1d07   :  { %5996 = vadd.xlane.f32.xlu1 %v5988_v53 }
0x1d8e   :  { %v5999_v32 = vpop.xlane.xlu0 %5998 }
0x1d8f   :  { %v6001_v48 = vmul.f32 0.015625, %v5999_v32  ;;  %v6222_v32 = vld [vmem:[#allocation10 + $0x4b8] sm:$0xff] }
0x1d90   :  { %v5997_v54 = vpop.xlane.xlu1 %5996 }
0x1d91   :  { %v6003_v36 = vsub.f32 %v5993_v56, %v6001_v48  ;;  %v6000_v4 = vmul.f32 0.015625, %v5997_v54  ;;  %v6223_v56 = vld [vmem:[#allocation10 + $0x4c0] sm:$0xff]  ;;  %v6237_v48 = vld [vmem:[#allocation10 + $0x530] sm:$0xff] }
0x1d92   :  { %v6249_v54 = vld [vmem:[#allocation10 + $0x590] sm:$0xff] }
0x1d93   :  { %v6002_v38 = vsub.f32 %v5988_v53, %v6000_v4  ;;  %v6005_v39 = vmul.f32 %v9470_v16, %v6003_v36  ;;  %v6250_v53 = vld [vmem:[#allocation10 + $0x598] sm:$0xff]  ;;  %v6221_v36 = vld [vmem:[#allocation10 + $0x4b0] sm:$0xff]  ;;  %v6236_v4 = vld [vmem:[#allocation10 + $0x528] sm:$0xff] }
0x1d95   :  { %v6007_v2 = vmul.f32 %v6005_v39, %v6005_v39  ;;  %v6004_v26 = vmul.f32 %v9470_v16, %v6002_v38  ;;  %v6794_v16 = vld [vmem:[%s10284_s12 + $0x3] ss:$0 sm:$0xff]  ;;  %v6248_v38 = vld [vmem:[#allocation10 + $0x588] sm:$0xff] }
0x1d97   :  { %6010 = vadd.xlane.f32.xlu0 %v6007_v2  ;;  %v6006_v42 = vmul.f32 %v6004_v26, %v6004_v26  ;;  %v6235_v2 = vld [vmem:[#allocation10 + $0x520] sm:$0xff] }
0x1d99   :  { %6008 = vadd.xlane.f32.xlu1 %v6006_v42  ;;  %v6219_v42 = vld [vmem:[#allocation10 + $0x4a0] sm:$0xff] }
0x1e20   :  { %v6011_v43 = vpop.xlane.xlu0 %6010 }
0x1e21   :  { %v6013_v40 = vmul.f32 0.015625, %v6011_v43  ;;  %v6234_v43 = vld [vmem:[#allocation10 + $0x518] sm:$0xff] }
0x1e22   :  { %v6009_v41 = vpop.xlane.xlu1 %6008 }
0x1e23   :  { %v6015_v57 = vadd.f32 1e-05, %v6013_v40  ;;  %v6012_v10 = vmul.f32 0.015625, %v6009_v41  ;;  %v6218_v40 = vld [vmem:[#allocation10 + $0x498] sm:$0xff]  ;;  %v6233_v41 = vld [vmem:[#allocation10 + $0x510] sm:$0xff] }
0x1e25   :  { %8989 = vrsqrt.f32 %v6015_v57  ;;  %v6014_v6 = vadd.f32 1e-05, %v6012_v10  ;;  %v6217_v57 = vld [vmem:[#allocation10 + $0x490] sm:$0xff]  ;;  %v6232_v10 = vld [vmem:[#allocation10 + $0x508] sm:$0xff] }
0x1e27   :  { %8991 = vrsqrt.f32 %v6014_v6  ;;  %v6216_v6 = vld [vmem:[#allocation10 + $0x488] sm:$0xff] }
0x1e32   :  { %v8990_v44 = vpop.eup %8989 }
0x1e33   :  { %v6019_v49 = vmul.f32 %v8990_v44, %v6005_v39  ;;  %v6220_v39 = vld [vmem:[#allocation10 + $0x4a8] sm:$0xff]  ;;  %v6231_v44 = vld [vmem:[#allocation10 + $0x500] sm:$0xff] }
0x1e34   :  { %v8992_v37 = vpop.eup %8991 }
0x1e35   :  { %v6018_v30 = vmul.f32 %v8992_v37, %v6004_v26  ;;  %v6029_v35 = vmul.f32 %v6792_v18, %v6019_v49  ;;  %v6247_v26 = vld [vmem:[#allocation10 + $0x580] sm:$0xff]  ;;  %v6820_v49 = vld [vmem:[%s10287_s15 + $0x1f8] sm:$0xff] }
0x1e37   :  { %v6039_v15 = vadd.f32 %v6794_v16, %v6029_v35  ;;  %v6028_v5 = vmul.f32 %v6792_v18, %v6018_v30  ;;  %v6215_v18 = vld [vmem:[#allocation10 + $0x480] sm:$0xff] }
0x1e39   :  { %v6041_v11 = vmax.f32 %v6039_v15, 0.0  ;;  %v6038_v50 = vadd.f32 %v6794_v16, %v6028_v5  ;;  %v6819_v15 = vld [vmem:[%s10287_s15 + $0x1f0] sm:$0xff] }
0x1e3b   :  { %v6043_v51 = vadd.f32 %v6041_v11, %v9953_v7  ;;  %v6040_v52 = vmax.f32 %v6038_v50, 0.0  ;;  %v6260_v7 = vld [vmem:[#allocation10 + $0x5e8] sm:$0xff]  ;;  %v6818_v11 = vld [vmem:[%s10287_s15 + $0x1e8] sm:$0xff] }
0x1e3d   :  { %8807 = vmatprep.subr.mxu0 %v6043_v51  ;;  %6564 = vst [vmem:[#allocation11 + $0x8] sm:$0xff] %v6043_v51  ;;  %8817 = vmatprep.subr.mxu1 %v6043_v51  ;;  %v6042_v13 = vadd.f32 %v6040_v52, %v9956_v8  ;;  %v6259_v8 = vld [vmem:[#allocation10 + $0x5e0] sm:$0xff]  ;;  %v6817_v52 = vld [vmem:[%s10287_s15 + $0x1e0] sm:$0xff] }
0x1e3e   :  { %8808 = vmatpush3.msra.mxu0 %v6043_v51  ;;  %8818 = vmatpush3.msra.mxu1 %v6043_v51 }
0x1e3f   :  { %8809 = vmatprep.subr.mxu0 %v6042_v13  ;;  %6563 = vst [vmem:[#allocation11] sm:$0xff] %v6042_v13  ;;  %8819 = vmatprep.subr.mxu1 %v6042_v13 }
0x1e40   :  { %8810 = vmatpush3.msra.mxu0 %v6042_v13  ;;  %8820 = vmatpush3.msra.mxu1 %v6042_v13  ;;  %v6816_v13 = vld [vmem:[%s10287_s15 + $0x1d8] sm:$0xff] }
0x1e41   :  { %8822 = vmatmul.mubr.msk.f32.vlgmr.msra.gmra.mxu1 %vm523_vm0, %v10140_v47  ;;  %8827 = vmatprep.subr.mxu1 %v6262_v46  ;;  %v6246_v47 = vld [vmem:[#allocation10 + $0x578] sm:$0xff] }
0x1e42   :  { %8812 = vmatmul.mubr.msk.f32.vlgmr.msra.gmra.mxu0 %vm523_vm0, %v10086_v60  ;;  %8828 = vmatpush3.msra.mxu1 %v6262_v46  ;;  %v6258_v60 = vld [vmem:[#allocation10 + $0x5d8] sm:$0xff] }
0x1e43   :  { %8829 = vmatprep.subr.mxu1 %v6261_v59  ;;  %8824 = vmatprep.mubr.msk.f32.mxu1 %vm523_vm0, %v10147_v14  ;;  %v6245_v14 = vld [vmem:[#allocation10 + $0x570] sm:$0xff] }
0x1e44   :  { %8830 = vmatpush3.msra.mxu1 %v6261_v59  ;;  %8814 = vmatprep.mubr.msk.f32.mxu0 %vm523_vm0, %v10093_v20  ;;  %v6244_v20 = vld [vmem:[#allocation10 + $0x568] sm:$0xff]  ;;  %v6815_v59 = vld [vmem:[%s10287_s15 + $0x1d0] sm:$0xff] }
0x1e45   :  { %8825 = vmatmul.mubr.msk.f32.gmra.mxu1 %vm523_vm0, %v10154_v24  ;;  %8831 = vmatprep.subr.mxu1 %v6260_v7  ;;  %v6256_v24 = vld [vmem:[#allocation10 + $0x5c8] sm:$0xff] }
0x1e46   :  { %8832 = vmatpush3.msra.mxu1 %v6260_v7  ;;  %8859 = vmatprep.mubr.f32.mxu1 %v10064_v34  ;;  %v6814_v7 = vld [vmem:[%s10287_s15 + $0x1c8] sm:$0xff] }
0x1e47   :  { %8833 = vmatprep.subr.mxu1 %v6259_v8  ;;  %8815 = vmatmul.mubr.msk.f32.gmra.mxu0 %vm523_vm0, %v10100_v33  ;;  %v6242_v33 = vld [vmem:[#allocation10 + $0x558] sm:$0xff] }
0x1e48   :  { %8834 = vmatpush3.msra.mxu1 %v6259_v8  ;;  %7583 = vmatprep.subr.mxu0 %v6246_v47  ;;  %v6813_v8 = vld [vmem:[%s10287_s15 + $0x1c0] sm:$0xff]  ;;  %v6812_v47 = vld [vmem:[%s10287_s15 + $0x1b8] sm:$0xff] }
0x1e49   :  { %8835 = vmatprep.subr.mxu1 %v6258_v60  ;;  %7584 = vmatpush3.msra.mxu0 %v6230_v58  ;;  %v6810_v58 = vld [vmem:[%s10287_s15 + $0x1a8] sm:$0xff] }
0x1e4a   :  { %8836 = vmatpush3.msra.mxu1 %v6258_v60  ;;  %7585 = vmatprep.subr.mxu0 %v6245_v14  ;;  %v6811_v60 = vld [vmem:[%s10287_s15 + $0x1b0] sm:$0xff]  ;;  %v6809_v14 = vld [vmem:[%s10287_s15 + $0x1a0] sm:$0xff] }
0x1e4b   :  { %8837 = vmatprep.subr.mxu1 %v6257_v21  ;;  %7586 = vmatpush3.msra.mxu0 %v6229_v61  ;;  %v6807_v61 = vld [vmem:[%s10287_s15 + $0x190] sm:$0xff] }
0x1e4c   :  { %8838 = vmatpush3.msra.mxu1 %v6257_v21  ;;  %7587 = vmatprep.subr.mxu0 %v6244_v20  ;;  %v6808_v21 = vld [vmem:[%s10287_s15 + $0x198] sm:$0xff]  ;;  %v6806_v20 = vld [vmem:[%s10287_s15 + $0x188] sm:$0xff] }
0x1e4d   :  { %8839 = vmatprep.subr.mxu1 %v6256_v24  ;;  %7588 = vmatpush3.msra.mxu0 %v6228_v62 }
0x1e4e   :  { %8840 = vmatpush3.msra.mxu1 %v6256_v24  ;;  %7589 = vmatprep.subr.mxu0 %v6243_v63  ;;  %v6805_v24 = vld [vmem:[%s10287_s15 + $0x180] sm:$0xff] }
0x1e4f   :  { %8841 = vmatprep.subr.mxu1 %v6255_v0  ;;  %7590 = vmatpush3.msra.mxu0 %v6227_v1 }
0x1e50   :  { %8842 = vmatpush3.msra.mxu1 %v6255_v0  ;;  %7591 = vmatprep.subr.mxu0 %v6242_v33  ;;  %v6804_v0 = vld [vmem:[%s10286_s14 + $0x3] ss:$0 sm:$0xff]  ;;  %s9185_s14 = smov [#allocation11]  }
0x1e51   :  { %8843 = vmatprep.subr.mxu1 %v6254_v17  ;;  %7592 = vmatpush3.msra.mxu0 %v6226_v22  ;;  %s6574_s15 = sshll.u32 %s9185_s14, 4  ;;  %s6575_s15 = int_to_ptr.vmem [resolvable:$true] %s6574_s15 }
0x1e52   :  { %8844 = vmatpush3.msra.mxu1 %v6254_v17  ;;  %7593 = vmatprep.subr.mxu0 %v6241_v23  ;;  %s9127_s8 = scalar_lea.vmem %s6575_s15, 256  ;;  %p9132_p12 = scmp.lt.s32.totalorder %s6575_s15, %s6575_s15 }
0x1e53   :  { %8845 = vmatprep.subr.mxu1 %v6253_v31  ;;  %7594 = vmatpush3.msra.mxu0 %v6225_v25  ;;  %p9128_p11 = scmp.ne.s32.totalorder %s6575_s15, %s9127_s8  ;;  %p9133_p13 = scmp.lt.s32.totalorder %s9127_s8, %s9127_s8 }
0x1e54   :  { %8846 = vmatpush3.msra.mxu1 %v6253_v31  ;;  %7595 = vmatprep.subr.mxu0 %v6240_v55 }
0x1e55   :  { %8847 = vmatprep.subr.mxu1 %v6252_v27  ;;  %7596 = vmatpush3.msra.mxu0 %v6224_v28  ;;  %p9134_p0 = por %p9133_p13, %p9132_p12 }
0x1e56   :  { %8848 = vmatpush3.msra.mxu1 %v6252_v27  ;;  %7597 = vmatprep.subr.mxu0 %v6239_v9 }
0x1e57   :  { %8849 = vmatprep.subr.mxu1 %v6251_v12  ;;  %7598 = vmatpush3.msra.mxu0 %v6223_v56  ;;  %p9135_p1 = pnand %p9134_p0, %p9128_p11 }
0x1e58   :  { %8850 = vmatpush3.msra.mxu1 %v6251_v12  ;;  %7599 = vmatprep.subr.mxu0 %v6238_v29 }
0x1e59   :  { %8851 = vmatprep.subr.mxu1 %v6250_v53  ;;  %7600 = vmatpush3.msra.mxu0 %v6222_v32 }
0x1e5a   :  { %8852 = vmatpush3.msra.mxu1 %v6250_v53  ;;  %7601 = vmatprep.subr.mxu0 %v6237_v48 }
0x1e5b   :  { %8853 = vmatprep.subr.mxu1 %v6249_v54  ;;  %7602 = vmatpush3.msra.mxu0 %v6221_v36 }
0x1e5c   :  { %8854 = vmatpush3.msra.mxu1 %v6249_v54  ;;  %7603 = vmatprep.subr.mxu0 %v6236_v4 }
0x1e5d   :  { %8855 = vmatprep.subr.mxu1 %v6248_v38  ;;  %7604 = vmatpush3.msra.mxu0 %v6220_v39 }
0x1e5e   :  { %8856 = vmatpush3.msra.mxu1 %v6248_v38  ;;  %7605 = vmatprep.subr.mxu0 %v6235_v2 }
0x1e5f   :  { %8857 = vmatprep.subr.mxu1 %v6247_v26  ;;  %7606 = vmatpush3.msra.mxu0 %v6219_v42 }
0x1e60   :  { %8858 = vmatpush3.msra.mxu1 %v6247_v26  ;;  %7607 = vmatprep.subr.mxu0 %v6234_v43 }
0x1e61   :  { %8860 = vmatmul.mubr.f32.vlgmr.msra.gmra.mxu1 %v10066_v45  ;;  %7608 = vmatpush3.msra.mxu0 %v6218_v40 }
0x1e62   :  { %8862 = vmatprep.mubr.f32.mxu1 %v10075_v3  ;;  %7609 = vmatprep.subr.mxu0 %v6233_v41 }
0x1e63   :  { %7610 = vmatpush3.msra.mxu0 %v6217_v57 }
0x1e64   :  { %7611 = vmatprep.subr.mxu0 %v6232_v10 }
0x1e65   :  { %8863 = vmatmul.mubr.f32.gmra.mxu1 %v10077_v19  ;;  %7612 = vmatpush3.msra.mxu0 %v6216_v6 }
0x1e66   :  { %7613 = vmatprep.subr.mxu0 %v6231_v44 }
0x1e67   :  { %7614 = vmatpush3.msra.mxu0 %v6215_v18 }
0x1e68   :  { %8865 = vmatprep.subr.mxu0 %v6820_v49 }
0x1f01   :  { %v8823_v37 = vpop.f32.mrf.mxu1 }
0x1f02   :  { %v8813_v16 = vpop.f32.mrf.mxu0 }
0x1f03   :  { %v6195_v30 = vpop.f32.mrf.mxu1 }
0x1f04   :  { %v6110_v35 = vpop.f32.mrf.mxu0  ;;  %6335 = vmatprep.mubr.f32.mxu0 %v6195_v30 }
0x1f05   :  { %6336 = vmatmul.mubr.f32.vlgmr.msra.gmra.mxu0 %v6110_v35  ;;  %v8826_v5 = vpop.f32.mrf.mxu1 }
0x1f06   :  { %6340 = vmatprep.mubr.f32.mxu0 %v8823_v37  ;;  %8866 = vmatpush3.msra.mxu0 %v6820_v49 }
0x1f07   :  { %v6205_v50 = vpop.f32.mrf.mxu1  ;;  %8867 = vmatprep.subr.mxu0 %v6819_v15  ;;  %v8816_v51 = vpop.f32.mrf.mxu0 }
0x1f08   :  { %8868 = vmatpush3.msra.mxu0 %v6819_v15 }
0x1f09   :  { %6341 = vmatmul.mubr.f32.gmra.mxu0 %v8813_v16  ;;  %8869 = vmatprep.subr.mxu0 %v6818_v11  ;;  %v6120_v46 = vpop.f32.mrf.mxu0 }
0x1f0a   :  { %6345 = vmatprep.mubr.f32.mxu0 %v6205_v50  ;;  %8870 = vmatpush3.msra.mxu0 %v6818_v11 }
0x1f0b   :  { %8871 = vmatprep.subr.mxu0 %v6817_v52 }
0x1f0c   :  { %8872 = vmatpush3.msra.mxu0 %v6817_v52 }
0x1f0d   :  { %6346 = vmatmul.mubr.f32.gmra.mxu0 %v6120_v46  ;;  %8873 = vmatprep.subr.mxu0 %v6816_v13 }
0x1f0e   :  { %6350 = vmatprep.mubr.f32.mxu0 %v8826_v5  ;;  %8874 = vmatpush3.msra.mxu0 %v6816_v13 }
0x1f0f   :  { %8875 = vmatprep.subr.mxu0 %v6815_v59 }
0x1f10   :  { %8876 = vmatpush3.msra.mxu0 %v6815_v59 }
0x1f11   :  { %6351 = vmatmul.mubr.f32.gmra.mxu0 %v8816_v51  ;;  %8877 = vmatprep.subr.mxu0 %v6814_v7 }
0x1f12   :  { %8878 = vmatpush3.msra.mxu0 %v6814_v7 }
0x1f13   :  { %8879 = vmatprep.subr.mxu0 %v6813_v8 }
0x1f14   :  { %8880 = vmatpush3.msra.mxu0 %v6813_v8 }
0x1f15   :  { %8881 = vmatprep.subr.mxu0 %v6812_v47 }
0x1f16   :  { %8882 = vmatpush3.msra.mxu0 %v6812_v47 }
0x1f17   :  { %8883 = vmatprep.subr.mxu0 %v6811_v60 }
0x1f18   :  { %8884 = vmatpush3.msra.mxu0 %v6811_v60 }
0x1f19   :  { %8885 = vmatprep.subr.mxu0 %v6810_v58 }
0x1f1a   :  { %8886 = vmatpush3.msra.mxu0 %v6810_v58 }
0x1f1b   :  { %8887 = vmatprep.subr.mxu0 %v6809_v14 }
0x1f1c   :  { %8888 = vmatpush3.msra.mxu0 %v6809_v14 }
0x1f1d   :  { %8889 = vmatprep.subr.mxu0 %v6808_v21 }
0x1f1e   :  { %8890 = vmatpush3.msra.mxu0 %v6808_v21 }
0x1f1f   :  { %8891 = vmatprep.subr.mxu0 %v6807_v61 }
0x1f20   :  { %8892 = vmatpush3.msra.mxu0 %v6807_v61 }
0x1f21   :  { %8893 = vmatprep.subr.mxu0 %v6806_v20  ;;  %v8861_v63 = vpop.f32.mrf.mxu1 }
0x1f22   :  { %8894 = vmatpush3.msra.mxu0 %v6806_v20 }
0x1f23   :  { %8895 = vmatprep.subr.mxu0 %v6805_v24  ;;  %v6422_v23 = vpop.f32.mrf.mxu1 }
0x1f24   :  { %8896 = vmatpush3.msra.mxu0 %v6805_v24 }
0x1f25   :  { %v8864_v12 = vpop.f32.mrf.mxu1 }
0x1f27   :  { %v6432_v36 = vpop.f32.mrf.mxu1 }
0x1fc5   :  { %v7615_v62 = vpop.f32.mrf.mxu0 }
0x1fc7   :  { %v7616_v1 = vpop.f32.mrf.mxu0 }
0x1fc8   :  { %v7617_v33 = vadd.f32 %v7616_v1, %v7615_v62 }
0x1fc9   :  { %v7618_v17 = vpop.f32.mrf.mxu0 }
0x1fca   :  { %v6338_v22 = vadd.f32 %v7617_v33, %v6804_v0 }
0x1fcb   :  { %v7619_v31 = vpop.f32.mrf.mxu0 }
0x1fcc   :  { %v7620_v25 = vadd.f32 %v7619_v31, %v7618_v17  ;;  %v6423_v55 = vadd.f32 %v6422_v23, %v6338_v22 }
0x1fcd   :  { %v7621_v27 = vpop.f32.mrf.mxu0 }
0x1fce   :  { %v6343_v28 = vadd.f32 %v7620_v25, %v6804_v0  ;;  %v6441_v9 = vmax.f32 %v6423_v55, 0.0 }
0x1fcf   :  { %v7622_v56 = vpop.f32.mrf.mxu0 }
0x1fd0   :  { %v6428_v29 = vadd.f32 %v8861_v63, %v6343_v28  ;;  %v7623_v53 = vadd.f32 %v7622_v56, %v7621_v27  ;;  %8897 = vmatprep.mubr.f32.mxu0 %v6441_v9 }
0x1fd1   :  { %v7624_v32 = vpop.f32.mrf.mxu0 }
0x1fd2   :  { %v6442_v48 = vmax.f32 %v6428_v29, 0.0  ;;  %v6348_v54 = vadd.f32 %v7623_v53, %v6804_v0 }
0x1fd3   :  { %v7625_v4 = vpop.f32.mrf.mxu0 }
0x1fd4   :  { %v7626_v38 = vadd.f32 %v7625_v4, %v7624_v32  ;;  %8898 = vmatmul.mubr.f32.vlgmr.msra.gmra.mxu0 %v6442_v48  ;;  %v6433_v39 = vadd.f32 %v6432_v36, %v6348_v54 }
0x1fd6   :  { %v6353_v2 = vadd.f32 %v7626_v38, %v6804_v0  ;;  %v6443_v26 = vmax.f32 %v6433_v39, 0.0 }
0x1fd8   :  { %v6438_v42 = vadd.f32 %v8864_v12, %v6353_v2  ;;  %8900 = vmatprep.mubr.f32.mxu0 %v6443_v26 }
0x1fda   :  { %v6444_v43 = vmax.f32 %v6438_v42, 0.0 }
0x1fdc   :  { %8901 = vmatmul.mubr.f32.gmra.mxu0 %v6444_v43 }
0x1fdd   :  { %9138 = shalt.err (!%p9135_p1)
}
0x1fde   :  { %6580 = dma.vmem_to_hbm [thread:$0]  %s6575_s15, 256, %s10289_s17, [#allocation4], %s9179_s19, %s9179_s19, %s9180_s1  }
0x1fdf   :  { %v6822_v40 = vld [vmem:[%s10288_s16 + $0x3] ss:$0 sm:$0xff]  ;;  %s9186_s17 = smov [#allocation12]  }
0x1fe0   :  { %s6586_s16 = sshll.u32 %s9186_s17, 4  ;;  %s6587_s16 = int_to_ptr.vmem [resolvable:$true] %s6586_s16 }
0x1fe1   :  { %s9147_s21 = scalar_lea.vmem %s6587_s16, 512  ;;  %p9152_p3 = scmp.lt.s32.totalorder %s6587_s16, %s6587_s16 }
0x1fe2   :  { %p9148_p2 = scmp.ne.s32.totalorder %s6587_s16, %s9147_s21  ;;  %p9153_p4 = scmp.lt.s32.totalorder %s9147_s21, %s9147_s21 }
0x1fe4   :  { %p9154_p5 = por %p9153_p4, %p9152_p3 }
0x1fe6   :  { %p9155_p6 = pnand %p9154_p5, %p9148_p2 }
0x2094   :  { %v8899_v41 = vpop.f32.mrf.mxu0 }
0x2095   :  { %v6542_v57 = vadd.f32 %v8899_v41, %v6822_v40 }
0x2096   :  { %v6536_v10 = vpop.f32.mrf.mxu0 }
0x2097   :  { %v6556_v6 = vadd.f32 %v6542_v57, %v10066_v45  ;;  %v6537_v44 = vadd.f32 %v6822_v40, %v6536_v10 }
0x2099   :  { %v6560_v18 = vmax.f32 %v6556_v6, 0.0  ;;  %v6555_v49 = vadd.f32 %v6537_v44, %v10064_v34 }
0x209b   :  { %6566 = vst [vmem:[#allocation12 + $0x8] sm:$0xff] %v6560_v18  ;;  %v6559_v37 = vmax.f32 %v6555_v49, 0.0 }
0x209c   :  { %v8902_v16 = vpop.f32.mrf.mxu0 }
0x209d   :  { %6565 = vst [vmem:[#allocation12] sm:$0xff] %v6559_v37  ;;  %v6552_v30 = vadd.f32 %v8902_v16, %v6822_v40 }
0x209e   :  { %v6546_v35 = vpop.f32.mrf.mxu0 }
0x209f   :  { %v6558_v15 = vadd.f32 %v6552_v30, %v10077_v19  ;;  %v6547_v5 = vadd.f32 %v6822_v40, %v6546_v35 }
0x20a1   :  { %v6562_v11 = vmax.f32 %v6558_v15, 0.0  ;;  %v6557_v50 = vadd.f32 %v6547_v5, %v10075_v3 }
0x20a3   :  { %6568 = vst [vmem:[#allocation12 + $0x18] sm:$0xff] %v6562_v11  ;;  %v6561_v45 = vmax.f32 %v6557_v50, 0.0 }
0x20a5   :  { %6567 = vst [vmem:[#allocation12 + $0x10] sm:$0xff] %v6561_v45 }
0x20a6   :  { %9158 = shalt.err (!%p9155_p6)
}
0x20a7   :  { %6592 = dma.vmem_to_hbm [thread:$0]  %s6587_s16, 512, %s10290_s18, [#allocation13], %s9179_s19, %s9179_s19, %s9180_s1  }
0x20a8   :  { %9173 = dma.done.wait [#allocation4], 256  }
0x20a9   :  { %9174 = vsyncadd [#allocation4], 4294967040 }
0x20aa   :  { %9175 = dma.done.wait [#allocation13], 512  }
0x20ab   :  { %9176 = vsyncadd [#allocation13], 4294966784 }
0x20ac   :  { %6599 = vsyncpa [#allocation3], 1 }
0x20ad   :  { %6600 = vsyncpa [#allocation6], 1 }
0x20ae   :  { %6601 = vsyncpa [#allocation9], 1 }
0x20af   :  { %6602 = vsyncpa [#allocation4], 1 }
0x20b0   :  { %6603 = vsyncpa [#allocation13], 1 }

</bundles_post_ra>
